<compile_context>
chip_gen: v7x
topology: tpu7x:2x2x1
jax: 0.10.0
libtpu: 0.0.40
codegen_flags: <defaults>
</compile_context>

<pallas_src>
import jax
import jax.numpy as jnp
from jax import lax
from jax.experimental import pallas as pl
from jax.experimental.pallas import tpu as pltpu

LATENT_DIM = 8
IMG_H = 256                    # -> 32 after /8  (smallest_img_dim_x)
IMG_W = 192                    # -> 24 after /8  (smallest_img_dim_y)
H3, W3 = IMG_H // 8, IMG_W // 8
S3 = H3 * W3                   # 768 spatial positions per image after conv3
C1, C2, C3 = 20, 40, 80
FLAT = S3 * C3                 # 61440 == Linear in_features
R1, R2 = 16 * C1, 4 * C2       # stacked row counts of conv1/conv2 outputs (320, 160)


# ---------------------------------------------------------------------------
# Kernel A: fused conv1+conv2+conv3 (+tanh), one image per grid step.
# Activations are (channels-on-sublanes, pixels-on-lanes); the hierarchical
# 2x2 column ordering of the input makes every layer a single 2D matmul
# against a block-diagonal weight.
# ---------------------------------------------------------------------------
def _conv_kernel(p_ref, w1_ref, b1_ref, w2_ref, b2_ref, w3_ref, b3_ref, o_ref):
    # conv1: (320,64)@(64,768) -- 16 spatial groups of the (20,4) kernel on the
    # block diagonal.  bf16 operands, f32 accumulate, tanh in f32.
    a1 = jnp.dot(w1_ref[...], p_ref[...], preferred_element_type=jnp.float32)
    o1 = jnp.tanh(a1 + b1_ref[...]).astype(jnp.bfloat16)            # (320, 768)

    # conv2: (160,320)@(320,768) -- 4 spatial groups of the (40,80) kernel.
    a2 = jnp.dot(w2_ref[...], o1, preferred_element_type=jnp.float32)
    o2 = jnp.tanh(a2 + b2_ref[...]).astype(jnp.bfloat16)            # (160, 768)

    # conv3: (80,160)@(160,768).  Rows = c3, lanes = (h3, w3): this block is
    # already in PyTorch view(B, -1) feature order for this image.
    a3 = jnp.dot(w3_ref[...], o2, preferred_element_type=jnp.float32)
    o_ref[...] = jnp.tanh(a3 + b3_ref[...]).astype(o_ref.dtype)     # (80, 768)


def fused_convs(x, pp):
    """x: (B, 1, 256, 192) f32 -> (B*80, 768) bf16, rows in (b, c3) order."""
    B = x.shape[0]
    assert x.shape[1:] == (1, IMG_H, IMG_W), x.shape

    # One-time hierarchical 2x2 space-to-depth (tiny XLA transpose, fused with
    # the bf16 cast).  Rows = (kh3,kw3,kh2,kw2,kh1,kw1), columns = (b,h3,w3),
    # so every conv layer's patch gather is the identity inside the kernel.
    xr = x.reshape(B, 1, H3, 2, 2, 2, W3, 2, 2, 2)
    # dims: (b, c, h3, kh3, kh2, kh1, w3, kw3, kw2, kw1)
    p0 = jnp.transpose(xr, (1, 3, 7, 4, 8, 5, 9, 0, 2, 6)).reshape(64, B * S3)
    p0 = p0.astype(jnp.bfloat16)

    return pl.pallas_call(
        _conv_kernel,
        out_shape=jax.ShapeDtypeStruct((B * C3, S3), jnp.bfloat16),
        grid_spec=pltpu.PrefetchScalarGridSpec(
            num_scalar_prefetch=0,
            grid=(B,),
            in_specs=[
                pl.BlockSpec((64, S3), lambda b: (0, b)),        # per-image input slab
                pl.BlockSpec((R1, 64), lambda b: (0, 0)),        # conv1 block-diag weight
                pl.BlockSpec((R1, 1), lambda b: (0, 0)),
                pl.BlockSpec((R2, R1), lambda b: (0, 0)),        # conv2 block-diag weight
                pl.BlockSpec((R2, 1), lambda b: (0, 0)),
                pl.BlockSpec((C3, R2), lambda b: (0, 0)),        # conv3 weight
                pl.BlockSpec((C3, 1), lambda b: (0, 0)),
            ],
            out_specs=pl.BlockSpec((C3, S3), lambda b: (b, 0)),
        ),
        compiler_params=pltpu.CompilerParams(dimension_semantics=("parallel",)),
    )(p0, pp["w1"], pp["b1"], pp["w2"], pp["b2"], pp["w3"], pp["b3"])


# ---------------------------------------------------------------------------
# Kernel B: both Linear heads as one K-tiled (B,K) x (N,K) matmul.  The K grid
# pipelines the ~2 MB bf16 weight DMA against the MXU; the (B,N) f32 output
# block stays resident as the accumulator.
# ---------------------------------------------------------------------------
def linear_heads(xf, w_nk, b_1n, *, tk=7680):
    Bx, K = xf.shape
    N = w_nk.shape[0]
    assert K % tk == 0
    nk = K // tk

    def kernel(x_ref, w_ref, b_ref, o_ref):
        k = pl.program_id(0)

        @pl.when(k == 0)
        def _():
            o_ref[...] = jnp.zeros_like(o_ref)

        o_ref[...] += lax.dot_general(
            x_ref[...], w_ref[...],
            dimension_numbers=(((1,), (1,)), ((), ())),
            preferred_element_type=jnp.float32)

        @pl.when(k == nk - 1)
        def _():
            o_ref[...] += b_ref[...]

    return pl.pallas_call(
        kernel,
        out_shape=jax.ShapeDtypeStruct((Bx, N), jnp.float32),
        grid_spec=pltpu.PrefetchScalarGridSpec(
            num_scalar_prefetch=0,
            grid=(nk,),
            in_specs=[
                pl.BlockSpec((Bx, tk), lambda k: (0, k)),
                pl.BlockSpec((N, tk), lambda k: (0, k)),
                pl.BlockSpec((1, N), lambda k: (0, 0)),
            ],
            out_specs=pl.BlockSpec((Bx, N), lambda k: (0, 0)),
        ),
        compiler_params=pltpu.CompilerParams(dimension_semantics=("arbitrary",)),
    )(xf, w_nk, b_1n)


# ---------------------------------------------------------------------------
# Parameters (PyTorch layout) and one-time packing for the kernels
# ---------------------------------------------------------------------------
def init_params(key, latent_dim=LATENT_DIM):
    ks = jax.random.split(key, 10)

    def w_init(k, shape, fan_in):
        return (jax.random.normal(k, shape, jnp.float32) / jnp.sqrt(fan_in)).astype(jnp.float32)

    return {
        "w1": w_init(ks[0], (C1, 1, 2, 2), 1 * 4),
        "b1": w_init(ks[1], (C1,), 1 * 4),
        "w2": w_init(ks[2], (C2, C1, 2, 2), C1 * 4),
        "b2": w_init(ks[3], (C2,), C1 * 4),
        "w3": w_init(ks[4], (C3, C2, 2, 2), C2 * 4),
        "b3": w_init(ks[5], (C3,), C2 * 4),
        "wl1": w_init(ks[6], (latent_dim, FLAT), FLAT),
        "bl1": w_init(ks[7], (latent_dim,), FLAT),
        "wl2": w_init(ks[8], (latent_dim, FLAT), FLAT),
        "bl2": w_init(ks[9], (latent_dim,), FLAT),
    }


def prepare_params(params):
    """One-time repacking of PyTorch-layout weights (outside the jitted forward):
    block-diagonal tap-stacked conv weights (bf16), tiled biases (f32),
    concatenated bf16 linear weight in the native (N, K) layout."""
    w1c = params["w1"].reshape(C1, 4)                                   # (20, 4)
    w2s = jnp.transpose(params["w2"], (0, 2, 3, 1)).reshape(C2, 4 * C1)  # (40, 80)
    w3s = jnp.transpose(params["w3"], (0, 2, 3, 1)).reshape(C3, 4 * C2)  # (80, 160)
    eye16 = jnp.eye(16, dtype=jnp.float32)
    eye4 = jnp.eye(4, dtype=jnp.float32)
    return {
        "w1": jnp.kron(eye16, w1c).astype(jnp.bfloat16),                 # (320, 64)
        "b1": jnp.tile(params["b1"], 16).reshape(R1, 1).astype(jnp.float32),
        "w2": jnp.kron(eye4, w2s).astype(jnp.bfloat16),                  # (160, 320)
        "b2": jnp.tile(params["b2"], 4).reshape(R2, 1).astype(jnp.float32),
        "w3": w3s.astype(jnp.bfloat16),                                  # (80, 160)
        "b3": params["b3"].reshape(C3, 1).astype(jnp.float32),
        "wl": jnp.concatenate([params["wl1"], params["wl2"]], axis=0).astype(jnp.bfloat16),
        "bl": jnp.concatenate([params["bl1"], params["bl2"]], axis=0).reshape(1, -1).astype(jnp.float32),
    }


@jax.jit
def encoder_forward(x, pp):
    latent = pp["wl"].shape[0] // 2
    B = x.shape[0]
    conv_out = fused_convs(x, pp)             # (B*80, 768) bf16
    xf = conv_out.reshape(B, FLAT)            # free row-major merge == torch .view(B,-1)
    z = linear_heads(xf, pp["wl"], pp["bl"])  # (B, 2*latent) f32
    return z[:, :latent], z[:, latent:]


# ---------------------------------------------------------------------------
# Pure-JAX f32 reference for verification
# ---------------------------------------------------------------------------
def reference_forward(x, params):
    def conv(x, w, b):
        y = lax.conv_general_dilated(
            x, w, window_strides=(2, 2), padding="VALID",
            dimension_numbers=("NCHW", "OIHW", "NCHW"))
        return jnp.tanh(y + b.reshape(1, -1, 1, 1))

    x = conv(x, params["w1"], params["b1"])
    x = conv(x, params["w2"], params["b2"])
    x = conv(x, params["w3"], params["b3"])
    xf = x.reshape(x.shape[0], -1)
    z_mu = xf @ params["wl1"].T + params["bl1"]
    z_var = xf @ params["wl2"].T + params["bl2"]
    return z_mu, z_var


if __name__ == "__main__":
    key = jax.random.PRNGKey(0)
    kx, kp = jax.random.split(key)
    # batch=2 single-channel NCHW images; 256x192 -> 32x24 after three /2 convs
    x = jax.random.normal(kx, (2, 1, IMG_H, IMG_W), jnp.float32)
    params = init_params(kp, LATENT_DIM)
    packed = prepare_params(params)   # one-time weight packing (block-diag + bf16)

    z_mu, z_var = encoder_forward(x, packed)
    jax.block_until_ready((z_mu, z_var))

    r_mu, r_var = reference_forward(x, params)
    assert z_mu.shape == (2, LATENT_DIM) and z_var.shape == (2, LATENT_DIM)
    # bf16 MXU operands throughout (vs. the f32 reference): tolerance per review.
    assert jnp.allclose(z_mu, r_mu, atol=3e-2, rtol=3e-2), float(jnp.max(jnp.abs(z_mu - r_mu)))
    assert jnp.allclose(z_var, r_var, atol=3e-2, rtol=3e-2), float(jnp.max(jnp.abs(z_var - r_var)))

    print("KERNEL_OK")
</pallas_src>

<mosaic_0001>
module attributes {stable_mosaic.version = 11 : i64} {
  func.func @_conv_kernel(%arg0: i32, %arg1: memref<64x768xbf16, #tpu.memory_space<vmem>>, %arg2: memref<320x64xbf16, #tpu.memory_space<vmem>>, %arg3: memref<320x1xf32, #tpu.memory_space<vmem>>, %arg4: memref<160x320xbf16, #tpu.memory_space<vmem>>, %arg5: memref<160x1xf32, #tpu.memory_space<vmem>>, %arg6: memref<80x160xbf16, #tpu.memory_space<vmem>>, %arg7: memref<80x1xf32, #tpu.memory_space<vmem>>, %arg8: memref<80x768xbf16, #tpu.memory_space<vmem>>) attributes {dimension_semantics = [#tpu.dimension_semantics<parallel>], iteration_bounds = array<i64: 2>, scalar_prefetch = 0 : i64, scratch_operands = 0 : i64, tpu.core_type = #tpu.core_type<tc>, window_params = [{transform_indices = @transform_0, window_bounds = array<i64: 64, 768>}, {pipeline_mode = #tpu.pipeline_mode<synchronous>, transform_indices = @transform_1, window_bounds = array<i64: 320, 64>}, {pipeline_mode = #tpu.pipeline_mode<synchronous>, transform_indices = @transform_2, window_bounds = array<i64: 320, 1>}, {pipeline_mode = #tpu.pipeline_mode<synchronous>, transform_indices = @transform_3, window_bounds = array<i64: 160, 320>}, {pipeline_mode = #tpu.pipeline_mode<synchronous>, transform_indices = @transform_4, window_bounds = array<i64: 160, 1>}, {pipeline_mode = #tpu.pipeline_mode<synchronous>, transform_indices = @transform_5, window_bounds = array<i64: 80, 160>}, {pipeline_mode = #tpu.pipeline_mode<synchronous>, transform_indices = @transform_6, window_bounds = array<i64: 80, 1>}, {transform_indices = @transform_7, window_bounds = array<i64: 80, 768>}]} {
    %c0 = arith.constant 0 : index
    %c0_0 = arith.constant 0 : index
    %0 = vector.load %arg2[%c0, %c0_0] : memref<320x64xbf16, #tpu.memory_space<vmem>>, vector<320x64xbf16>
    %c0_1 = arith.constant 0 : index
    %c0_2 = arith.constant 0 : index
    %1 = vector.load %arg1[%c0_1, %c0_2] : memref<64x768xbf16, #tpu.memory_space<vmem>>, vector<64x768xbf16>
    %cst = arith.constant dense<0.000000e+00> : vector<320x768xf32>
    %2 = tpu.matmul %0, %1, %cst {dimension_numbers = #tpu.dot_dimension_numbers<[1], [0], [0], [1], [0, 0, 1, 1], [], []>} : vector<320x64xbf16>, vector<64x768xbf16>, vector<320x768xf32> -> vector<320x768xf32>
    %c0_3 = arith.constant 0 : index
    %c0_4 = arith.constant 0 : index
    %3 = vector.load %arg3[%c0_3, %c0_4] : memref<320x1xf32, #tpu.memory_space<vmem>>, vector<320x1xf32>
    %4 = vector.broadcast %3 : vector<320x1xf32> to vector<320x768xf32>
    %5 = arith.addf %2, %4 : vector<320x768xf32>
    %6 = math.tanh %5 : vector<320x768xf32>
    %7 = arith.truncf %6 : vector<320x768xf32> to vector<320x768xbf16>
    %c0_5 = arith.constant 0 : index
    %c0_6 = arith.constant 0 : index
    %8 = vector.load %arg4[%c0_5, %c0_6] : memref<160x320xbf16, #tpu.memory_space<vmem>>, vector<160x320xbf16>
    %cst_7 = arith.constant dense<0.000000e+00> : vector<160x768xf32>
    %9 = tpu.matmul %8, %7, %cst_7 {dimension_numbers = #tpu.dot_dimension_numbers<[1], [0], [0], [1], [0, 0, 1, 1], [], []>} : vector<160x320xbf16>, vector<320x768xbf16>, vector<160x768xf32> -> vector<160x768xf32>
    %c0_8 = arith.constant 0 : index
    %c0_9 = arith.constant 0 : index
    %10 = vector.load %arg5[%c0_8, %c0_9] : memref<160x1xf32, #tpu.memory_space<vmem>>, vector<160x1xf32>
    %11 = vector.broadcast %10 : vector<160x1xf32> to vector<160x768xf32>
    %12 = arith.addf %9, %11 : vector<160x768xf32>
    %13 = math.tanh %12 : vector<160x768xf32>
    %14 = arith.truncf %13 : vector<160x768xf32> to vector<160x768xbf16>
    %c0_10 = arith.constant 0 : index
    %c0_11 = arith.constant 0 : index
    %15 = vector.load %arg6[%c0_10, %c0_11] : memref<80x160xbf16, #tpu.memory_space<vmem>>, vector<80x160xbf16>
    %cst_12 = arith.constant dense<0.000000e+00> : vector<80x768xf32>
    %16 = tpu.matmul %15, %14, %cst_12 {dimension_numbers = #tpu.dot_dimension_numbers<[1], [0], [0], [1], [0, 0, 1, 1], [], []>} : vector<80x160xbf16>, vector<160x768xbf16>, vector<80x768xf32> -> vector<80x768xf32>
    %c0_13 = arith.constant 0 : index
    %c0_14 = arith.constant 0 : index
    %17 = vector.load %arg7[%c0_13, %c0_14] : memref<80x1xf32, #tpu.memory_space<vmem>>, vector<80x1xf32>
    %18 = vector.broadcast %17 : vector<80x1xf32> to vector<80x768xf32>
    %19 = arith.addf %16, %18 : vector<80x768xf32>
    %20 = math.tanh %19 : vector<80x768xf32>
    %21 = arith.truncf %20 : vector<80x768xf32> to vector<80x768xbf16>
    %c0_15 = arith.constant 0 : index
    %c0_16 = arith.constant 0 : index
    %22 = vector.load %arg8[%c0_15, %c0_16] : memref<80x768xbf16, #tpu.memory_space<vmem>>, vector<80x768xbf16>
    tpu.vector_store %arg8[%c0_15, %c0_16], %21 {strides = array<i32>} : memref<80x768xbf16, #tpu.memory_space<vmem>>, vector<80x768xbf16>,
    return
  }
  func.func @transform_0(%arg0: i32) -> (i32, i32) {
    %c0_i32 = arith.constant 0 : i32
    %c0_i32_0 = arith.constant 0 : i32
    return %c0_i32, %arg0 : i32, i32
  }
  func.func @transform_1(%arg0: i32) -> (i32, i32) {
    %c0_i32 = arith.constant 0 : i32
    %c0_i32_0 = arith.constant 0 : i32
    %c0_i32_1 = arith.constant 0 : i32
    return %c0_i32, %c0_i32_0 : i32, i32
  }
  func.func @transform_2(%arg0: i32) -> (i32, i32) {
    %c0_i32 = arith.constant 0 : i32
    %c0_i32_0 = arith.constant 0 : i32
    %c0_i32_1 = arith.constant 0 : i32
    return %c0_i32, %c0_i32_0 : i32, i32
  }
  func.func @transform_3(%arg0: i32) -> (i32, i32) {
    %c0_i32 = arith.constant 0 : i32
    %c0_i32_0 = arith.constant 0 : i32
    %c0_i32_1 = arith.constant 0 : i32
    return %c0_i32, %c0_i32_0 : i32, i32
  }
  func.func @transform_4(%arg0: i32) -> (i32, i32) {
    %c0_i32 = arith.constant 0 : i32
    %c0_i32_0 = arith.constant 0 : i32
    %c0_i32_1 = arith.constant 0 : i32
    return %c0_i32, %c0_i32_0 : i32, i32
  }
  func.func @transform_5(%arg0: i32) -> (i32, i32) {
    %c0_i32 = arith.constant 0 : i32
    %c0_i32_0 = arith.constant 0 : i32
    %c0_i32_1 = arith.constant 0 : i32
    return %c0_i32, %c0_i32_0 : i32, i32
  }
  func.func @transform_6(%arg0: i32) -> (i32, i32) {
    %c0_i32 = arith.constant 0 : i32
    %c0_i32_0 = arith.constant 0 : i32
    %c0_i32_1 = arith.constant 0 : i32
    return %c0_i32, %c0_i32_0 : i32, i32
  }
  func.func @transform_7(%arg0: i32) -> (i32, i32) {
    %c0_i32 = arith.constant 0 : i32
    %c0_i32_0 = arith.constant 0 : i32
    return %arg0, %c0_i32 : i32, i32
  }
}

module attributes {stable_mosaic.version = 11 : i64} {
  func.func @kernel(%arg0: i32, %arg1: memref<2x7680xbf16, #tpu.memory_space<vmem>>, %arg2: memref<16x7680xbf16, #tpu.memory_space<vmem>>, %arg3: memref<1x16xf32, #tpu.memory_space<vmem>>, %arg4: memref<2x16xf32, #tpu.memory_space<vmem>>) attributes {dimension_semantics = [#tpu.dimension_semantics<arbitrary>], iteration_bounds = array<i64: 8>, scalar_prefetch = 0 : i64, scratch_operands = 0 : i64, tpu.core_type = #tpu.core_type<tc>, window_params = [{transform_indices = @transform_0, window_bounds = array<i64: 2, 7680>}, {transform_indices = @transform_1, window_bounds = array<i64: 16, 7680>}, {pipeline_mode = #tpu.pipeline_mode<synchronous>, transform_indices = @transform_2, window_bounds = array<i64: 1, 16>}, {pipeline_mode = #tpu.pipeline_mode<synchronous>, transform_indices = @transform_3, window_bounds = array<i64: 2, 16>}]} {
    %c0_i32 = arith.constant 0 : i32
    %0 = arith.cmpi eq, %arg0, %c0_i32 : i32
    %1 = arith.extui %0 : i1 to i32
    %c0_i32_0 = arith.constant 0 : i32
    %2 = arith.cmpi ne, %1, %c0_i32_0 : i32
    scf.if %2 {
      %cst_9 = arith.constant 0.000000e+00 : f32
      %12 = vector.broadcast %cst_9 : f32 to vector<2x16xf32>
      %c0_10 = arith.constant 0 : index
      %c0_11 = arith.constant 0 : index
      %13 = vector.load %arg4[%c0_10, %c0_11] : memref<2x16xf32, #tpu.memory_space<vmem>>, vector<2x16xf32>
      tpu.vector_store %arg4[%c0_10, %c0_11], %12 {strides = array<i32>} : memref<2x16xf32, #tpu.memory_space<vmem>>, vector<2x16xf32>,
    } else {
    }
    %c0 = arith.constant 0 : index
    %c0_1 = arith.constant 0 : index
    %3 = vector.load %arg4[%c0, %c0_1] : memref<2x16xf32, #tpu.memory_space<vmem>>, vector<2x16xf32>
    %c0_2 = arith.constant 0 : index
    %c0_3 = arith.constant 0 : index
    %4 = vector.load %arg1[%c0_2, %c0_3] : memref<2x7680xbf16, #tpu.memory_space<vmem>>, vector<2x7680xbf16>
    %c0_4 = arith.constant 0 : index
    %c0_5 = arith.constant 0 : index
    %5 = vector.load %arg2[%c0_4, %c0_5] : memref<16x7680xbf16, #tpu.memory_space<vmem>>, vector<16x7680xbf16>
    %cst = arith.constant dense<0.000000e+00> : vector<2x16xf32>
    %6 = tpu.matmul %4, %5, %cst {dimension_numbers = #tpu.dot_dimension_numbers<[1], [1], [0], [0], [0, 0, 1, 0], [], []>} : vector<2x7680xbf16>, vector<16x7680xbf16>, vector<2x16xf32> -> vector<2x16xf32>
    %7 = arith.addf %3, %6 : vector<2x16xf32>
    %c0_6 = arith.constant 0 : index
    %c0_7 = arith.constant 0 : index
    %8 = vector.load %arg4[%c0_6, %c0_7] : memref<2x16xf32, #tpu.memory_space<vmem>>, vector<2x16xf32>
    tpu.vector_store %arg4[%c0_6, %c0_7], %7 {strides = array<i32>} : memref<2x16xf32, #tpu.memory_space<vmem>>, vector<2x16xf32>,
    %c7_i32 = arith.constant 7 : i32
    %9 = arith.cmpi eq, %arg0, %c7_i32 : i32
    %10 = arith.extui %9 : i1 to i32
    %c0_i32_8 = arith.constant 0 : i32
    %11 = arith.cmpi ne, %10, %c0_i32_8 : i32
    scf.if %11 {
      %c0_9 = arith.constant 0 : index
      %c0_10 = arith.constant 0 : index
      %12 = vector.load %arg4[%c0_9, %c0_10] : memref<2x16xf32, #tpu.memory_space<vmem>>, vector<2x16xf32>
      %c0_11 = arith.constant 0 : index
      %c0_12 = arith.constant 0 : index
      %13 = vector.load %arg3[%c0_11, %c0_12] : memref<1x16xf32, #tpu.memory_space<vmem>>, vector<1x16xf32>
      %14 = vector.broadcast %13 : vector<1x16xf32> to vector<2x16xf32>
      %15 = arith.addf %12, %14 : vector<2x16xf32>
      %c0_13 = arith.constant 0 : index
      %c0_14 = arith.constant 0 : index
      %16 = vector.load %arg4[%c0_13, %c0_14] : memref<2x16xf32, #tpu.memory_space<vmem>>, vector<2x16xf32>
      tpu.vector_store %arg4[%c0_13, %c0_14], %15 {strides = array<i32>} : memref<2x16xf32, #tpu.memory_space<vmem>>, vector<2x16xf32>,
    } else {
    }
    return
  }
  func.func @transform_0(%arg0: i32) -> (i32, i32) {
    %c0_i32 = arith.constant 0 : i32
    %c0_i32_0 = arith.constant 0 : i32
    return %c0_i32, %arg0 : i32, i32
  }
  func.func @transform_1(%arg0: i32) -> (i32, i32) {
    %c0_i32 = arith.constant 0 : i32
    %c0_i32_0 = arith.constant 0 : i32
    return %c0_i32, %arg0 : i32, i32
  }
  func.func @transform_2(%arg0: i32) -> (i32, i32) {
    %c0_i32 = arith.constant 0 : i32
    %c0_i32_0 = arith.constant 0 : i32
    %c0_i32_1 = arith.constant 0 : i32
    return %c0_i32, %c0_i32_0 : i32, i32
  }
  func.func @transform_3(%arg0: i32) -> (i32, i32) {
    %c0_i32 = arith.constant 0 : i32
    %c0_i32_0 = arith.constant 0 : i32
    %c0_i32_1 = arith.constant 0 : i32
    return %c0_i32, %c0_i32_0 : i32, i32
  }
}

</mosaic_0001>

<bundles_post_ra>
// kernel: encoder_forward.2
= control target key start
LH: loop header
LB: loop body
LE: loop exit
PB: predicated region body
PF: predicated region fallthrough
CT: control target
= control target key end

     0   :  { %s5588_s24 = smov 0   ;;  %s5590_s25 = smov 0   ;;  %s7461_s0 = inlined_call_operand.vmem [shape: bf16[64,1536], index: 0, kind: input, shape index: {}]   ;;  %s7462_s1 = inlined_call_operand.vmem [shape: bf16[320,64], index: 1, kind: input, shape index: {}]   ;;  %s7463_s2 = inlined_call_operand.vmem [shape: f32[320,1], index: 2, kind: input, shape index: {}]   ;;  %s7464_s3 = inlined_call_operand.vmem [shape: bf16[160,320], index: 3, kind: input, shape index: {}]   ;;  %s7465_s4 = inlined_call_operand.vmem [shape: f32[160,1], index: 4, kind: input, shape index: {}]   ;;  %s7466_s5 = inlined_call_operand.vmem [shape: bf16[80,160], index: 5, kind: input, shape index: {}]   ;;  %s7467_s6 = inlined_call_operand.vmem [shape: f32[80,1], index: 6, kind: input, shape index: {}]   ;;  %s7468_s7 = inlined_call_operand.vmem [shape: bf16[160,768], index: 7, kind: output, shape index: {}]  }
   0x1   :  { %s5592_s26 = smov 0  }
   0x2 LB: > { %s4026_s27 = sadd.s32 4294967295, %s5545_s26   ;;  %s5605_s28 = sadd.s32 1, %s5545_s26   ;;  %s5545_s26 = sphi %s5592_s26, %s7584_s26   ;;  %s5541_s25 = sphi %s5590_s25, %s7583_s25   ;;  %s5537_s24 = sphi %s5588_s24, %s7582_s24  }
   0x3   : > { %s21_s29 = ssub.s32 %s5545_s26, %s5605_s28  ;;  %s24_s30 = sadd.s32 1, %s5541_s25 }
   0x4   : > { %p22_p0 = scmp.eq.s32.totalorder %s21_s29, 0  ;;  %p31_p1 = scmp.ne.s32.totalorder %s5541_s25, %s5537_s24 }
   0x5   : > { %p32_p2 = scmp.eq.s32.totalorder %s5545_s26, 0  ;;  %p4029_p4 = scmp.ge.s32.totalorder %s5545_s26, 2 }
   0x6   : > { %s5614_s8 = scalar_select %p22_p0, %s5541_s25, %s24_s30  }
   0x7   : > { %p33_p3 = por %p32_p2, %p31_p1  ;;  %227 = sbr.rel (%p4029_p4) target bundleno = 31 (0x1f), region = 40 }
   0xe   : > { %230 = sbr.rel (!%p33_p3) target bundleno = 31 (0x1f), region = 44  ;;  %s232_s9 = sand.u32 (%p33_p3), 1, %s5541_s25  }
   0xf   : > { %s4254_s10 = smul.u32 (%p33_p3), 24, %s5545_s26 }
  0x10   : > { %s4533_s11 = smul.u32 (%p33_p3), 192, %s232_s9 }
  0x11   : > { %s5622_s14 = scalar_lea.vmem (%p33_p3), %s7461_s0, %s4254_s10 }
  0x12   : > { %v250_v0 = vld [vmem:[%s5622_s14] sm:$0xff] (%p33_p3)  ;;  %v252_v1 = vld [vmem:[%s5622_s14 + $0x8] sm:$0xff] (%p33_p3)  ;;  %v254_v2 = vld [vmem:[%s5622_s14 + $0x10] sm:$0xff] (%p33_p3)  ;;  %s5627_s15 = scalar_lea.vmem (%p33_p3), [#allocation2], %s4533_s11 }
  0x13   : > { %251 = vst [vmem:[%s5627_s15] sm:$0xff] (%p33_p3), %v250_v0  ;;  %253 = vst [vmem:[%s5627_s15 + $0x8] sm:$0xff] (%p33_p3), %v252_v1  ;;  %v256_v3 = vld [vmem:[%s5622_s14 + $0x30] sm:$0xff] (%p33_p3)  ;;  %v258_v4 = vld [vmem:[%s5622_s14 + $0x38] sm:$0xff] (%p33_p3) }
  0x14   : > { %255 = vst [vmem:[%s5627_s15 + $0x10] sm:$0xff] (%p33_p3), %v254_v2  ;;  %v260_v5 = vld [vmem:[%s5622_s14 + $0x40] sm:$0xff] (%p33_p3)  ;;  %257 = vst [vmem:[%s5627_s15 + $0x18] sm:$0xff] (%p33_p3), %v256_v3  ;;  %v264_v7 = vld [vmem:[%s5622_s14 + $0x68] sm:$0xff] (%p33_p3) }
  0x15   : > { %259 = vst [vmem:[%s5627_s15 + $0x20] sm:$0xff] %v258_v4  ;;  %261 = vst [vmem:[%s5627_s15 + $0x28] sm:$0xff] %v260_v5  ;;  %v262_v6 = vld [vmem:[%s5622_s14 + $0x60] sm:$0xff]  ;;  %v266_v8 = vld [vmem:[%s5622_s14 + $0x70] sm:$0xff] }
  0x16   : > { %263 = vst [vmem:[%s5627_s15 + $0x30] sm:$0xff] %v262_v6  ;;  %265 = vst [vmem:[%s5627_s15 + $0x38] sm:$0xff] %v264_v7  ;;  %v268_v9 = vld [vmem:[%s5622_s14 + $0x90] sm:$0xff]  ;;  %v270_v10 = vld [vmem:[%s5622_s14 + $0x98] sm:$0xff] }
  0x17   : > { %267 = vst [vmem:[%s5627_s15 + $0x40] sm:$0xff] %v266_v8  ;;  %v272_v11 = vld [vmem:[%s5622_s14 + $0xa0] sm:$0xff]  ;;  %269 = vst [vmem:[%s5627_s15 + $0x48] sm:$0xff] %v268_v9  ;;  %v276_v13 = vld [vmem:[%s5622_s14 + $0xc8] sm:$0xff] }
  0x18   : > { %271 = vst [vmem:[%s5627_s15 + $0x50] sm:$0xff] %v270_v10  ;;  %273 = vst [vmem:[%s5627_s15 + $0x58] sm:$0xff] %v272_v11  ;;  %v274_v12 = vld [vmem:[%s5622_s14 + $0xc0] sm:$0xff]  ;;  %v278_v14 = vld [vmem:[%s5622_s14 + $0xd0] sm:$0xff] }
  0x19   : > { %275 = vst [vmem:[%s5627_s15 + $0x60] sm:$0xff] %v274_v12  ;;  %277 = vst [vmem:[%s5627_s15 + $0x68] sm:$0xff] %v276_v13  ;;  %v280_v15 = vld [vmem:[%s5622_s14 + $0xf0] sm:$0xff]  ;;  %v282_v16 = vld [vmem:[%s5622_s14 + $0xf8] sm:$0xff] }
  0x1a   : > { %279 = vst [vmem:[%s5627_s15 + $0x70] sm:$0xff] %v278_v14  ;;  %v284_v17 = vld [vmem:[%s5622_s14 + $0x100] sm:$0xff]  ;;  %281 = vst [vmem:[%s5627_s15 + $0x78] sm:$0xff] %v280_v15  ;;  %v288_v19 = vld [vmem:[%s5622_s14 + $0x128] sm:$0xff] }
  0x1b   : > { %283 = vst [vmem:[%s5627_s15 + $0x80] sm:$0xff] %v282_v16  ;;  %285 = vst [vmem:[%s5627_s15 + $0x88] sm:$0xff] %v284_v17  ;;  %v286_v18 = vld [vmem:[%s5622_s14 + $0x120] sm:$0xff]  ;;  %v290_v20 = vld [vmem:[%s5622_s14 + $0x130] sm:$0xff] }
  0x1c   : > { %287 = vst [vmem:[%s5627_s15 + $0x90] sm:$0xff] %v286_v18  ;;  %289 = vst [vmem:[%s5627_s15 + $0x98] sm:$0xff] %v288_v19  ;;  %v292_v21 = vld [vmem:[%s5622_s14 + $0x150] sm:$0xff]  ;;  %v294_v22 = vld [vmem:[%s5622_s14 + $0x158] sm:$0xff] }
  0x1d   : > { %291 = vst [vmem:[%s5627_s15 + $0xa0] sm:$0xff] %v290_v20  ;;  %v296_v23 = vld [vmem:[%s5622_s14 + $0x160] sm:$0xff]  ;;  %293 = vst [vmem:[%s5627_s15 + $0xa8] sm:$0xff] %v292_v21 }
  0x1e   : > { %295 = vst [vmem:[%s5627_s15 + $0xb0] sm:$0xff] %v294_v22  ;;  %297 = vst [vmem:[%s5627_s15 + $0xb8] sm:$0xff] %v296_v23 }
  0x1f PF: > { %p4031_p5 = scmp.ge.s32.totalorder %s5545_s26, 1  ;;  %p302_p6 = scmp.lt.s32.totalorder %s5545_s26, 3 }
  0x21   : > { %p303_p7 = pnand %p4031_p5, %p302_p6 }
  0x23   : > { %306 = sbr.rel (%p303_p7) target bundleno = 1234 (0x4d2), region = 67 }
  0x2a   : > { %v416_v24 = vld [vmem:[%s7463_s2 + $0x10] sm:$0xff]  ;;  %v414_v25 = vld [vmem:[%s7463_s2] sm:$0xff]  ;;  %s309_s20 = sand.u32 1, %s5537_s24   ;;  %v7469_v26 = vmov 0   ;;  %v417_v27 = vld [vmem:[%s7463_s2 + $0x18] sm:$0xff]  ;;  %vm874_vm0 = vcmask 523264  }
  0x2b   : > { %4562 = vset.pattern.permute.xlu1 %v7469_v26  ;;  %4561 = vset.pattern.permute.xlu0 %v7469_v26  ;;  %s4534_s21 = smul.u32 192, %s309_s20  ;;  %v415_v28 = vld [vmem:[%s7463_s2 + $0x8] sm:$0xff]  ;;  %v418_v33 = vld [vmem:[%s7463_s2 + $0x20] sm:$0xff]  ;;  %v421_v36 = vld [vmem:[%s7463_s2 + $0x38] sm:$0xff]  ;;  %vm3427_vm1 = vcmask 261120  }
  0x2c   : > { %466 = vperm.xlu1 %4562, %v416_v24   ;;  %456 = vperm.xlu0 %4561, %v414_v25   ;;  %v419_v32 = vld [vmem:[%s7463_s2 + $0x28] sm:$0xff]  ;;  %v420_v37 = vld [vmem:[%s7463_s2 + $0x30] sm:$0xff]  ;;  %v422_v41 = vld [vmem:[%s7463_s2 + $0x40] sm:$0xff]  ;;  %s342_s13 = smul.u32 10, %s4026_s27 }
  0x2d   : > { %967 = vmatprep.mubr.bf16.mxu0 %v7469_v26  ;;  %1147 = vmatprep.mubr.bf16.mxu1 %v7469_v26  ;;  %s5693_s24 = scalar_lea.vmem [#allocation2], %s4534_s21  ;;  %v423_v40 = vld [vmem:[%s7463_s2 + $0x48] sm:$0xff]  ;;  %v425_v44 = vld [vmem:[%s7463_s2 + $0x58] sm:$0xff]  ;;  %v424_v45 = vld [vmem:[%s7463_s2 + $0x50] sm:$0xff] }
  0x2e   : > { %v4563_v29 = vld [vmem:[%s5693_s24 + $0x4] ss:$24 sps:$4 sm:$0xff]   ;;  %v4565_v30 = vld [vmem:[%s5693_s24] ss:$24 sps:$4 sm:$0xff]   ;;  %v4566_v31 = vld [vmem:[%s5693_s24 + $0x34] ss:$24 sps:$4 sm:$0xff]  }
  0x2f   : > { %935 = vmatprep.subr.bf16.mxu0 %v4563_v29  ;;  %4285 = vmatprep.subr.bf16.mxu1 %v4563_v29  ;;  %v4568_v34 = vld [vmem:[%s5693_s24 + $0x30] ss:$24 sps:$4 sm:$0xff]   ;;  %v4569_v35 = vld [vmem:[%s5693_s24 + $0x64] ss:$24 sps:$4 sm:$0xff]   ;;  %v4571_v38 = vld [vmem:[%s5693_s24 + $0x60] ss:$24 sps:$4 sm:$0xff]  }
  0x30   : > { %471 = vperm.xlu1 %4562, %v417_v27   ;;  %461 = vperm.xlu0 %4561, %v415_v28   ;;  %v4572_v39 = vld [vmem:[%s5693_s24 + $0x94] ss:$24 sps:$4 sm:$0xff]   ;;  %v4574_v42 = vld [vmem:[%s5693_s24 + $0x90] ss:$24 sps:$4 sm:$0xff]   ;;  %v5731_v46 = vld [vmem:[%s7462_s1] sm:$0xff]   ;;  %p343_p8 = scmp.lt.s32.totalorder %s342_s13, 19 }
  0x31   : > { %936 = vmatpush1.bf16.msra.mxu0 %v4565_v30  ;;  %4289 = vmatpush1.bf16.msra.mxu1 %v4565_v30  ;;  %v4579_v43 = vld [vmem:[%s5693_s24 + $0xc] ss:$24 sps:$4 sm:$0xff]   ;;  %v5736_v47 = vld [vmem:[%s7462_s1 + $0x90] sm:$0xff]   ;;  %v4577_v48 = vld [vmem:[%s5693_s24 + $0x8] ss:$24 sps:$4 sm:$0xff]  }
  0x32   : > { %937 = vmatprep.subr.bf16.mxu0 %v4566_v31  ;;  %4286 = vmatprep.subr.bf16.mxu1 %v4566_v31  ;;  %v4582_v49 = vld [vmem:[%s5693_s24 + $0x3c] ss:$24 sps:$4 sm:$0xff]   ;;  %v427_v50 = vld [vmem:[%s7463_s2 + $0x68] sm:$0xff]  ;;  %v426_v51 = vld [vmem:[%s7463_s2 + $0x60] sm:$0xff]  ;;  %s7586_s13 = smov (!%p343_p8, %s342_s13), 19 }
  0x33   : > { %v4580_v52 = vld [vmem:[%s5693_s24 + $0x38] ss:$24 sps:$4 sm:$0xff]   ;;  %v4587_v53 = vld [vmem:[%s5693_s24 + $0x6c] ss:$24 sps:$4 sm:$0xff]   ;;  %v4585_v58 = vld [vmem:[%s5693_s24 + $0x68] ss:$24 sps:$4 sm:$0xff]  }
  0x34   : > { %481 = vperm.xlu1 %4562, %v419_v32   ;;  %476 = vperm.xlu0 %4561, %v418_v33   ;;  %v429_v54 = vld [vmem:[%s7463_s2 + $0x78] sm:$0xff]  ;;  %v428_v55 = vld [vmem:[%s7463_s2 + $0x70] sm:$0xff]  ;;  %v5763_v56 = vld [vmem:[%s7462_s1 + $0x8] sm:$0xff]   ;;  %s4535_s26 = smul.u32 24, %s7586_s13 }
  0x35   : > { %938 = vmatpush1.bf16.msra.mxu0 %v4568_v34  ;;  %4290 = vmatpush1.bf16.msra.mxu1 %v4568_v34  ;;  %v5768_v57 = vld [vmem:[%s7462_s1 + $0x98] sm:$0xff]   ;;  %v431_v60 = vld [vmem:[%s7463_s2 + $0x88] sm:$0xff]  ;;  %v430_v61 = vld [vmem:[%s7463_s2 + $0x80] sm:$0xff] }
  0x36   : > { %939 = vmatprep.subr.bf16.mxu0 %v4569_v35  ;;  %4287 = vmatprep.subr.bf16.mxu1 %v4569_v35  ;;  %v4590_v59 = vld [vmem:[%s5693_s24 + $0x9c] ss:$24 sps:$4 sm:$0xff]   ;;  %v4588_v62 = vld [vmem:[%s5693_s24 + $0x98] ss:$24 sps:$4 sm:$0xff]   ;;  %v435_v4 = vld [vmem:[%s7463_s2 + $0xa8] sm:$0xff]  ;;  %s7355_s15 = scalar_lea.vmem %s7468_s7, %s4535_s26 }
  0x37   : > { %v4596_v63 = vld [vmem:[%s5693_s24 + $0x10] ss:$24 sps:$4 sm:$0xff]   ;;  %v4598_v0 = vld [vmem:[%s5693_s24 + $0x14] ss:$24 sps:$4 sm:$0xff]   ;;  %v433_v1 = vld [vmem:[%s7463_s2 + $0x98] sm:$0xff] }
  0x38   : > { %491 = vperm.xlu1 %4562, %v421_v36   ;;  %486 = vperm.xlu0 %4561, %v420_v37   ;;  %v432_v2 = vld [vmem:[%s7463_s2 + $0x90] sm:$0xff]  ;;  %v434_v5 = vld [vmem:[%s7463_s2 + $0xa0] sm:$0xff]  ;;  %v437_v6 = vld [vmem:[%s7463_s2 + $0xb8] sm:$0xff] }
  0x39   : > { %940 = vmatpush1.bf16.msra.mxu0 %v4571_v38  ;;  %4291 = vmatpush1.bf16.msra.mxu1 %v4571_v38  ;;  %v5796_v3 = vld [vmem:[%s7462_s1 + $0x10] sm:$0xff]   ;;  %v5819_v8 = vld [vmem:[%s7462_s1 + $0x18] sm:$0xff]   ;;  %v439_v10 = vld [vmem:[%s7463_s2 + $0xc8] sm:$0xff] }
  0x3a   : > { %941 = vmatprep.subr.bf16.mxu0 %v4572_v39  ;;  %4288 = vmatprep.subr.bf16.mxu1 %v4572_v39  ;;  %v436_v7 = vld [vmem:[%s7463_s2 + $0xb0] sm:$0xff]  ;;  %v4606_v9 = vld [vmem:[%s5693_s24 + $0x44] ss:$24 sps:$4 sm:$0xff]   ;;  %v4604_v12 = vld [vmem:[%s5693_s24 + $0x40] ss:$24 sps:$4 sm:$0xff]  }
  0x3b   : > { %v438_v11 = vld [vmem:[%s7463_s2 + $0xc0] sm:$0xff]  ;;  %v441_v13 = vld [vmem:[%s7463_s2 + $0xd8] sm:$0xff]  ;;  %v440_v14 = vld [vmem:[%s7463_s2 + $0xd0] sm:$0xff] }
  0x3c   : > { %501 = vperm.xlu1 %4562, %v423_v40   ;;  %496 = vperm.xlu0 %4561, %v422_v41   ;;  %v5844_v15 = vld [vmem:[%s7462_s1 + $0x20] sm:$0xff]   ;;  %v443_v16 = vld [vmem:[%s7463_s2 + $0xe8] sm:$0xff]  ;;  %v445_v20 = vld [vmem:[%s7463_s2 + $0xf8] sm:$0xff] }
  0x3d   : > { %942 = vmatpush1.bf16.msra.mxu0 %v4574_v42  ;;  %4292 = vmatpush1.bf16.msra.mxu1 %v4574_v42  ;;  %v442_v17 = vld [vmem:[%s7463_s2 + $0xe0] sm:$0xff]  ;;  %v4611_v18 = vld [vmem:[%s5693_s24 + $0x70] ss:$24 sps:$4 sm:$0xff]   ;;  %v4613_v19 = vld [vmem:[%s5693_s24 + $0x74] ss:$24 sps:$4 sm:$0xff]  }
  0x3e   : > { %1168 = vmatprep.subr.bf16.mxu1 %v4579_v43  ;;  %1401 = vmatprep.subr.bf16.mxu0 %v4598_v0  ;;  %v444_v21 = vld [vmem:[%s7463_s2 + $0xf0] sm:$0xff]  ;;  %v5869_v22 = vld [vmem:[%s7462_s1 + $0x28] sm:$0xff]   ;;  %v4616_v23 = vld [vmem:[%s5693_s24 + $0xa0] ss:$24 sps:$4 sm:$0xff]  }
  0x3f   : > { %v4618_v24 = vld [vmem:[%s5693_s24 + $0xa4] ss:$24 sps:$4 sm:$0xff]   ;;  %v447_v25 = vld [vmem:[%s7463_s2 + $0x108] sm:$0xff]  ;;  %v448_v29 = vld [vmem:[%s7463_s2 + $0x110] sm:$0xff] }
  0x40   : > { %511 = vperm.xlu1 %4562, %v425_v44   ;;  %506 = vperm.xlu0 %4561, %v424_v45   ;;  %v446_v27 = vld [vmem:[%s7463_s2 + $0x100] sm:$0xff]  ;;  %v449_v28 = vld [vmem:[%s7463_s2 + $0x118] sm:$0xff]  ;;  %v5894_v30 = vld [vmem:[%s7462_s1 + $0x30] sm:$0xff]  }
  0x41   : > { %4077 = vmatmul.mubr.msk.bf16.vlgmr.msra.gmra.mrb[0].mxu0 %vm874_vm0, %v5731_v46  ;;  %4095 = vmatmul.mubr.msk.bf16.vlgmr.msra.gmra.mrb[0].mxu1 %vm874_vm0, %v5736_v47  ;;  %v451_v31 = vld [vmem:[%s7463_s2 + $0x128] sm:$0xff]  ;;  %v450_v32 = vld [vmem:[%s7463_s2 + $0x120] sm:$0xff]  ;;  %v453_v33 = vld [vmem:[%s7463_s2 + $0x138] sm:$0xff] }
  0x42   : > { %1169 = vmatpush1.bf16.msra.mxu1 %v4577_v48  ;;  %977 = vmatprep.mubr.bf16.mxu0 %v7469_v26  ;;  %v452_v34 = vld [vmem:[%s7463_s2 + $0x130] sm:$0xff]  ;;  %v5917_v35 = vld [vmem:[%s7462_s1 + $0x38] sm:$0xff]   ;;  %v2035_v36 = vld [vmem:[%s7465_s4 + $0x8] sm:$0xff] }
  0x43   : > { %1170 = vmatprep.subr.bf16.mxu1 %v4582_v49  ;;  %1157 = vmatprep.mubr.bf16.mxu1 %v7469_v26  ;;  %v2034_v37 = vld [vmem:[%s7465_s4] sm:$0xff]  ;;  %v2037_v38 = vld [vmem:[%s7465_s4 + $0x18] sm:$0xff]  ;;  %v2036_v39 = vld [vmem:[%s7465_s4 + $0x10] sm:$0xff] }
  0x44   : > { %521 = vperm.xlu1 %4562, %v427_v50   ;;  %516 = vperm.xlu0 %4561, %v426_v51   ;;  %v5940_v40 = vld [vmem:[%s7462_s1 + $0x40] sm:$0xff]   ;;  %v2039_v41 = vld [vmem:[%s7465_s4 + $0x28] sm:$0xff]  ;;  %v2041_v43 = vld [vmem:[%s7465_s4 + $0x38] sm:$0xff] }
  0x45   : > { %1402 = vmatpush1.bf16.msra.mxu0 %v4596_v63  ;;  %v2038_v42 = vld [vmem:[%s7465_s4 + $0x20] sm:$0xff]  ;;  %v2040_v44 = vld [vmem:[%s7465_s4 + $0x30] sm:$0xff]  ;;  %v5963_v45 = vld [vmem:[%s7462_s1 + $0x48] sm:$0xff]  }
  0x46   : > { %1171 = vmatpush1.bf16.msra.mxu1 %v4580_v52  ;;  %1403 = vmatprep.subr.bf16.mxu0 %v4606_v9  ;;  %v2043_v48 = vld [vmem:[%s7465_s4 + $0x48] sm:$0xff]  ;;  %v2042_v49 = vld [vmem:[%s7465_s4 + $0x40] sm:$0xff]  ;;  %v2045_v50 = vld [vmem:[%s7465_s4 + $0x58] sm:$0xff] }
  0x47   : > { %1172 = vmatprep.subr.bf16.mxu1 %v4587_v53  ;;  %v2044_v51 = vld [vmem:[%s7465_s4 + $0x50] sm:$0xff]  ;;  %v2047_v53 = vld [vmem:[%s7465_s4 + $0x68] sm:$0xff]  ;;  %v6032_v0 = vld [vmem:[%s7462_s1 + $0x60] sm:$0xff]  }
  0x48   : > { %531 = vperm.xlu1 %4562, %v429_v54   ;;  %526 = vperm.xlu0 %4561, %v428_v55   ;;  %v5986_v52 = vld [vmem:[%s7462_s1 + $0x50] sm:$0xff]   ;;  %v2046_v54 = vld [vmem:[%s7465_s4 + $0x60] sm:$0xff]  ;;  %v2049_v55 = vld [vmem:[%s7465_s4 + $0x78] sm:$0xff] }
  0x49   : > { %4078 = vmatmul.mubr.msk.bf16.gmra.mrb[4].mxu0 %vm874_vm0, %v5763_v56  ;;  %4096 = vmatmul.mubr.msk.bf16.gmra.mrb[4].mxu1 %vm874_vm0, %v5768_v57  ;;  %v2052_v63 = vld [vmem:[%s7465_s4 + $0x90] sm:$0xff]  ;;  %v3326_v9 = vld [vmem:[%s7467_s6 + $0x20] sm:$0xff] }
  0x4a   : > { %1173 = vmatpush1.bf16.msra.mxu1 %v4585_v58  ;;  %987 = vmatprep.mubr.bf16.mxu0 %v7469_v26  ;;  %v2048_v58 = vld [vmem:[%s7465_s4 + $0x70] sm:$0xff] }
  0x4b   : > { %1174 = vmatprep.subr.bf16.mxu1 %v4590_v59  ;;  %1200 = vmatprep.mubr.bf16.mxu1 %v7469_v26  ;;  %v6009_v59 = vld [vmem:[%s7462_s1 + $0x58] sm:$0xff]  }
  0x4c   : > { %541 = vperm.xlu1 %4562, %v431_v60   ;;  %536 = vperm.xlu0 %4561, %v430_v61   ;;  %v2051_v60 = vld [vmem:[%s7465_s4 + $0x88] sm:$0xff]  ;;  %v2050_v61 = vld [vmem:[%s7465_s4 + $0x80] sm:$0xff] }
  0x4d   : > { %1404 = vmatpush1.bf16.msra.mxu0 %v4604_v12  ;;  %v3329_v12 = vld [vmem:[%s7467_s6 + $0x38] sm:$0xff] }
  0x4e   : > { %1175 = vmatpush1.bf16.msra.mxu1 %v4588_v62  ;;  %1405 = vmatprep.subr.bf16.mxu0 %v4613_v19  ;;  %v2053_v62 = vld [vmem:[%s7465_s4 + $0x98] sm:$0xff]  ;;  %v3330_v19 = vld [vmem:[%s7467_s6 + $0x40] sm:$0xff] }
  0x50   : > { %551 = vperm.xlu1 %4562, %v433_v1   ;;  %546 = vperm.xlu0 %4561, %v432_v2   ;;  %v3323_v1 = vld [vmem:[%s7467_s6 + $0x8] sm:$0xff]  ;;  %v3322_v2 = vld [vmem:[%s7467_s6] sm:$0xff] }
  0x51   : > { %4079 = vmatmul.mubr.msk.bf16.gmra.mrb[8].mxu0 %vm874_vm0, %v5796_v3  ;;  %4097 = vmatmul.mubr.msk.bf16.vlgmr.msra.gmra.mrb[8].mxu1 %vm874_vm0, %v5731_v46 }
  0x52   : > { %997 = vmatprep.mubr.bf16.mxu0 %v7469_v26  ;;  %1210 = vmatprep.mubr.bf16.mxu1 %v7469_v26 }
  0x53   : > { %1406 = vmatpush1.bf16.msra.mxu0 %v4611_v18  ;;  %v3331_v18 = vld [vmem:[%s7467_s6 + $0x48] sm:$0xff] }
  0x54   : > { %561 = vperm.xlu1 %4562, %v435_v4   ;;  %556 = vperm.xlu0 %4561, %v434_v5   ;;  %v3325_v4 = vld [vmem:[%s7467_s6 + $0x18] sm:$0xff]  ;;  %v3324_v5 = vld [vmem:[%s7467_s6 + $0x10] sm:$0xff] }
  0x55   : > { %1407 = vmatprep.subr.bf16.mxu0 %v4618_v24 }
  0x57   : > { %1408 = vmatpush1.bf16.msra.mxu0 %v4616_v23 }
  0x58   : > { %571 = vperm.xlu1 %4562, %v437_v6   ;;  %566 = vperm.xlu0 %4561, %v436_v7   ;;  %v6055_v6 = vld [vmem:[%s7462_s1 + $0x68] sm:$0xff]  }
  0x59   : > { %4080 = vmatmul.mubr.msk.bf16.gmra.mrb[12].mxu0 %vm874_vm0, %v5819_v8  ;;  %4098 = vmatmul.mubr.msk.bf16.gmra.mrb[12].mxu1 %vm874_vm0, %v5763_v56  ;;  %v3327_v7 = vld [vmem:[%s7467_s6 + $0x28] sm:$0xff] }
  0x5a   : > { %1007 = vmatprep.mubr.bf16.mxu0 %v7469_v26  ;;  %1220 = vmatprep.mubr.bf16.mxu1 %v7469_v26 }
  0x5c   : > { %581 = vperm.xlu1 %4562, %v439_v10   ;;  %576 = vperm.xlu0 %4561, %v438_v11  }
  0x60   : > { %591 = vperm.xlu1 %4562, %v441_v13   ;;  %586 = vperm.xlu0 %4561, %v440_v14   ;;  %v3328_v13 = vld [vmem:[%s7467_s6 + $0x30] sm:$0xff] }
  0x61   : > { %4081 = vmatmul.mubr.msk.bf16.gmra.mrb[16].mxu0 %vm874_vm0, %v5844_v15  ;;  %4099 = vmatmul.mubr.msk.bf16.gmra.mrb[16].mxu1 %vm874_vm0, %v5796_v3  ;;  %v6082_v14 = vld [vmem:[%s7462_s1 + $0x70] sm:$0xff]  }
  0x62   : > { %1017 = vmatprep.mubr.bf16.mxu0 %v7469_v26  ;;  %1230 = vmatprep.mubr.bf16.mxu1 %v7469_v26 }
  0x64   : > { %601 = vperm.xlu1 %4562, %v443_v16   ;;  %596 = vperm.xlu0 %4561, %v442_v17  }
  0x68   : > { %611 = vperm.xlu1 %4562, %v445_v20   ;;  %606 = vperm.xlu0 %4561, %v444_v21   ;;  %v6105_v21 = vld [vmem:[%s7462_s1 + $0x78] sm:$0xff]  }
  0x69   : > { %4082 = vmatmul.mubr.msk.bf16.gmra.mrb[20].mxu0 %vm874_vm0, %v5869_v22  ;;  %4100 = vmatmul.mubr.msk.bf16.gmra.mrb[20].mxu1 %vm874_vm0, %v5819_v8 }
  0x6a   : > { %1027 = vmatprep.mubr.bf16.mxu0 %v7469_v26  ;;  %1240 = vmatprep.mubr.bf16.mxu1 %v7469_v26 }
  0x6c   : > { %621 = vperm.xlu1 %4562, %v447_v25   ;;  %616 = vperm.xlu0 %4561, %v446_v27   ;;  %v6122_v27 = vld [vmem:[%s7462_s1 + $0x80] sm:$0xff]  }
  0x70   : > { %631 = vperm.xlu1 %4562, %v449_v28   ;;  %626 = vperm.xlu0 %4561, %v448_v29  }
  0x71   : > { %4083 = vmatmul.mubr.msk.bf16.gmra.mrb[24].mxu0 %vm874_vm0, %v5894_v30  ;;  %4101 = vmatmul.mubr.msk.bf16.gmra.mrb[24].mxu1 %vm874_vm0, %v5844_v15 }
  0x72   : > { %1037 = vmatprep.mubr.bf16.mxu0 %v7469_v26  ;;  %1250 = vmatprep.mubr.bf16.mxu1 %v7469_v26 }
  0x74   : > { %641 = vperm.xlu1 %4562, %v451_v31   ;;  %636 = vperm.xlu0 %4561, %v450_v32   ;;  %v6139_v32 = vld [vmem:[%s7462_s1 + $0x88] sm:$0xff]  }
  0x78   : > { %651 = vperm.xlu1 %4562, %v453_v33   ;;  %646 = vperm.xlu0 %4561, %v452_v34  }
  0x79   : > { %4084 = vmatmul.mubr.msk.bf16.gmra.mrb[28].mxu0 %vm874_vm0, %v5917_v35  ;;  %4102 = vmatmul.mubr.msk.bf16.gmra.mrb[28].mxu1 %vm874_vm0, %v5869_v22 }
  0x7a   : > { %1047 = vmatprep.mubr.bf16.mxu0 %v7469_v26  ;;  %1260 = vmatprep.mubr.bf16.mxu1 %v7469_v26 }
  0x7c   : > { %2061 = vperm.xlu1 %4562, %v2035_v36   ;;  %2056 = vperm.xlu0 %4561, %v2034_v37  }
  0x80   : > { %2071 = vperm.xlu1 %4562, %v2037_v38   ;;  %2066 = vperm.xlu0 %4561, %v2036_v39  }
  0x81   : > { %4085 = vmatmul.mubr.msk.bf16.gmra.mrb[32].mxu0 %vm874_vm0, %v5940_v40  ;;  %4103 = vmatmul.mubr.msk.bf16.gmra.mrb[32].mxu1 %vm874_vm0, %v5894_v30 }
  0x82   : > { %1057 = vmatprep.mubr.bf16.mxu0 %v7469_v26  ;;  %1270 = vmatprep.mubr.bf16.mxu1 %v7469_v26 }
  0x84   : > { %2081 = vperm.xlu1 %4562, %v2039_v41   ;;  %2076 = vperm.xlu0 %4561, %v2038_v42  }
  0x88   : > { %2091 = vperm.xlu1 %4562, %v2041_v43   ;;  %2086 = vperm.xlu0 %4561, %v2040_v44  }
  0x89   : > { %4086 = vmatmul.mubr.msk.bf16.gmra.mrb[36].mxu0 %vm874_vm0, %v5963_v45  ;;  %4104 = vmatmul.mubr.msk.bf16.gmra.mrb[36].mxu1 %vm874_vm0, %v5917_v35 }
  0x8a   : > { %1067 = vmatprep.mubr.bf16.mxu0 %v7469_v26  ;;  %1280 = vmatprep.mubr.bf16.mxu1 %v7469_v26 }
  0x8c   : > { %2101 = vperm.xlu1 %4562, %v2043_v48   ;;  %2096 = vperm.xlu0 %4561, %v2042_v49  }
  0x90   : > { %2111 = vperm.xlu1 %4562, %v2045_v50   ;;  %2106 = vperm.xlu0 %4561, %v2044_v51  }
  0x91   : > { %4087 = vmatmul.mubr.msk.bf16.gmra.mrb[40].mxu0 %vm874_vm0, %v5986_v52  ;;  %4105 = vmatmul.mubr.msk.bf16.gmra.mrb[40].mxu1 %vm874_vm0, %v5940_v40 }
  0x92   : > { %1077 = vmatprep.mubr.bf16.mxu0 %v7469_v26  ;;  %1290 = vmatprep.mubr.bf16.mxu1 %v7469_v26 }
  0x94   : > { %2121 = vperm.xlu1 %4562, %v2047_v53   ;;  %2116 = vperm.xlu0 %4561, %v2046_v54  }
  0x98   : > { %2131 = vperm.xlu1 %4562, %v2049_v55   ;;  %2126 = vperm.xlu0 %4561, %v2048_v58  }
  0x99   : > { %4088 = vmatmul.mubr.msk.bf16.gmra.mrb[44].mxu0 %vm874_vm0, %v6009_v59  ;;  %4106 = vmatmul.mubr.msk.bf16.gmra.mrb[44].mxu1 %vm874_vm0, %v5963_v45 }
  0x9a   : > { %1087 = vmatprep.mubr.bf16.mxu0 %v7469_v26  ;;  %1300 = vmatprep.mubr.bf16.mxu1 %v7469_v26 }
  0x9c   : > { %2141 = vperm.xlu1 %4562, %v2051_v60   ;;  %2136 = vperm.xlu0 %4561, %v2050_v61  }
  0xa0   : > { %2151 = vperm.xlu1 %4562, %v2053_v62   ;;  %2146 = vperm.xlu0 %4561, %v2052_v63  }
  0xa1   : > { %4089 = vmatmul.mubr.msk.bf16.gmra.mrb[48].mxu0 %vm874_vm0, %v6032_v0  ;;  %4107 = vmatmul.mubr.msk.bf16.gmra.mrb[48].mxu1 %vm874_vm0, %v5986_v52 }
  0xa2   : > { %1097 = vmatprep.mubr.bf16.mxu0 %v7469_v26  ;;  %1310 = vmatprep.mubr.bf16.mxu1 %v7469_v26 }
  0xa4   : > { %3339 = vperm.xlu1 %4562, %v3323_v1   ;;  %3334 = vperm.xlu0 %4561, %v3322_v2  }
  0xa8   : > { %3349 = vperm.xlu1 %4562, %v3325_v4   ;;  %3344 = vperm.xlu0 %4561, %v3324_v5  }
  0xa9   : > { %4090 = vmatmul.mubr.msk.bf16.gmra.mrb[52].mxu0 %vm874_vm0, %v6055_v6  ;;  %4108 = vmatmul.mubr.msk.bf16.gmra.mrb[52].mxu1 %vm874_vm0, %v6009_v59 }
  0xaa   : > { %1107 = vmatprep.mubr.bf16.mxu0 %v7469_v26  ;;  %1320 = vmatprep.mubr.bf16.mxu1 %v7469_v26 }
  0xab   : > { %v6069_v10 = vpop.permute.xlu1 %466  ;;  %v6071_v11 = vpop.permute.xlu0 %456 }
  0xac   : > { %7506 = vst [vmem:[#allocation3_spill] sm:$0xff] %v6071_v11  ;;  %3359 = vperm.xlu1 %4562, %v3327_v7   ;;  %3354 = vperm.xlu0 %4561, %v3326_v9  }
  0xaf   : > { %v6084_v16 = vpop.permute.xlu0 %461  ;;  %v6086_v17 = vpop.permute.xlu1 %471 }
  0xb0   : > { %7507 = vst [vmem:[#allocation4_spill] sm:$0xff] %v6084_v16  ;;  %3369 = vperm.xlu1 %4562, %v3329_v12   ;;  %3364 = vperm.xlu0 %4561, %v3328_v13  }
  0xb1   : > { %4091 = vmatmul.mubr.msk.bf16.gmra.mrb[56].mxu0 %vm874_vm0, %v6082_v14  ;;  %4109 = vmatmul.mubr.msk.bf16.gmra.mrb[56].mxu1 %vm874_vm0, %v6032_v0 }
  0xb2   : > { %1117 = vmatprep.mubr.bf16.mxu0 %v7469_v26  ;;  %1330 = vmatprep.mubr.bf16.mxu1 %v7469_v26 }
  0xb3   : > { %v6100_v20 = vpop.permute.xlu0 %476  ;;  %v6107_v23 = vpop.permute.xlu1 %481 }
  0xb4   : > { %3379 = vperm.xlu1 %4562, %v3331_v18   ;;  %3374 = vperm.xlu0 %4561, %v3330_v19  }
  0xb7   : > { %v6109_v24 = vpop.permute.xlu0 %486  ;;  %v6117_v25 = vpop.permute.xlu1 %491 }
  0xb9   : > { %4092 = vmatmul.mubr.msk.bf16.gmra.mrb[60].mxu0 %vm874_vm0, %v6105_v21  ;;  %4110 = vmatmul.mubr.msk.bf16.gmra.mrb[60].mxu1 %vm874_vm0, %v6055_v6 }
  0xba   : > { %1127 = vmatprep.mubr.bf16.mxu0 %v7469_v26  ;;  %1340 = vmatprep.mubr.bf16.mxu1 %v7469_v26 }
  0xbb   : > { %v6124_v28 = vpop.permute.xlu0 %496  ;;  %v6132_v29 = vpop.permute.xlu1 %501 }
  0xbf   : > { %v6134_v31 = vpop.permute.xlu0 %506  ;;  %v6141_v33 = vpop.permute.xlu1 %511 }
  0xc1   : > { %4093 = vmatmul.mubr.msk.bf16.gmra.mrb[64].mxu0 %vm874_vm0, %v6122_v27  ;;  %4111 = vmatmul.mubr.msk.bf16.gmra.mrb[64].mxu1 %vm874_vm0, %v6082_v14 }
  0xc2   : > { %1137 = vmatprep.mubr.bf16.mxu0 %v7469_v26  ;;  %1350 = vmatprep.mubr.bf16.mxu1 %v7469_v26 }
  0xc3   : > { %v6149_v34 = vpop.permute.xlu0 %516  ;;  %v6151_v36 = vpop.permute.xlu1 %521 }
  0xc7   : > { %v6153_v37 = vpop.permute.xlu0 %526  ;;  %v6161_v38 = vpop.permute.xlu1 %531 }
  0xc9   : > { %4094 = vmatmul.mubr.msk.bf16.gmra.mrb[68].mxu0 %vm874_vm0, %v6139_v32  ;;  %4112 = vmatmul.mubr.msk.bf16.gmra.mrb[68].mxu1 %vm874_vm0, %v6105_v21 }
  0xca   : > { %1360 = vmatprep.mubr.bf16.mxu1 %v7469_v26  ;;  %1433 = vmatprep.mubr.bf16.mxu0 %v7469_v26 }
  0xcb   : > { %v6163_v39 = vpop.permute.xlu0 %536  ;;  %v6171_v41 = vpop.permute.xlu1 %541 }
  0xcf   : > { %v6175_v42 = vpop.permute.xlu1 %551 }
  0xd1   : > { %4113 = vmatmul.mubr.msk.bf16.gmra.mrb[72].mxu1 %vm874_vm0, %v6122_v27  ;;  %4117 = vmatmul.mubr.msk.bf16.vlgmr.msra.gmra.mrb[72].mxu0 %vm874_vm0, %v5731_v46  ;;  %v6173_v46 = vpop.permute.xlu0 %546 }
  0xd2   : > { %1370 = vmatprep.mubr.bf16.mxu1 %v7469_v26  ;;  %1443 = vmatprep.mubr.bf16.mxu0 %v7469_v26 }
  0xd3   : > { %v6185_v43 = vpop.permute.xlu1 %561 }
  0xd9   : > { %4114 = vmatmul.mubr.msk.bf16.gmra.mrb[76].mxu1 %vm874_vm0, %v6139_v32  ;;  %4118 = vmatmul.mubr.msk.bf16.gmra.mrb[76].mxu0 %vm874_vm0, %v5763_v56  ;;  %v6183_v56 = vpop.permute.xlu0 %556 }
  0xda   : > { %1380 = vmatprep.mubr.bf16.mxu1 %v7469_v26  ;;  %1453 = vmatprep.mubr.bf16.mxu0 %v7469_v26 }
  0xdd   : > { %v6187_v44 = vpop.permute.xlu0 %566 }
  0xe1   : > { %4115 = vmatmul.mubr.msk.bf16.gmra.mrb[80].mxu1 %vm874_vm0, %v5736_v47  ;;  %4119 = vmatmul.mubr.msk.bf16.gmra.mrb[80].mxu0 %vm874_vm0, %v5796_v3  ;;  %v6194_v47 = vpop.permute.xlu1 %571  ;;  %v6196_v3 = vpop.permute.xlu0 %576 }
  0xe2   : > { %1390 = vmatprep.mubr.bf16.mxu1 %v7469_v26  ;;  %1463 = vmatprep.mubr.bf16.mxu0 %v7469_v26 }
  0xe5   : > { %v6201_v48 = vpop.permute.xlu1 %581  ;;  %v6203_v49 = vpop.permute.xlu0 %586 }
  0xe9   : > { %4116 = vmatmul.mubr.msk.bf16.gmra.mrb[84].mxu1 %vm874_vm0, %v5768_v57  ;;  %4120 = vmatmul.mubr.msk.bf16.gmra.mrb[84].mxu0 %vm874_vm0, %v5819_v8  ;;  %v6205_v50 = vpop.permute.xlu1 %591  ;;  %v6210_v57 = vpop.permute.xlu0 %596 }
  0xea   : > { %1473 = vmatprep.mubr.bf16.mxu0 %v7469_v26 }
  0xed   : > { %v6212_v8 = vpop.permute.xlu1 %601  ;;  %v6214_v51 = vpop.permute.xlu0 %606 }
  0xf1   : > { %4121 = vmatmul.mubr.msk.bf16.gmra.mrb[88].mxu0 %vm874_vm0, %v5844_v15  ;;  %v6219_v15 = vpop.permute.xlu1 %611  ;;  %v6221_v53 = vpop.permute.xlu0 %616 }
  0xf2   : > { %1483 = vmatprep.mubr.bf16.mxu0 %v7469_v26 }
  0xf5   : > { %v6228_v54 = vpop.permute.xlu0 %626 }
  0xf9   : > { %4122 = vmatmul.mubr.msk.bf16.gmra.mrb[92].mxu0 %vm874_vm0, %v5869_v22  ;;  %v6226_v22 = vpop.permute.xlu1 %621 }
  0xfa   : > { %1493 = vmatprep.mubr.bf16.mxu0 %v7469_v26 }
  0xfd   : > { %v6230_v55 = vpop.permute.xlu1 %631 }
  0xfe   : > { %7508 = vst [vmem:[#allocation5_spill] sm:$0xff] %v6230_v55 }
 0x101   : > { %4123 = vmatmul.mubr.msk.bf16.gmra.mrb[96].mxu0 %vm874_vm0, %v5894_v30  ;;  %v6235_v30 = vpop.permute.xlu0 %636  ;;  %v6241_v7 = vpop.permute.xlu1 %641 }
 0x102   : > { %1503 = vmatprep.mubr.bf16.mxu0 %v7469_v26  ;;  %7509 = vst [vmem:[#allocation6_spill] sm:$0xff] %v6235_v30  ;;  %7510 = vst [vmem:[#allocation7_spill] sm:$0xff] %v6241_v7 }
 0x109   : > { %4124 = vmatmul.mubr.msk.bf16.gmra.mrb[100].mxu0 %vm874_vm0, %v5917_v35 }
 0x10a   : > { %1513 = vmatprep.mubr.bf16.mxu0 %v7469_v26 }
 0x111   : > { %4125 = vmatmul.mubr.msk.bf16.gmra.mrb[104].mxu0 %vm874_vm0, %v5940_v40 }
 0x112   : > { %1523 = vmatprep.mubr.bf16.mxu0 %v7469_v26 }
 0x114   : > { %v969_v58 = vpop.f32.mrb[0].mxu0  ;;  %v1149_v60 = vpop.f32.mrb[0].mxu1 }
 0x115   : > { %v970_v61 = vadd.f32 %v969_v58, %v6071_v11  ;;  %v1150_v35 = vadd.f32 %v1149_v60, %v6235_v30  ;;  %v971_v62 = vpop.f32.mrb[1].mxu0  ;;  %v1151_v63 = vpop.f32.mrb[1].mxu1 }
 0x116   : > { %v972_v1 = vadd.f32 %v971_v62, %v6071_v11  ;;  %v1152_v2 = vadd.f32 %v1151_v63, %v6235_v30  ;;  %v973_v4 = vpop.f32.mrb[2].mxu0  ;;  %v1153_v5 = vpop.f32.mrb[2].mxu1 }
 0x117   : > { %4674 = vtanh.f32 %v970_v61  ;;  %v974_v40 = vadd.f32 %v973_v4, %v6084_v16  ;;  %v1154_v9 = vadd.f32 %v1153_v5, %v6241_v7  ;;  %v975_v12 = vpop.f32.mrb[3].mxu0  ;;  %v1155_v13 = vpop.f32.mrb[3].mxu1 }
 0x118   : > { %4676 = vtanh.f32 %v1150_v35  ;;  %v976_v18 = vadd.f32 %v975_v12, %v6084_v16  ;;  %v1156_v19 = vadd.f32 %v1155_v13, %v6241_v7  ;;  %v6250_v58 = vpop.permute.xlu0 %646  ;;  %v6256_v12 = vpop.permute.xlu1 %651 }
 0x119   : > { %4678 = vtanh.f32 %v972_v1  ;;  %4126 = vmatmul.mubr.msk.bf16.gmra.mrb[108].mxu0 %vm874_vm0, %v5963_v45  ;;  %7511 = vst [vmem:[#allocation8_spill] sm:$0xff] %v6250_v58  ;;  %7512 = vst [vmem:[#allocation9_spill] sm:$0xff] %v6256_v12 }
 0x11a   : > { %4680 = vtanh.f32 %v1152_v2  ;;  %1533 = vmatprep.mubr.bf16.mxu0 %v7469_v26 }
 0x11b   : > { %4682 = vtanh.f32 %v974_v40 }
 0x11c   : > { %4684 = vtanh.f32 %v1154_v9  ;;  %v979_v60 = vpop.f32.mrb[4].mxu0  ;;  %v1159_v61 = vpop.f32.mrb[4].mxu1 }
 0x11d   : > { %4686 = vtanh.f32 %v976_v18  ;;  %v980_v35 = vadd.f32 %v979_v60, %v6069_v10  ;;  %v1160_v62 = vadd.f32 %v1159_v61, %v6250_v58  ;;  %v981_v63 = vpop.f32.mrb[5].mxu0  ;;  %v1161_v1 = vpop.f32.mrb[5].mxu1 }
 0x11e   : > { %4688 = vtanh.f32 %v1156_v19  ;;  %v982_v45 = vadd.f32 %v981_v63, %v6069_v10  ;;  %v1162_v2 = vadd.f32 %v1161_v1, %v6250_v58  ;;  %v983_v4 = vpop.f32.mrb[6].mxu0  ;;  %v1163_v5 = vpop.f32.mrb[6].mxu1 }
 0x11f   : > { %4690 = vtanh.f32 %v980_v35  ;;  %v984_v40 = vadd.f32 %v983_v4, %v6086_v17  ;;  %v1164_v9 = vadd.f32 %v1163_v5, %v6256_v12  ;;  %v985_v13 = vpop.f32.mrb[7].mxu0  ;;  %v1165_v18 = vpop.f32.mrb[7].mxu1 }
 0x120   : > { %4692 = vtanh.f32 %v1160_v62  ;;  %v986_v19 = vadd.f32 %v985_v13, %v6086_v17  ;;  %v1166_v63 = vadd.f32 %v1165_v18, %v6256_v12 }
 0x121   : > { %v4675_v60 = vpop.eup %4674  ;;  %4694 = vtanh.f32 %v982_v45  ;;  %4127 = vmatmul.mubr.msk.bf16.gmra.mrb[112].mxu0 %vm874_vm0, %v5986_v52  ;;  %v6272_v45 = vld [vmem:[%s7464_s3 + $0x4] ss:$12 sps:$4 sm:$0xff]  }
 0x122   : > { %v6263_v61 = vpop.eup %4676  ;;  %4696 = vtanh.f32 %v1162_v2  ;;  %1543 = vmatprep.mubr.bf16.mxu0 %v7469_v26  ;;  %2366 = vmatprep.mubr.bf16.mxu1 %v6272_v45 }
 0x123   : > { %7513 = vst [vmem:[#allocation10_spill] sm:$0xff] %v6263_v61  ;;  %v4679_v35 = vpop.eup %4678  ;;  %4698 = vtanh.f32 %v984_v40 }
 0x124   : > { %v6267_v62 = vpop.eup %4680  ;;  %4700 = vtanh.f32 %v1164_v9  ;;  %v989_v1 = vpop.f32.mrb[8].mxu0 }
 0x125   : > { %7514 = vst [vmem:[#allocation11_spill] sm:$0xff] %v6267_v62  ;;  %v1202_v4 = vpop.f32.mrb[8].mxu1  ;;  %v4683_v52 = vpop.eup %4682  ;;  %4702 = vtanh.f32 %v986_v19  ;;  %v990_v2 = vadd.f32 %v989_v1, %v6100_v20 }
 0x126   : > { %v1203_v5 = vadd.f32 %v1202_v4, %v6071_v11  ;;  %v991_v13 = vpop.f32.mrb[9].mxu0  ;;  %v1204_v18 = vpop.f32.mrb[9].mxu1  ;;  %4704 = vtanh.f32 %v1166_v63  ;;  %v1874_v7 = vpack.c.bf16 %v4683_v52, %v4675_v60 }
 0x127   : > { %v6276_v26 = vpop.eup %4684  ;;  %v992_v40 = vadd.f32 %v991_v13, %v6100_v20  ;;  %v1205_v9 = vadd.f32 %v1204_v18, %v6071_v11  ;;  %v993_v12 = vpop.f32.mrb[10].mxu0  ;;  %4706 = vtanh.f32 %v990_v2 }
 0x128   : > { %7515 = vst [vmem:[#allocation12_spill] sm:$0xff] %v6276_v26  ;;  %v1206_v58 = vpop.f32.mrb[10].mxu1  ;;  %v4687_v30 = vpop.eup %4686  ;;  %v994_v19 = vadd.f32 %v993_v12, %v6107_v23  ;;  %4708 = vtanh.f32 %v1203_v5 }
 0x129   : > { %v6284_v4 = vpop.eup %4688  ;;  %v1207_v63 = vadd.f32 %v1206_v58, %v6084_v16  ;;  %v995_v13 = vpop.f32.mrb[11].mxu0  ;;  %v1875_v18 = vpack.c.bf16 %v4687_v30, %v4679_v35  ;;  %4710 = vtanh.f32 %v992_v40  ;;  %4128 = vmatmul.mubr.msk.bf16.gmra.mrb[116].mxu0 %vm874_vm0, %v6009_v59  ;;  %v7518_v58 = vmov 0  }
 0x12a   : > { %7516 = vst [vmem:[#allocation13_spill] sm:$0xff] %v6284_v4  ;;  %v1208_v55 = vpop.f32.mrb[11].mxu1  ;;  %v4691_v11 = vpop.eup %4690  ;;  %v996_v60 = vadd.f32 %v995_v13, %v6107_v23  ;;  %4712 = vtanh.f32 %v1205_v9  ;;  %1553 = vmatprep.mubr.bf16.mxu0 %v7518_v58 }
 0x12b   : > { %v6292_v52 = vpop.eup %4692  ;;  %v1209_v2 = vadd.f32 %v1208_v55, %v6084_v16  ;;  %2334 = vmatprep.subr.bf16.mxu1 %v1875_v18  ;;  %4714 = vtanh.f32 %v994_v19 }
 0x12c   : > { %7517 = vst [vmem:[#allocation14_spill] sm:$0xff] %v6292_v52  ;;  %v4695_v5 = vpop.eup %4694  ;;  %2335 = vmatpush1.bf16.msra.mxu1 %v1874_v7  ;;  %4716 = vtanh.f32 %v1207_v63  ;;  %v999_v35 = vpop.f32.mrb[12].mxu0 }
 0x12d   : > { %v6296_v30 = vpop.eup %4696  ;;  %v1212_v40 = vpop.f32.mrb[12].mxu1  ;;  %4718 = vtanh.f32 %v996_v60  ;;  %v1000_v13 = vadd.f32 %v999_v35, %v6109_v24 }
 0x12e   : > { %7519 = vst [vmem:[#allocation15_spill] sm:$0xff] %v6296_v30  ;;  %v4699_v59 = vpop.eup %4698  ;;  %v1213_v1 = vadd.f32 %v1212_v40, %v6069_v10  ;;  %v1001_v9 = vpop.f32.mrb[13].mxu0  ;;  %4720 = vtanh.f32 %v1209_v2 }
 0x12f   : > { %v1214_v12 = vpop.f32.mrb[13].mxu1  ;;  %v6300_v55 = vpop.eup %4700  ;;  %v1002_v18 = vadd.f32 %v1001_v9, %v6109_v24  ;;  %v1880_v63 = vpack.c.bf16 %v4699_v59, %v4691_v11  ;;  %4722 = vtanh.f32 %v1000_v13 }
 0x130   : > { %7520 = vst [vmem:[#allocation16_spill] sm:$0xff] %v6300_v55  ;;  %v1215_v7 = vadd.f32 %v1214_v12, %v6069_v10  ;;  %v1003_v19 = vpop.f32.mrb[14].mxu0  ;;  %v1216_v61 = vpop.f32.mrb[14].mxu1  ;;  %4724 = vtanh.f32 %v1213_v1 }
 0x131   : > { %v4703_v26 = vpop.eup %4702  ;;  %v1004_v60 = vadd.f32 %v1003_v19, %v6117_v25  ;;  %v1217_v62 = vadd.f32 %v1216_v61, %v6086_v17  ;;  %v1005_v2 = vpop.f32.mrb[15].mxu0  ;;  %4726 = vtanh.f32 %v1002_v18  ;;  %4129 = vmatmul.mubr.msk.bf16.gmra.mrb[120].mxu0 %vm874_vm0, %v6032_v0 }
 0x132   : > { %v6307_v40 = vpop.eup %4704  ;;  %v1218_v4 = vpop.f32.mrb[15].mxu1  ;;  %v1881_v9 = vpack.c.bf16 %v4703_v26, %v4695_v5  ;;  %v1006_v12 = vadd.f32 %v1005_v2, %v6117_v25  ;;  %4728 = vtanh.f32 %v1215_v7  ;;  %1563 = vmatprep.mubr.bf16.mxu0 %v7518_v58 }
 0x133   : > { %7521 = vst [vmem:[#allocation17_spill] sm:$0xff] %v6307_v40  ;;  %v4707_v16 = vpop.eup %4706  ;;  %v1219_v13 = vadd.f32 %v1218_v4, %v6086_v17  ;;  %4730 = vtanh.f32 %v1004_v60 }
 0x134   : > { %v4709_v59 = vpop.eup %4708  ;;  %2336 = vmatprep.subr.bf16.mxu1 %v1881_v9  ;;  %4732 = vtanh.f32 %v1217_v62  ;;  %v1009_v1 = vpop.f32.mrb[16].mxu0 }
 0x135   : > { %v4711_v61 = vpop.eup %4710  ;;  %2337 = vmatpush1.bf16.msra.mxu1 %v1880_v63  ;;  %v1222_v5 = vpop.f32.mrb[16].mxu1  ;;  %4734 = vtanh.f32 %v1006_v12  ;;  %v1010_v0 = vadd.f32 %v1009_v1, %v6124_v28 }
 0x136   : > { %v4713_v26 = vpop.eup %4712  ;;  %v1223_v19 = vadd.f32 %v1222_v5, %v6100_v20  ;;  %v1011_v2 = vpop.f32.mrb[17].mxu0  ;;  %4736 = vtanh.f32 %v1219_v13 }
 0x137   : > { %v4715_v18 = vpop.eup %4714  ;;  %v1224_v7 = vpop.f32.mrb[17].mxu1  ;;  %v1012_v4 = vadd.f32 %v1011_v2, %v6124_v28  ;;  %4738 = vtanh.f32 %v1010_v0 }
 0x138   : > { %v4717_v35 = vpop.eup %4716  ;;  %v1225_v9 = vadd.f32 %v1224_v7, %v6100_v20  ;;  %v1013_v60 = vpop.f32.mrb[18].mxu0  ;;  %v1886_v11 = vpack.c.bf16 %v4715_v18, %v4707_v16  ;;  %4740 = vtanh.f32 %v1223_v19 }
 0x139   : > { %v1226_v63 = vpop.f32.mrb[18].mxu1  ;;  %v4719_v62 = vpop.eup %4718  ;;  %v1014_v52 = vadd.f32 %v1013_v60, %v6132_v29  ;;  %v1876_v1 = vpack.c.bf16 %v4717_v35, %v4709_v59  ;;  %4742 = vtanh.f32 %v1012_v4  ;;  %4130 = vmatmul.mubr.msk.bf16.gmra.mrb[124].mxu0 %vm874_vm0, %v6055_v6 }
 0x13a   : > { %v1015_v12 = vpop.f32.mrb[19].mxu0  ;;  %v1228_v55 = vpop.f32.mrb[19].mxu1  ;;  %v1227_v5 = vadd.f32 %v1226_v63, %v6107_v23  ;;  %v1887_v40 = vpack.c.bf16 %v4719_v62, %v4711_v61  ;;  %4744 = vtanh.f32 %v1225_v9  ;;  %1573 = vmatprep.mubr.bf16.mxu0 %v7518_v58 }
 0x13b   : > { %v4721_v30 = vpop.eup %4720  ;;  %v1016_v2 = vadd.f32 %v1015_v12, %v6132_v29  ;;  %v1229_v18 = vadd.f32 %v1228_v55, %v6107_v23  ;;  %4746 = vtanh.f32 %v1014_v52 }
 0x13c   : > { %v4723_v13 = vpop.eup %4722  ;;  %v1877_v7 = vpack.c.bf16 %v4721_v30, %v4713_v26  ;;  %2338 = vmatprep.subr.bf16.mxu1 %v1887_v40  ;;  %4748 = vtanh.f32 %v1227_v5  ;;  %v1019_v61 = vpop.f32.mrb[20].mxu0 }
 0x13d   : > { %v4725_v16 = vpop.eup %4724  ;;  %2339 = vmatpush1.bf16.msra.mxu1 %v1886_v11  ;;  %v1232_v0 = vpop.f32.mrb[20].mxu1  ;;  %4750 = vtanh.f32 %v1016_v2  ;;  %v1020_v6 = vadd.f32 %v1019_v61, %v6134_v31 }
 0x13e   : > { %v4727_v35 = vpop.eup %4726  ;;  %2600 = vmatprep.subr.bf16.mxu0 %v1877_v7  ;;  %v1233_v26 = vadd.f32 %v1232_v0, %v6109_v24  ;;  %v1021_v19 = vpop.f32.mrb[21].mxu0  ;;  %4752 = vtanh.f32 %v1229_v18 }
 0x13f   : > { %v4729_v59 = vpop.eup %4728  ;;  %2601 = vmatpush1.bf16.msra.mxu0 %v1876_v1  ;;  %v1234_v55 = vpop.f32.mrb[21].mxu1  ;;  %v1022_v4 = vadd.f32 %v1021_v19, %v6134_v31  ;;  %4754 = vtanh.f32 %v1020_v6 }
 0x140   : > { %v4731_v30 = vpop.eup %4730  ;;  %v1235_v52 = vadd.f32 %v1234_v55, %v6109_v24  ;;  %v1023_v11 = vpop.f32.mrb[22].mxu0  ;;  %4756 = vtanh.f32 %v1233_v26 }
 0x141   : > { %v4733_v40 = vpop.eup %4732  ;;  %v1236_v9 = vpop.f32.mrb[22].mxu1  ;;  %v1892_v60 = vpack.c.bf16 %v4731_v30, %v4723_v13  ;;  %v1024_v62 = vadd.f32 %v1023_v11, %v6141_v33  ;;  %4758 = vtanh.f32 %v1022_v4  ;;  %4131 = vmatmul.mubr.msk.bf16.gmra.mrb[128].mxu0 %vm874_vm0, %v6082_v14 }
 0x142   : > { %v4735_v63 = vpop.eup %4734  ;;  %v1025_v12 = vpop.f32.mrb[23].mxu0  ;;  %v1882_v5 = vpack.c.bf16 %v4733_v40, %v4725_v16  ;;  %v1237_v7 = vadd.f32 %v1236_v9, %v6117_v25  ;;  %4760 = vtanh.f32 %v1235_v52  ;;  %1583 = vmatprep.mubr.bf16.mxu0 %v7518_v58 }
 0x143   : > { %v1238_v1 = vpop.f32.mrb[23].mxu1  ;;  %v4737_v2 = vpop.eup %4736  ;;  %v1893_v61 = vpack.c.bf16 %v4735_v63, %v4727_v35  ;;  %v1026_v0 = vadd.f32 %v1025_v12, %v6141_v33  ;;  %4762 = vtanh.f32 %v1024_v62 }
 0x144   : > { %v4739_v18 = vpop.eup %4738  ;;  %v1883_v19 = vpack.c.bf16 %v4737_v2, %v4729_v59  ;;  %v1239_v30 = vadd.f32 %v1238_v1, %v6117_v25  ;;  %4764 = vtanh.f32 %v1237_v7  ;;  %v1029_v6 = vpop.f32.mrb[24].mxu0 }
 0x145   : > { %v4741_v13 = vpop.eup %4740  ;;  %2340 = vmatprep.subr.bf16.mxu1 %v1893_v61  ;;  %v1242_v26 = vpop.f32.mrb[24].mxu1  ;;  %4766 = vtanh.f32 %v1026_v0  ;;  %v1030_v14 = vadd.f32 %v1029_v6, %v6149_v34 }
 0x146   : > { %v4743_v16 = vpop.eup %4742  ;;  %2602 = vmatprep.subr.bf16.mxu0 %v1883_v19  ;;  %2341 = vmatpush1.bf16.msra.mxu1 %v1892_v60  ;;  %v1243_v55 = vadd.f32 %v1242_v26, %v6124_v28  ;;  %v1031_v40 = vpop.f32.mrb[25].mxu0  ;;  %4768 = vtanh.f32 %v1239_v30 }
 0x147   : > { %v4745_v35 = vpop.eup %4744  ;;  %2603 = vmatpush1.bf16.msra.mxu0 %v1882_v5  ;;  %v1244_v4 = vpop.f32.mrb[25].mxu1  ;;  %v1032_v11 = vadd.f32 %v1031_v40, %v6149_v34  ;;  %4770 = vtanh.f32 %v1030_v14 }
 0x148   : > { %v4747_v59 = vpop.eup %4746  ;;  %v1245_v9 = vadd.f32 %v1244_v4, %v6124_v28  ;;  %v1033_v60 = vpop.f32.mrb[26].mxu0  ;;  %4772 = vtanh.f32 %v1243_v55 }
 0x149   : > { %v4749_v52 = vpop.eup %4748  ;;  %v1246_v63 = vpop.f32.mrb[26].mxu1  ;;  %v1898_v62 = vpack.c.bf16 %v4747_v59, %v4739_v18  ;;  %v1034_v1 = vadd.f32 %v1033_v60, %v6151_v36  ;;  %4774 = vtanh.f32 %v1032_v11  ;;  %4132 = vmatmul.mubr.msk.bf16.gmra.mrb[132].mxu0 %vm874_vm0, %v6105_v21 }
 0x14a   : > { %v4751_v12 = vpop.eup %4750  ;;  %v1035_v5 = vpop.f32.mrb[27].mxu0  ;;  %v1888_v7 = vpack.c.bf16 %v4749_v52, %v4741_v13  ;;  %v1247_v0 = vadd.f32 %v1246_v63, %v6132_v29  ;;  %4776 = vtanh.f32 %v1245_v9  ;;  %1593 = vmatprep.mubr.bf16.mxu0 %v7518_v58 }
 0x14b   : > { %v1248_v2 = vpop.f32.mrb[27].mxu1  ;;  %v4753_v61 = vpop.eup %4752  ;;  %v1899_v19 = vpack.c.bf16 %v4751_v12, %v4743_v16  ;;  %v1036_v6 = vadd.f32 %v1035_v5, %v6151_v36  ;;  %4778 = vtanh.f32 %v1034_v1 }
 0x14c   : > { %v4755_v30 = vpop.eup %4754  ;;  %v1889_v26 = vpack.c.bf16 %v4753_v61, %v4745_v35  ;;  %v1249_v59 = vadd.f32 %v1248_v2, %v6132_v29  ;;  %4780 = vtanh.f32 %v1247_v0  ;;  %v1039_v14 = vpop.f32.mrb[28].mxu0 }
 0x14d   : > { %v4757_v18 = vpop.eup %4756  ;;  %2342 = vmatprep.subr.bf16.mxu1 %v1899_v19  ;;  %v1252_v55 = vpop.f32.mrb[28].mxu1  ;;  %4782 = vtanh.f32 %v1036_v6  ;;  %v1040_v21 = vadd.f32 %v1039_v14, %v6153_v37 }
 0x14e   : > { %v4759_v13 = vpop.eup %4758  ;;  %2604 = vmatprep.subr.bf16.mxu0 %v1889_v26  ;;  %2343 = vmatpush1.bf16.msra.mxu1 %v1898_v62  ;;  %v1253_v40 = vadd.f32 %v1252_v55, %v6134_v31  ;;  %v1041_v4 = vpop.f32.mrb[29].mxu0  ;;  %4784 = vtanh.f32 %v1249_v59 }
 0x14f   : > { %v4761_v16 = vpop.eup %4760  ;;  %2605 = vmatpush1.bf16.msra.mxu0 %v1888_v7  ;;  %v1254_v52 = vpop.f32.mrb[29].mxu1  ;;  %v1042_v9 = vadd.f32 %v1041_v4, %v6153_v37  ;;  %4786 = vtanh.f32 %v1040_v21 }
 0x150   : > { %v4763_v35 = vpop.eup %4762  ;;  %v1255_v60 = vadd.f32 %v1254_v52, %v6134_v31  ;;  %v1043_v63 = vpop.f32.mrb[30].mxu0  ;;  %4788 = vtanh.f32 %v1253_v40 }
 0x151   : > { %v4765_v11 = vpop.eup %4764  ;;  %v1256_v62 = vpop.f32.mrb[30].mxu1  ;;  %v1904_v12 = vpack.c.bf16 %v4763_v35, %v4755_v30  ;;  %v1044_v5 = vadd.f32 %v1043_v63, %v6161_v38  ;;  %4790 = vtanh.f32 %v1042_v9  ;;  %4133 = vmatmul.mubr.msk.bf16.gmra.mrb[136].mxu0 %vm874_vm0, %v6122_v27 }
 0x152   : > { %v4767_v1 = vpop.eup %4766  ;;  %v1045_v2 = vpop.f32.mrb[31].mxu0  ;;  %v1894_v61 = vpack.c.bf16 %v4765_v11, %v4757_v18  ;;  %v1257_v19 = vadd.f32 %v1256_v62, %v6141_v33  ;;  %4792 = vtanh.f32 %v1255_v60  ;;  %1603 = vmatprep.mubr.bf16.mxu0 %v7518_v58 }
 0x153   : > { %v1258_v7 = vpop.f32.mrb[31].mxu1  ;;  %v4769_v0 = vpop.eup %4768  ;;  %v1905_v6 = vpack.c.bf16 %v4767_v1, %v4759_v13  ;;  %v1046_v59 = vadd.f32 %v1045_v2, %v6161_v38  ;;  %4794 = vtanh.f32 %v1044_v5 }
 0x154   : > { %v4771_v26 = vpop.eup %4770  ;;  %v1895_v14 = vpack.c.bf16 %v4769_v0, %v4761_v16  ;;  %v1259_v55 = vadd.f32 %v1258_v7, %v6141_v33  ;;  %4796 = vtanh.f32 %v1257_v19  ;;  %v1049_v35 = vpop.f32.mrb[32].mxu0 }
 0x155   : > { %v4773_v30 = vpop.eup %4772  ;;  %2344 = vmatprep.subr.bf16.mxu1 %v1905_v6  ;;  %v1262_v21 = vpop.f32.mrb[32].mxu1  ;;  %4798 = vtanh.f32 %v1046_v59  ;;  %v1050_v27 = vadd.f32 %v1049_v35, %v6163_v39 }
 0x156   : > { %v4775_v18 = vpop.eup %4774  ;;  %2606 = vmatprep.subr.bf16.mxu0 %v1895_v14  ;;  %2345 = vmatpush1.bf16.msra.mxu1 %v1904_v12  ;;  %v1263_v40 = vadd.f32 %v1262_v21, %v6149_v34  ;;  %v1051_v4 = vpop.f32.mrb[33].mxu0  ;;  %4800 = vtanh.f32 %v1259_v55 }
 0x157   : > { %v4777_v13 = vpop.eup %4776  ;;  %2607 = vmatpush1.bf16.msra.mxu0 %v1894_v61  ;;  %v1264_v52 = vpop.f32.mrb[33].mxu1  ;;  %v1052_v9 = vadd.f32 %v1051_v4, %v6163_v39  ;;  %4802 = vtanh.f32 %v1050_v27 }
 0x158   : > { %v4779_v16 = vpop.eup %4778  ;;  %v1265_v60 = vadd.f32 %v1264_v52, %v6149_v34  ;;  %v1053_v63 = vpop.f32.mrb[34].mxu0  ;;  %4804 = vtanh.f32 %v1263_v40 }
 0x159   : > { %v4781_v11 = vpop.eup %4780  ;;  %v1266_v62 = vpop.f32.mrb[34].mxu1  ;;  %v1910_v12 = vpack.c.bf16 %v4779_v16, %v4771_v26  ;;  %v1054_v5 = vadd.f32 %v1053_v63, %v6171_v41  ;;  %4806 = vtanh.f32 %v1052_v9  ;;  %4134 = vmatmul.mubr.msk.bf16.gmra.mrb[140].mxu0 %vm874_vm0, %v6139_v32 }
 0x15a   : > { %v4783_v1 = vpop.eup %4782  ;;  %v1055_v2 = vpop.f32.mrb[35].mxu0  ;;  %v1900_v61 = vpack.c.bf16 %v4781_v11, %v4773_v30  ;;  %v1267_v19 = vadd.f32 %v1266_v62, %v6151_v36  ;;  %4808 = vtanh.f32 %v1265_v60  ;;  %1613 = vmatprep.mubr.bf16.mxu0 %v7518_v58 }
 0x15b   : > { %v1268_v7 = vpop.f32.mrb[35].mxu1  ;;  %v4785_v0 = vpop.eup %4784  ;;  %v1911_v6 = vpack.c.bf16 %v4783_v1, %v4775_v18  ;;  %v1056_v14 = vadd.f32 %v1055_v2, %v6171_v41  ;;  %4810 = vtanh.f32 %v1054_v5 }
 0x15c   : > { %v4787_v59 = vpop.eup %4786  ;;  %v1901_v55 = vpack.c.bf16 %v4785_v0, %v4777_v13  ;;  %v1269_v35 = vadd.f32 %v1268_v7, %v6151_v36  ;;  %4812 = vtanh.f32 %v1267_v19  ;;  %v1059_v21 = vpop.f32.mrb[36].mxu0 }
 0x15d   : > { %v4789_v26 = vpop.eup %4788  ;;  %2346 = vmatprep.subr.bf16.mxu1 %v1911_v6  ;;  %v1272_v16 = vpop.f32.mrb[36].mxu1  ;;  %4814 = vtanh.f32 %v1056_v14  ;;  %v1060_v32 = vadd.f32 %v1059_v21, %v6173_v46 }
 0x15e   : > { %v4791_v30 = vpop.eup %4790  ;;  %2608 = vmatprep.subr.bf16.mxu0 %v1901_v55  ;;  %2347 = vmatpush1.bf16.msra.mxu1 %v1910_v12  ;;  %v1273_v27 = vadd.f32 %v1272_v16, %v6153_v37  ;;  %v1061_v40 = vpop.f32.mrb[37].mxu0  ;;  %4816 = vtanh.f32 %v1269_v35 }
 0x15f   : > { %v4793_v18 = vpop.eup %4792  ;;  %2609 = vmatpush1.bf16.msra.mxu0 %v1900_v61  ;;  %v1274_v4 = vpop.f32.mrb[37].mxu1  ;;  %v1062_v11 = vadd.f32 %v1061_v40, %v6173_v46  ;;  %4818 = vtanh.f32 %v1060_v32 }
 0x160   : > { %v4795_v13 = vpop.eup %4794  ;;  %v1275_v9 = vadd.f32 %v1274_v4, %v6153_v37  ;;  %v1063_v60 = vpop.f32.mrb[38].mxu0  ;;  %4820 = vtanh.f32 %v1273_v27 }
 0x161   : > { %v4797_v52 = vpop.eup %4796  ;;  %v1276_v63 = vpop.f32.mrb[38].mxu1  ;;  %v1916_v62 = vpack.c.bf16 %v4795_v13, %v4787_v59  ;;  %v1064_v1 = vadd.f32 %v1063_v60, %v6175_v42  ;;  %4822 = vtanh.f32 %v1062_v11  ;;  %v5514_v59 = vld [vmem:[%s7462_s1 + $0x90] sm:$0xff]  }
 0x162   : > { %v4799_v12 = vpop.eup %4798  ;;  %v1065_v5 = vpop.f32.mrb[39].mxu0  ;;  %v1906_v7 = vpack.c.bf16 %v4797_v52, %v4789_v26  ;;  %v1277_v0 = vadd.f32 %v1276_v63, %v6161_v38  ;;  %4135 = vmatmul.mubr.msk.bf16.gmra.mrb[144].mxu0 %vm874_vm0, %v5514_v59  ;;  %4824 = vtanh.f32 %v1275_v9 }
 0x163   : > { %v1278_v2 = vpop.f32.mrb[39].mxu1  ;;  %v4801_v61 = vpop.eup %4800  ;;  %v1917_v19 = vpack.c.bf16 %v4799_v12, %v4791_v30  ;;  %v1066_v14 = vadd.f32 %v1065_v5, %v6175_v42  ;;  %1623 = vmatprep.mubr.bf16.mxu0 %v7518_v58  ;;  %4826 = vtanh.f32 %v1064_v1 }
 0x164   : > { %v4803_v6 = vpop.eup %4802  ;;  %v1907_v55 = vpack.c.bf16 %v4801_v61, %v4793_v18  ;;  %v1279_v26 = vadd.f32 %v1278_v2, %v6161_v38  ;;  %4828 = vtanh.f32 %v1277_v0  ;;  %v1069_v18 = vpop.f32.mrb[40].mxu0 }
 0x165   : > { %v4805_v35 = vpop.eup %4804  ;;  %2348 = vmatprep.subr.bf16.mxu1 %v1917_v19  ;;  %v1282_v16 = vpop.f32.mrb[40].mxu1  ;;  %4830 = vtanh.f32 %v1066_v14  ;;  %v1070_v32 = vadd.f32 %v1069_v18, %v6183_v56 }
 0x166   : > { %v4807_v21 = vpop.eup %4806  ;;  %2610 = vmatprep.subr.bf16.mxu0 %v1907_v55  ;;  %2349 = vmatpush1.bf16.msra.mxu1 %v1916_v62  ;;  %v1283_v27 = vadd.f32 %v1282_v16, %v6163_v39  ;;  %v1071_v40 = vpop.f32.mrb[41].mxu0  ;;  %4832 = vtanh.f32 %v1279_v26 }
 0x167   : > { %v4809_v30 = vpop.eup %4808  ;;  %2611 = vmatpush1.bf16.msra.mxu0 %v1906_v7  ;;  %v1284_v4 = vpop.f32.mrb[41].mxu1  ;;  %v1072_v11 = vadd.f32 %v1071_v40, %v6183_v56  ;;  %4834 = vtanh.f32 %v1070_v32 }
 0x168   : > { %v4811_v13 = vpop.eup %4810  ;;  %v1285_v9 = vadd.f32 %v1284_v4, %v6163_v39  ;;  %v1073_v60 = vpop.f32.mrb[42].mxu0  ;;  %4836 = vtanh.f32 %v1283_v27 }
 0x169   : > { %v4813_v52 = vpop.eup %4812  ;;  %v1286_v63 = vpop.f32.mrb[42].mxu1  ;;  %v1922_v62 = vpack.c.bf16 %v4811_v13, %v4803_v6  ;;  %v1074_v1 = vadd.f32 %v1073_v60, %v6185_v43  ;;  %4838 = vtanh.f32 %v1072_v11  ;;  %v5515_v6 = vld [vmem:[%s7462_s1 + $0x98] sm:$0xff]  }
 0x16a   : > { %v4815_v12 = vpop.eup %4814  ;;  %v1075_v5 = vpop.f32.mrb[43].mxu0  ;;  %v1912_v7 = vpack.c.bf16 %v4813_v52, %v4805_v35  ;;  %v1287_v0 = vadd.f32 %v1286_v63, %v6171_v41  ;;  %4136 = vmatmul.mubr.msk.bf16.gmra.mrb[148].mxu0 %vm874_vm0, %v5515_v6  ;;  %4840 = vtanh.f32 %v1285_v9 }
 0x16b   : > { %v1288_v2 = vpop.f32.mrb[43].mxu1  ;;  %v4817_v61 = vpop.eup %4816  ;;  %v1923_v19 = vpack.c.bf16 %v4815_v12, %v4807_v21  ;;  %v1076_v55 = vadd.f32 %v1075_v5, %v6185_v43  ;;  %2632 = vmatprep.mubr.bf16.mxu0 %v6272_v45  ;;  %4842 = vtanh.f32 %v1074_v1 }
 0x16c   : > { %v4819_v14 = vpop.eup %4818  ;;  %v1913_v59 = vpack.c.bf16 %v4817_v61, %v4809_v30  ;;  %v1289_v35 = vadd.f32 %v1288_v2, %v6171_v41  ;;  %4844 = vtanh.f32 %v1287_v0  ;;  %v1079_v30 = vpop.f32.mrb[44].mxu0 }
 0x16d   : > { %v4821_v26 = vpop.eup %4820  ;;  %2350 = vmatprep.subr.bf16.mxu1 %v1923_v19  ;;  %v1292_v16 = vpop.f32.mrb[44].mxu1  ;;  %4846 = vtanh.f32 %v1076_v55  ;;  %v1080_v32 = vadd.f32 %v1079_v30, %v6187_v44 }
 0x16e   : > { %v4823_v18 = vpop.eup %4822  ;;  %2612 = vmatprep.subr.bf16.mxu0 %v1913_v59  ;;  %2351 = vmatpush1.bf16.msra.mxu1 %v1922_v62  ;;  %v1293_v27 = vadd.f32 %v1292_v16, %v6173_v46  ;;  %v1081_v40 = vpop.f32.mrb[45].mxu0  ;;  %4848 = vtanh.f32 %v1289_v35 }
 0x16f   : > { %v4825_v21 = vpop.eup %4824  ;;  %2613 = vmatpush1.bf16.msra.mxu0 %v1912_v7  ;;  %v1294_v4 = vpop.f32.mrb[45].mxu1  ;;  %v1082_v45 = vadd.f32 %v1081_v40, %v6187_v44  ;;  %4850 = vtanh.f32 %v1080_v32 }
 0x170   : > { %v4827_v13 = vpop.eup %4826  ;;  %v1295_v11 = vadd.f32 %v1294_v4, %v6173_v46  ;;  %v1083_v9 = vpop.f32.mrb[46].mxu0  ;;  %4852 = vtanh.f32 %v1293_v27 }
 0x171   : > { %v4829_v52 = vpop.eup %4828  ;;  %v1296_v60 = vpop.f32.mrb[46].mxu1  ;;  %v1928_v63 = vpack.c.bf16 %v4827_v13, %v4819_v14  ;;  %v1084_v12 = vadd.f32 %v1083_v9, %v6194_v47  ;;  %4854 = vtanh.f32 %v1082_v45 }
 0x172   : > { %v4831_v62 = vpop.eup %4830  ;;  %v1085_v1 = vpop.f32.mrb[47].mxu0  ;;  %v1918_v2 = vpack.c.bf16 %v4829_v52, %v4821_v26  ;;  %v1297_v61 = vadd.f32 %v1296_v60, %v6175_v42  ;;  %4856 = vtanh.f32 %v1295_v11 }
 0x173   : > { %v1298_v5 = vpop.f32.mrb[47].mxu1  ;;  %v4833_v7 = vpop.eup %4832  ;;  %v1929_v0 = vpack.c.bf16 %v4831_v62, %v4823_v18  ;;  %v1086_v55 = vadd.f32 %v1085_v1, %v6194_v47  ;;  %4858 = vtanh.f32 %v1084_v12 }
 0x174   : > { %v4835_v19 = vpop.eup %4834  ;;  %v1919_v59 = vpack.c.bf16 %v4833_v7, %v4825_v21  ;;  %v1299_v14 = vadd.f32 %v1298_v5, %v6175_v42  ;;  %4860 = vtanh.f32 %v1297_v61  ;;  %v1089_v30 = vpop.f32.mrb[48].mxu0 }
 0x175   : > { %v4837_v6 = vpop.eup %4836  ;;  %2352 = vmatprep.subr.bf16.mxu1 %v1929_v0  ;;  %v1302_v16 = vpop.f32.mrb[48].mxu1  ;;  %4862 = vtanh.f32 %v1086_v55  ;;  %v1090_v13 = vadd.f32 %v1089_v30, %v6196_v3 }
 0x176   : > { %v4839_v35 = vpop.eup %4838  ;;  %2614 = vmatprep.subr.bf16.mxu0 %v1919_v59  ;;  %2353 = vmatpush1.bf16.msra.mxu1 %v1928_v63  ;;  %v1303_v21 = vadd.f32 %v1302_v16, %v6183_v56  ;;  %v1091_v32 = vpop.f32.mrb[49].mxu0  ;;  %4864 = vtanh.f32 %v1299_v14 }
 0x177   : > { %v4841_v26 = vpop.eup %4840  ;;  %2615 = vmatpush1.bf16.msra.mxu0 %v1918_v2  ;;  %v1304_v27 = vpop.f32.mrb[49].mxu1  ;;  %v1092_v4 = vadd.f32 %v1091_v32, %v6196_v3  ;;  %4866 = vtanh.f32 %v1090_v13 }
 0x178   : > { %v4843_v18 = vpop.eup %4842  ;;  %v1305_v52 = vadd.f32 %v1304_v27, %v6183_v56  ;;  %v1093_v45 = vpop.f32.mrb[50].mxu0  ;;  %4868 = vtanh.f32 %v1303_v21 }
 0x179   : > { %v4845_v40 = vpop.eup %4844  ;;  %v1306_v11 = vpop.f32.mrb[50].mxu1  ;;  %v1934_v9 = vpack.c.bf16 %v4843_v18, %v4835_v19  ;;  %v1094_v63 = vadd.f32 %v1093_v45, %v6201_v48  ;;  %4870 = vtanh.f32 %v1092_v4 }
 0x17a   : > { %v4847_v60 = vpop.eup %4846  ;;  %v1095_v62 = vpop.f32.mrb[51].mxu0  ;;  %v1924_v1 = vpack.c.bf16 %v4845_v40, %v4837_v6  ;;  %v1307_v2 = vadd.f32 %v1306_v11, %v6185_v43  ;;  %4872 = vtanh.f32 %v1305_v52 }
 0x17b   : > { %v1308_v12 = vpop.f32.mrb[51].mxu1  ;;  %v4849_v5 = vpop.eup %4848  ;;  %v1935_v7 = vpack.c.bf16 %v4847_v60, %v4839_v35  ;;  %v1096_v0 = vadd.f32 %v1095_v62, %v6201_v48  ;;  %4874 = vtanh.f32 %v1094_v63 }
 0x17c   : > { %v4851_v61 = vpop.eup %4850  ;;  %v1925_v55 = vpack.c.bf16 %v4849_v5, %v4841_v26  ;;  %v1309_v19 = vadd.f32 %v1308_v12, %v6185_v43  ;;  %4876 = vtanh.f32 %v1307_v2  ;;  %v1099_v30 = vpop.f32.mrb[52].mxu0 }
 0x17d   : > { %v4853_v59 = vpop.eup %4852  ;;  %2354 = vmatprep.subr.bf16.mxu1 %v1935_v7  ;;  %v1312_v16 = vpop.f32.mrb[52].mxu1  ;;  %4878 = vtanh.f32 %v1096_v0  ;;  %v1100_v18 = vadd.f32 %v1099_v30, %v6203_v49 }
 0x17e   : > { %v4855_v14 = vpop.eup %4854  ;;  %2616 = vmatprep.subr.bf16.mxu0 %v1925_v55  ;;  %2355 = vmatpush1.bf16.msra.mxu1 %v1934_v9  ;;  %v1313_v26 = vadd.f32 %v1312_v16, %v6187_v44  ;;  %v1101_v13 = vpop.f32.mrb[53].mxu0  ;;  %4880 = vtanh.f32 %v1309_v19 }
 0x17f   : > { %v4857_v6 = vpop.eup %4856  ;;  %2617 = vmatpush1.bf16.msra.mxu0 %v1924_v1  ;;  %v1314_v21 = vpop.f32.mrb[53].mxu1  ;;  %v1102_v27 = vadd.f32 %v1101_v13, %v6203_v49  ;;  %4882 = vtanh.f32 %v1100_v18 }
 0x180   : > { %v4859_v35 = vpop.eup %4858  ;;  %v1315_v40 = vadd.f32 %v1314_v21, %v6187_v44  ;;  %v1103_v4 = vpop.f32.mrb[54].mxu0  ;;  %4884 = vtanh.f32 %v1313_v26 }
 0x181   : > { %v4861_v32 = vpop.eup %4860  ;;  %v1316_v52 = vpop.f32.mrb[54].mxu1  ;;  %v1940_v45 = vpack.c.bf16 %v4859_v35, %v4851_v61  ;;  %v1104_v9 = vadd.f32 %v1103_v4, %v6205_v50  ;;  %4886 = vtanh.f32 %v1102_v27 }
 0x182   : > { %v4863_v11 = vpop.eup %4862  ;;  %v1105_v60 = vpop.f32.mrb[55].mxu0  ;;  %v1930_v62 = vpack.c.bf16 %v4861_v32, %v4853_v59  ;;  %v1317_v1 = vadd.f32 %v1316_v52, %v6194_v47  ;;  %4888 = vtanh.f32 %v1315_v40 }
 0x183   : > { %v1318_v63 = vpop.f32.mrb[55].mxu1  ;;  %v4865_v12 = vpop.eup %4864  ;;  %v1941_v5 = vpack.c.bf16 %v4863_v11, %v4855_v14  ;;  %v1106_v7 = vadd.f32 %v1105_v60, %v6205_v50  ;;  %4890 = vtanh.f32 %v1104_v9 }
 0x184   : > { %v4867_v2 = vpop.eup %4866  ;;  %v1931_v0 = vpack.c.bf16 %v4865_v12, %v4857_v6  ;;  %v1319_v61 = vadd.f32 %v1318_v63, %v6194_v47  ;;  %4892 = vtanh.f32 %v1317_v1  ;;  %v1109_v30 = vpop.f32.mrb[56].mxu0 }
 0x185   : > { %v4869_v55 = vpop.eup %4868  ;;  %2356 = vmatprep.subr.bf16.mxu1 %v1941_v5  ;;  %v1322_v16 = vpop.f32.mrb[56].mxu1  ;;  %4894 = vtanh.f32 %v1106_v7  ;;  %v1110_v35 = vadd.f32 %v1109_v30, %v6210_v57 }
 0x186   : > { %v4871_v19 = vpop.eup %4870  ;;  %2618 = vmatprep.subr.bf16.mxu0 %v1931_v0  ;;  %2357 = vmatpush1.bf16.msra.mxu1 %v1940_v45  ;;  %v1323_v6 = vadd.f32 %v1322_v16, %v6196_v3  ;;  %v1111_v18 = vpop.f32.mrb[57].mxu0  ;;  %4896 = vtanh.f32 %v1319_v61 }
 0x187   : > { %v4873_v59 = vpop.eup %4872  ;;  %2619 = vmatpush1.bf16.msra.mxu0 %v1930_v62  ;;  %v1324_v26 = vpop.f32.mrb[57].mxu1  ;;  %v1112_v21 = vadd.f32 %v1111_v18, %v6210_v57  ;;  %4898 = vtanh.f32 %v1110_v35 }
 0x188   : > { %v4875_v14 = vpop.eup %4874  ;;  %v1325_v32 = vadd.f32 %v1324_v26, %v6196_v3  ;;  %v1113_v27 = vpop.f32.mrb[58].mxu0  ;;  %4900 = vtanh.f32 %v1323_v6 }
 0x189   : > { %v4877_v13 = vpop.eup %4876  ;;  %v1326_v40 = vpop.f32.mrb[58].mxu1  ;;  %v1946_v4 = vpack.c.bf16 %v4875_v14, %v4867_v2  ;;  %v1114_v45 = vadd.f32 %v1113_v27, %v6212_v8  ;;  %4902 = vtanh.f32 %v1112_v21 }
 0x18a   : > { %v4879_v52 = vpop.eup %4878  ;;  %v1115_v11 = vpop.f32.mrb[59].mxu0  ;;  %v1936_v60 = vpack.c.bf16 %v4877_v13, %v4869_v55  ;;  %v1327_v62 = vadd.f32 %v1326_v40, %v6201_v48  ;;  %4904 = vtanh.f32 %v1325_v32 }
 0x18b   : > { %v1328_v9 = vpop.f32.mrb[59].mxu1  ;;  %v4881_v63 = vpop.eup %4880  ;;  %v1947_v12 = vpack.c.bf16 %v4879_v52, %v4871_v19  ;;  %v1116_v5 = vadd.f32 %v1115_v11, %v6212_v8  ;;  %4906 = vtanh.f32 %v1114_v45 }
 0x18c   : > { %v4883_v1 = vpop.eup %4882  ;;  %v1937_v7 = vpack.c.bf16 %v4881_v63, %v4873_v59  ;;  %v1329_v2 = vadd.f32 %v1328_v9, %v6201_v48  ;;  %4908 = vtanh.f32 %v1327_v62  ;;  %v1119_v30 = vpop.f32.mrb[60].mxu0 }
 0x18d   : > { %v4885_v0 = vpop.eup %4884  ;;  %2358 = vmatprep.subr.bf16.mxu1 %v1947_v12  ;;  %v1332_v16 = vpop.f32.mrb[60].mxu1  ;;  %4910 = vtanh.f32 %v1116_v5  ;;  %v1120_v14 = vadd.f32 %v1119_v30, %v6214_v51 }
 0x18e   : > { %v4887_v61 = vpop.eup %4886  ;;  %2620 = vmatprep.subr.bf16.mxu0 %v1937_v7  ;;  %2359 = vmatpush1.bf16.msra.mxu1 %v1946_v4  ;;  %v1333_v59 = vadd.f32 %v1332_v16, %v6203_v49  ;;  %v1121_v35 = vpop.f32.mrb[61].mxu0  ;;  %4912 = vtanh.f32 %v1329_v2 }
 0x18f   : > { %v4889_v55 = vpop.eup %4888  ;;  %2621 = vmatpush1.bf16.msra.mxu0 %v1936_v60  ;;  %v1334_v6 = vpop.f32.mrb[61].mxu1  ;;  %v1122_v26 = vadd.f32 %v1121_v35, %v6214_v51  ;;  %4914 = vtanh.f32 %v1120_v14 }
 0x190   : > { %v4891_v19 = vpop.eup %4890  ;;  %v1335_v13 = vadd.f32 %v1334_v6, %v6203_v49  ;;  %v1123_v21 = vpop.f32.mrb[62].mxu0  ;;  %4916 = vtanh.f32 %v1333_v59 }
 0x191   : > { %v4893_v18 = vpop.eup %4892  ;;  %v1336_v32 = vpop.f32.mrb[62].mxu1  ;;  %v1952_v27 = vpack.c.bf16 %v4891_v19, %v4883_v1  ;;  %v1124_v4 = vadd.f32 %v1123_v21, %v6219_v15  ;;  %4918 = vtanh.f32 %v1122_v26 }
 0x192   : > { %v4895_v40 = vpop.eup %4894  ;;  %v1125_v52 = vpop.f32.mrb[63].mxu0  ;;  %v1942_v11 = vpack.c.bf16 %v4893_v18, %v4885_v0  ;;  %v1337_v60 = vadd.f32 %v1336_v32, %v6205_v50  ;;  %4920 = vtanh.f32 %v1335_v13 }
 0x193   : > { %v1338_v45 = vpop.f32.mrb[63].mxu1  ;;  %v4897_v9 = vpop.eup %4896  ;;  %v1953_v63 = vpack.c.bf16 %v4895_v40, %v4887_v61  ;;  %v1126_v12 = vadd.f32 %v1125_v52, %v6219_v15  ;;  %4922 = vtanh.f32 %v1124_v4 }
 0x194   : > { %v4899_v62 = vpop.eup %4898  ;;  %v1943_v5 = vpack.c.bf16 %v4897_v9, %v4889_v55  ;;  %v1339_v1 = vadd.f32 %v1338_v45, %v6205_v50  ;;  %4924 = vtanh.f32 %v1337_v60  ;;  %v1129_v30 = vpop.f32.mrb[64].mxu0 }
 0x195   : > { %v4901_v7 = vpop.eup %4900  ;;  %2360 = vmatprep.subr.bf16.mxu1 %v1953_v63  ;;  %v1342_v16 = vpop.f32.mrb[64].mxu1  ;;  %4926 = vtanh.f32 %v1126_v12  ;;  %v1130_v19 = vadd.f32 %v1129_v30, %v6221_v53 }
 0x196   : > { %v4903_v2 = vpop.eup %4902  ;;  %2622 = vmatprep.subr.bf16.mxu0 %v1943_v5  ;;  %2361 = vmatpush1.bf16.msra.mxu1 %v1952_v27  ;;  %v1343_v55 = vadd.f32 %v1342_v16, %v6210_v57  ;;  %v1131_v14 = vpop.f32.mrb[65].mxu0  ;;  %4928 = vtanh.f32 %v1339_v1 }
 0x197   : > { %v4905_v0 = vpop.eup %4904  ;;  %2623 = vmatpush1.bf16.msra.mxu0 %v1942_v11  ;;  %v1344_v59 = vpop.f32.mrb[65].mxu1  ;;  %v1132_v6 = vadd.f32 %v1131_v14, %v6221_v53  ;;  %4930 = vtanh.f32 %v1130_v19 }
 0x198   : > { %v4907_v61 = vpop.eup %4906  ;;  %v1345_v18 = vadd.f32 %v1344_v59, %v6210_v57  ;;  %v1133_v26 = vpop.f32.mrb[66].mxu0  ;;  %4932 = vtanh.f32 %v1343_v55 }
 0x199   : > { %v4909_v35 = vpop.eup %4908  ;;  %v1346_v13 = vpop.f32.mrb[66].mxu1  ;;  %v1958_v21 = vpack.c.bf16 %v4907_v61, %v4899_v62  ;;  %v1134_v27 = vadd.f32 %v1133_v26, %v6226_v22  ;;  %4934 = vtanh.f32 %v1132_v6 }
 0x19a   : > { %v4911_v32 = vpop.eup %4910  ;;  %v1135_v40 = vpop.f32.mrb[67].mxu0  ;;  %v1948_v52 = vpack.c.bf16 %v4909_v35, %v4901_v7  ;;  %v1347_v11 = vadd.f32 %v1346_v13, %v6212_v8  ;;  %4936 = vtanh.f32 %v1345_v18 }
 0x19b   : > { %v1348_v4 = vpop.f32.mrb[67].mxu1  ;;  %v4913_v45 = vpop.eup %4912  ;;  %v1959_v9 = vpack.c.bf16 %v4911_v32, %v4903_v2  ;;  %v1136_v63 = vadd.f32 %v1135_v40, %v6226_v22  ;;  %4938 = vtanh.f32 %v1134_v27 }
 0x19c   : > { %v4915_v60 = vpop.eup %4914  ;;  %v1949_v12 = vpack.c.bf16 %v4913_v45, %v4905_v0  ;;  %v1349_v62 = vadd.f32 %v1348_v4, %v6212_v8  ;;  %4940 = vtanh.f32 %v1347_v11  ;;  %v1139_v30 = vpop.f32.mrb[68].mxu0 }
 0x19d   : > { %v4917_v5 = vpop.eup %4916  ;;  %2362 = vmatprep.subr.bf16.mxu1 %v1959_v9  ;;  %v1352_v16 = vpop.f32.mrb[68].mxu1  ;;  %4942 = vtanh.f32 %v1136_v63  ;;  %v1140_v61 = vadd.f32 %v1139_v30, %v6228_v54  ;;  %v6457_v30 = vld [vmem:[%s7464_s3] ss:$12 sps:$4 sm:$0xff]  }
 0x19e   : > { %v4919_v1 = vpop.eup %4918  ;;  %2624 = vmatprep.subr.bf16.mxu0 %v1949_v12  ;;  %2363 = vmatpush1.bf16.msra.mxu1 %v1958_v21  ;;  %v1353_v0 = vadd.f32 %v1352_v16, %v6214_v51  ;;  %v1141_v19 = vpop.f32.mrb[69].mxu0  ;;  %4944 = vtanh.f32 %v1349_v62  ;;  %v7522_v21 = vld [vmem:[#allocation5_spill] sm:$0xff] }
 0x19f   : > { %v4921_v7 = vpop.eup %4920  ;;  %2625 = vmatpush1.bf16.msra.mxu0 %v1948_v52  ;;  %v1354_v55 = vpop.f32.mrb[69].mxu1  ;;  %v1142_v59 = vadd.f32 %v1141_v19, %v6228_v54  ;;  %4946 = vtanh.f32 %v1140_v61  ;;  %v7523_v19 = vld [vmem:[#allocation3_spill] sm:$0xff] }
 0x1a0   : > { %v4923_v2 = vpop.eup %4922  ;;  %v1355_v35 = vadd.f32 %v1354_v55, %v6214_v51  ;;  %v1143_v6 = vpop.f32.mrb[70].mxu0  ;;  %4948 = vtanh.f32 %v1353_v0 }
 0x1a1   : > { %v4925_v14 = vpop.eup %4924  ;;  %v1356_v18 = vpop.f32.mrb[70].mxu1  ;;  %v1964_v26 = vpack.c.bf16 %v4923_v2, %v4915_v60  ;;  %v1144_v32 = vadd.f32 %v1143_v6, %v7522_v21  ;;  %4950 = vtanh.f32 %v1142_v59 }
 0x1a2   : > { %v4927_v13 = vpop.eup %4926  ;;  %v1145_v27 = vpop.f32.mrb[71].mxu0  ;;  %v1954_v4 = vpack.c.bf16 %v4925_v14, %v4917_v5  ;;  %v1357_v45 = vadd.f32 %v1356_v18, %v6219_v15  ;;  %4952 = vtanh.f32 %v1355_v35 }
 0x1a3   : > { %v1358_v40 = vpop.f32.mrb[71].mxu1  ;;  %v4929_v52 = vpop.eup %4928  ;;  %v1965_v11 = vpack.c.bf16 %v4927_v13, %v4919_v1  ;;  %v1146_v63 = vadd.f32 %v1145_v27, %v7522_v21  ;;  %4954 = vtanh.f32 %v1144_v32  ;;  %v6462_v1 = vld [vmem:[%s7464_s3 + $0x1c] ss:$12 sps:$4 sm:$0xff]  }
 0x1a4   : > { %v4931_v9 = vpop.eup %4930  ;;  %v1955_v12 = vpack.c.bf16 %v4929_v52, %v4921_v7  ;;  %v1359_v60 = vadd.f32 %v1358_v40, %v6219_v15  ;;  %4956 = vtanh.f32 %v1357_v45  ;;  %v1362_v16 = vpop.f32.mrb[72].mxu1 }
 0x1a5   : > { %v4933_v62 = vpop.eup %4932  ;;  %2364 = vmatprep.subr.bf16.mxu1 %v1965_v11  ;;  %v1435_v2 = vpop.f32.mrb[72].mxu0  ;;  %4958 = vtanh.f32 %v1146_v63  ;;  %v1363_v0 = vadd.f32 %v1362_v16, %v6221_v53  ;;  %v7524_v63 = vld [vmem:[#allocation4_spill] sm:$0xff] }
 0x1a6   : > { %v4935_v5 = vpop.eup %4934  ;;  %2626 = vmatprep.subr.bf16.mxu0 %v1955_v12  ;;  %2365 = vmatpush1.bf16.msra.mxu1 %v1964_v26  ;;  %v1436_v55 = vadd.f32 %v1435_v2, %v7523_v19  ;;  %v1364_v14 = vpop.f32.mrb[73].mxu1  ;;  %4960 = vtanh.f32 %v1359_v60 }
 0x1a7   : > { %v4937_v7 = vpop.eup %4936  ;;  %2627 = vmatpush1.bf16.msra.mxu0 %v1954_v4  ;;  %v1437_v59 = vpop.f32.mrb[73].mxu0  ;;  %v1365_v6 = vadd.f32 %v1364_v14, %v6221_v53  ;;  %4962 = vtanh.f32 %v1363_v0 }
 0x1a8   : > { %v4939_v61 = vpop.eup %4938  ;;  %v1438_v18 = vadd.f32 %v1437_v59, %v7523_v19  ;;  %v1366_v26 = vpop.f32.mrb[74].mxu1  ;;  %4964 = vtanh.f32 %v1436_v55 }
 0x1a9   : > { %v4941_v35 = vpop.eup %4940  ;;  %2367 = vmatmul.mubr.bf16.vlgmr.msra.gmra.mrb[88].mxu1 %v6457_v30  ;;  %v1439_v13 = vpop.f32.mrb[74].mxu0  ;;  %v1970_v32 = vpack.c.bf16 %v4939_v61, %v4931_v9  ;;  %v1367_v40 = vadd.f32 %v1366_v26, %v6226_v22  ;;  %4966 = vtanh.f32 %v1365_v6 }
 0x1aa   : > { %v4943_v27 = vpop.eup %4942  ;;  %v1368_v4 = vpop.f32.mrb[75].mxu1  ;;  %v1960_v45 = vpack.c.bf16 %v4941_v35, %v4933_v62  ;;  %2376 = vmatprep.mubr.bf16.mxu1 %v6462_v1  ;;  %v1440_v12 = vadd.f32 %v1439_v13, %v7524_v63  ;;  %4968 = vtanh.f32 %v1438_v18  ;;  %v6477_v62 = vld [vmem:[%s7464_s3 + $0x18] ss:$12 sps:$4 sm:$0xff]  }
 0x1ab   : > { %v1441_v52 = vpop.f32.mrb[75].mxu0  ;;  %v4945_v11 = vpop.eup %4944  ;;  %v1971_v60 = vpack.c.bf16 %v4943_v27, %v4935_v5  ;;  %v1369_v2 = vadd.f32 %v1368_v4, %v6226_v22  ;;  %4970 = vtanh.f32 %v1367_v40  ;;  %v6482_v5 = vld [vmem:[%s7464_s3 + $0x34] ss:$12 sps:$4 sm:$0xff]  }
 0x1ac   : > { %v4947_v16 = vpop.eup %4946  ;;  %v1961_v19 = vpack.c.bf16 %v4945_v11, %v4937_v7  ;;  %v1442_v61 = vadd.f32 %v1441_v52, %v7524_v63  ;;  %4972 = vtanh.f32 %v1440_v12  ;;  %v1372_v55 = vpop.f32.mrb[76].mxu1 }
 0x1ad   : > { %v4949_v9 = vpop.eup %4948  ;;  %2467 = vmatprep.subr.bf16.mxu1 %v1971_v60  ;;  %v1445_v14 = vpop.f32.mrb[76].mxu0  ;;  %4974 = vtanh.f32 %v1369_v2  ;;  %v1373_v35 = vadd.f32 %v1372_v55, %v6228_v54 }
 0x1ae   : > { %v4951_v0 = vpop.eup %4950  ;;  %2628 = vmatprep.subr.bf16.mxu0 %v1961_v19  ;;  %2468 = vmatpush1.bf16.msra.mxu1 %v1970_v32  ;;  %v1446_v6 = vadd.f32 %v1445_v14, %v6069_v10  ;;  %v1374_v18 = vpop.f32.mrb[77].mxu1  ;;  %4976 = vtanh.f32 %v1442_v61 }
 0x1af   : > { %v4953_v7 = vpop.eup %4952  ;;  %2629 = vmatpush1.bf16.msra.mxu0 %v1960_v45  ;;  %v1447_v26 = vpop.f32.mrb[77].mxu0  ;;  %v1375_v32 = vadd.f32 %v1374_v18, %v6228_v54  ;;  %4978 = vtanh.f32 %v1373_v35 }
 0x1b0   : > { %v4955_v59 = vpop.eup %4954  ;;  %v1448_v27 = vadd.f32 %v1447_v26, %v6069_v10  ;;  %v1376_v40 = vpop.f32.mrb[78].mxu1  ;;  %4980 = vtanh.f32 %v1446_v6  ;;  %v7525_v6 = vld [vmem:[#allocation13_spill] sm:$0xff] }
 0x1b1   : > { %v4957_v13 = vpop.eup %4956  ;;  %2377 = vmatmul.mubr.bf16.gmra.mrb[92].mxu1 %v6477_v62  ;;  %v1449_v4 = vpop.f32.mrb[78].mxu0  ;;  %v1976_v52 = vpack.c.bf16 %v4955_v59, %v4947_v16  ;;  %v1377_v11 = vadd.f32 %v1376_v40, %v7522_v21  ;;  %4982 = vtanh.f32 %v1375_v32 }
 0x1b2   : > { %v4959_v45 = vpop.eup %4958  ;;  %v1378_v63 = vpop.f32.mrb[79].mxu1  ;;  %v1966_v60 = vpack.c.bf16 %v4957_v13, %v4949_v9  ;;  %2386 = vmatprep.mubr.bf16.mxu1 %v6482_v5  ;;  %v1450_v19 = vadd.f32 %v1449_v4, %v6086_v17  ;;  %4984 = vtanh.f32 %v1448_v27  ;;  %v6499_v9 = vld [vmem:[%s7464_s3 + $0x30] ss:$12 sps:$4 sm:$0xff]  }
 0x1b3   : > { %v1451_v12 = vpop.f32.mrb[79].mxu0  ;;  %v4961_v2 = vpop.eup %4960  ;;  %v1977_v61 = vpack.c.bf16 %v4959_v45, %v4951_v0  ;;  %v1379_v10 = vadd.f32 %v1378_v63, %v7522_v21  ;;  %4986 = vtanh.f32 %v1377_v11  ;;  %v7528_v27 = vld [vmem:[#allocation6_spill] sm:$0xff] }
 0x1b4   : > { %v4963_v55 = vpop.eup %4962  ;;  %v1967_v14 = vpack.c.bf16 %v4961_v2, %v4953_v7  ;;  %v1452_v59 = vadd.f32 %v1451_v12, %v6086_v17  ;;  %4988 = vtanh.f32 %v1450_v19  ;;  %v7526_v7 = vld [vmem:[#allocation11_spill] sm:$0xff]  ;;  %v1382_v26 = vpop.f32.mrb[80].mxu1  ;;  %v6507_v17 = vld [vmem:[%s7464_s3 + $0x4c] ss:$12 sps:$4 sm:$0xff]  }
 0x1b5   : > { %v6493_v16 = vpop.eup %4964  ;;  %2469 = vmatprep.subr.bf16.mxu1 %v1977_v61  ;;  %v7527_v18 = vpack.c.bf16 %v7525_v6, %v7526_v7  ;;  %v1455_v13 = vpop.f32.mrb[80].mxu0  ;;  %4990 = vtanh.f32 %v1379_v10  ;;  %v1383_v40 = vadd.f32 %v1382_v26, %v7528_v27  ;;  %v7529_v10 = vld [vmem:[#allocation12_spill] sm:$0xff]  ;;  %v7532_v7 = vld [vmem:[#allocation7_spill] sm:$0xff] }
 0x1b6   : > { %v4967_v35 = vpop.eup %4966  ;;  %2630 = vmatprep.subr.bf16.mxu0 %v1967_v14  ;;  %2470 = vmatpush1.bf16.msra.mxu1 %v1976_v52  ;;  %v1456_v4 = vadd.f32 %v1455_v13, %v6100_v20  ;;  %v1384_v52 = vpop.f32.mrb[81].mxu1  ;;  %4992 = vtanh.f32 %v1452_v59  ;;  %v7530_v14 = vld [vmem:[#allocation10_spill] sm:$0xff] }
 0x1b7   : > { %v4969_v0 = vpop.eup %4968  ;;  %2631 = vmatpush1.bf16.msra.mxu0 %v1966_v60  ;;  %2471 = vmatprep.subr.bf16.mxu1 %v7527_v18  ;;  %v1457_v45 = vpop.f32.mrb[81].mxu0  ;;  %v1385_v63 = vadd.f32 %v1384_v52, %v7528_v27  ;;  %4994 = vtanh.f32 %v1383_v40  ;;  %v7531_v6 = vpack.c.bf16 %v7529_v10, %v7530_v14 }
 0x1b8   : > { %v4971_v32 = vpop.eup %4970  ;;  %v1458_v12 = vadd.f32 %v1457_v45, %v6100_v20  ;;  %v1386_v60 = vpop.f32.mrb[82].mxu1  ;;  %4996 = vtanh.f32 %v1456_v4  ;;  %v7533_v20 = vld [vmem:[#allocation17_spill] sm:$0xff]  ;;  %v7534_v45 = vld [vmem:[#allocation15_spill] sm:$0xff] }
 0x1b9   : > { %v6511_v11 = vpop.eup %4972  ;;  %2387 = vmatmul.mubr.bf16.gmra.mrb[96].mxu1 %v6499_v9  ;;  %v1459_v2 = vpop.f32.mrb[82].mxu0  ;;  %v1972_v19 = vpack.c.bf16 %v4971_v32, %v4963_v55  ;;  %v1387_v18 = vadd.f32 %v1386_v60, %v7532_v7  ;;  %v7535_v55 = vpack.c.bf16 %v7533_v20, %v7534_v45  ;;  %4998 = vtanh.f32 %v1385_v63  ;;  %v7538_v63 = vld [vmem:[#allocation14_spill] sm:$0xff] }
 0x1ba   : > { %v4975_v61 = vpop.eup %4974  ;;  %2633 = vmatmul.mubr.bf16.vlgmr.msra.gmra.mrb[152].mxu0 %v6457_v30  ;;  %2472 = vmatpush1.bf16.msra.mxu1 %v7531_v6  ;;  %v1388_v59 = vpop.f32.mrb[83].mxu1  ;;  %v1460_v30 = vadd.f32 %v1459_v2, %v6107_v23  ;;  %5000 = vtanh.f32 %v1458_v12  ;;  %v6536_v2 = vld [vmem:[%s7464_s3 + $0x48] ss:$12 sps:$4 sm:$0xff]  }
 0x1bb   : > { %v1461_v26 = vpop.f32.mrb[83].mxu0  ;;  %v4977_v52 = vpop.eup %4976  ;;  %2473 = vmatprep.subr.bf16.mxu1 %v7535_v55  ;;  %v1973_v32 = vpack.c.bf16 %v4975_v61, %v4967_v35  ;;  %2396 = vmatprep.mubr.bf16.mxu1 %v6507_v17  ;;  %v1389_v60 = vadd.f32 %v1388_v59, %v7532_v7  ;;  %7536 = vst [vmem:[#allocation5_spill] sm:$0xff] %v6536_v2  ;;  %5002 = vtanh.f32 %v1387_v18  ;;  %v7537_v61 = vld [vmem:[#allocation16_spill] sm:$0xff] }
 0x1bc   : > { %v4979_v40 = vpop.eup %4978  ;;  %v1879_v10 = vpack.c.bf16 %v4977_v52, %v4969_v0  ;;  %2642 = vmatprep.mubr.bf16.mxu0 %v6462_v1  ;;  %v1462_v4 = vadd.f32 %v1461_v26, %v6107_v23  ;;  %v7539_v6 = vpack.c.bf16 %v7537_v61, %v7538_v63  ;;  %v6544_v1 = vld [vmem:[%s7464_s3 + $0x64] ss:$12 sps:$4 sm:$0xff]   ;;  %5004 = vtanh.f32 %v1460_v30  ;;  %v1392_v23 = vpop.f32.mrb[84].mxu1  ;;  %v7541_v26 = vld [vmem:[#allocation8_spill] sm:$0xff] }
 0x1bd   : > { %v6530_v14 = vpop.eup %4980  ;;  %2733 = vmatprep.subr.bf16.mxu0 %v1973_v32  ;;  %7540 = vst [vmem:[#allocation3_spill] sm:$0xff] %v6544_v1  ;;  %v1465_v12 = vpop.f32.mrb[84].mxu0  ;;  %5006 = vtanh.f32 %v1389_v60  ;;  %v1393_v18 = vadd.f32 %v1392_v23, %v7541_v26  ;;  %v7542_v60 = vld [vmem:[#allocation9_spill] sm:$0xff] }
 0x1be   : > { %v4983_v35 = vpop.eup %4982  ;;  %2474 = vmatpush1.bf16.msra.mxu1 %v7539_v6  ;;  %2734 = vmatpush1.bf16.msra.mxu0 %v1972_v19  ;;  %v1466_v52 = vadd.f32 %v1465_v12, %v6109_v24  ;;  %v1394_v20 = vpop.f32.mrb[85].mxu1  ;;  %5008 = vtanh.f32 %v1462_v4 }
 0x1bf   : > { %v6546_v0 = vpop.eup %4984  ;;  %2866 = vmatprep.subr.bf16.mxu1 %v1879_v10  ;;  %v1467_v45 = vpop.f32.mrb[85].mxu0  ;;  %v1395_v55 = vadd.f32 %v1394_v20, %v7541_v26  ;;  %5010 = vtanh.f32 %v1393_v18 }
 0x1c0   : > { %v4987_v59 = vpop.eup %4986  ;;  %v1468_v30 = vadd.f32 %v1467_v45, %v6109_v24  ;;  %v1396_v32 = vpop.f32.mrb[86].mxu1  ;;  %5012 = vtanh.f32 %v1466_v52  ;;  %v6573_v52 = vld [vmem:[%s7464_s3 + $0x60] ss:$12 sps:$4 sm:$0xff]  }
 0x1c1   : > { %v6550_v19 = vpop.eup %4988  ;;  %2397 = vmatmul.mubr.bf16.gmra.mrb[100].mxu1 %v6536_v2  ;;  %v1469_v10 = vpop.f32.mrb[86].mxu0  ;;  %v1978_v61 = vpack.c.bf16 %v4987_v59, %v4979_v40  ;;  %v1397_v6 = vadd.f32 %v1396_v32, %v7542_v60  ;;  %5014 = vtanh.f32 %v1395_v55  ;;  %7543 = vst [vmem:[#allocation4_spill] sm:$0xff] %v6573_v52 }
 0x1c2   : > { %v4991_v63 = vpop.eup %4990  ;;  %2643 = vmatmul.mubr.bf16.gmra.mrb[156].mxu0 %v6477_v62  ;;  %v1398_v23 = vpop.f32.mrb[87].mxu1  ;;  %2406 = vmatprep.mubr.bf16.mxu1 %v6544_v1  ;;  %v1470_v24 = vadd.f32 %v1469_v10, %v6117_v25  ;;  %5016 = vtanh.f32 %v1468_v30 }
 0x1c3   : > { %v1471_v12 = vpop.f32.mrb[87].mxu0  ;;  %v6560_v13 = vpop.eup %4992  ;;  %v1979_v20 = vpack.c.bf16 %v4991_v63, %v4983_v35  ;;  %2652 = vmatprep.mubr.bf16.mxu0 %v6482_v5  ;;  %v1399_v62 = vadd.f32 %v1398_v23, %v7542_v60  ;;  %5018 = vtanh.f32 %v1397_v6  ;;  %v6578_v5 = vld [vmem:[%s7464_s3 + $0x7c] ss:$12 sps:$4 sm:$0xff]  }
 0x1c4   : > { %v4995_v40 = vpop.eup %4994  ;;  %v1472_v45 = vadd.f32 %v1471_v12, %v6117_v25  ;;  %7544 = vst [vmem:[#allocation13_spill] sm:$0xff] %v6578_v5  ;;  %5020 = vtanh.f32 %v1470_v24  ;;  %v1475_v30 = vpop.f32.mrb[88].mxu0  ;;  %v7552_v27 = vpack.c.bf16 %v6560_v13, %v6546_v0 }
 0x1c5   : > { %v6567_v18 = vpop.eup %4996  ;;  %2735 = vmatprep.subr.bf16.mxu0 %v1979_v20  ;;  %5022 = vtanh.f32 %v1399_v62  ;;  %v1476_v25 = vadd.f32 %v1475_v30, %v6124_v28  ;;  %v1477_v10 = vpop.f32.mrb[89].mxu0 }
 0x1c6   : > { %v4999_v35 = vpop.eup %4998  ;;  %2736 = vmatpush1.bf16.msra.mxu0 %v1978_v61  ;;  %5024 = vtanh.f32 %v1472_v45  ;;  %v1478_v61 = vadd.f32 %v1477_v10, %v6124_v28  ;;  %v1479_v6 = vpop.f32.mrb[90].mxu0 }
 0x1c7   : > { %v6580_v55 = vpop.eup %5000  ;;  %5026 = vtanh.f32 %v1476_v25  ;;  %v1480_v24 = vadd.f32 %v1479_v6, %v6132_v29  ;;  %v1481_v20 = vpop.f32.mrb[91].mxu0  ;;  %v6603_v25 = vld [vmem:[%s7464_s3 + $0x78] ss:$12 sps:$4 sm:$0xff]  }
 0x1c8   : > { %v5003_v32 = vpop.eup %5002  ;;  %5028 = vtanh.f32 %v1478_v61  ;;  %v1482_v45 = vadd.f32 %v1481_v20, %v6132_v29  ;;  %7545 = vst [vmem:[#allocation11_spill] sm:$0xff] %v6603_v25  ;;  %v6608_v29 = vld [vmem:[%s7464_s3 + $0x94] ss:$12 sps:$4 sm:$0xff]  }
 0x1c9   : > { %v6583_v63 = vpop.eup %5004  ;;  %2407 = vmatmul.mubr.bf16.gmra.mrb[104].mxu1 %v6573_v52  ;;  %v1984_v23 = vpack.c.bf16 %v5003_v32, %v4995_v40  ;;  %5030 = vtanh.f32 %v1480_v24  ;;  %7546 = vst [vmem:[#allocation12_spill] sm:$0xff] %v6608_v29 }
 0x1ca   : > { %v5007_v12 = vpop.eup %5006  ;;  %2653 = vmatmul.mubr.bf16.gmra.mrb[160].mxu0 %v6499_v9  ;;  %2416 = vmatprep.mubr.bf16.mxu1 %v6578_v5  ;;  %5032 = vtanh.f32 %v1482_v45 }
 0x1cb   : > { %v6592_v30 = vpop.eup %5008  ;;  %v1985_v28 = vpack.c.bf16 %v5007_v12, %v4999_v35  ;;  %2662 = vmatprep.mubr.bf16.mxu0 %v6507_v17 }
 0x1cc   : > { %v5011_v40 = vpop.eup %5010  ;;  %v1485_v35 = vpop.f32.mrb[92].mxu0  ;;  %v7554_v0 = vpack.c.bf16 %v6592_v30, %v6580_v55  ;;  %v7555_v55 = vpack.c.bf16 %v6583_v63, %v6567_v18  ;;  %v6820_v63 = vld [vmem:[%s7464_s3 + $0x38] ss:$12 sps:$4 sm:$0xff]  }
 0x1cd   : > { %v6598_v32 = vpop.eup %5012  ;;  %2737 = vmatprep.subr.bf16.mxu0 %v1985_v28  ;;  %v1486_v6 = vadd.f32 %v1485_v35, %v6134_v31  ;;  %v1487_v12 = vpop.f32.mrb[93].mxu0 }
 0x1ce   : > { %v5015_v10 = vpop.eup %5014  ;;  %2738 = vmatpush1.bf16.msra.mxu0 %v1984_v23  ;;  %v1488_v20 = vadd.f32 %v1487_v12, %v6134_v31  ;;  %v1489_v45 = vpop.f32.mrb[94].mxu0  ;;  %v6635_v12 = vld [vmem:[%s7464_s3 + $0x90] ss:$12 sps:$4 sm:$0xff]  }
 0x1cf   : > { %v6610_v17 = vpop.eup %5016  ;;  %5034 = vtanh.f32 %v1486_v6  ;;  %v1490_v62 = vadd.f32 %v1489_v45, %v6141_v33  ;;  %v1491_v9 = vpop.f32.mrb[95].mxu0  ;;  %7547 = vst [vmem:[#allocation10_spill] sm:$0xff] %v6635_v12 }
 0x1d0   : > { %v5019_v61 = vpop.eup %5018  ;;  %5036 = vtanh.f32 %v1488_v20  ;;  %v1492_v59 = vadd.f32 %v1491_v9, %v6141_v33  ;;  %v6642_v33 = vld [vmem:[%s7464_s3 + $0xac] ss:$12 sps:$4 sm:$0xff]  }
 0x1d1   : > { %v6613_v24 = vpop.eup %5020  ;;  %2417 = vmatmul.mubr.bf16.gmra.mrb[108].mxu1 %v6603_v25  ;;  %v1990_v23 = vpack.c.bf16 %v5019_v61, %v5011_v40  ;;  %5038 = vtanh.f32 %v1490_v62  ;;  %7548 = vst [vmem:[#allocation17_spill] sm:$0xff] %v6642_v33 }
 0x1d2   : > { %v5023_v28 = vpop.eup %5022  ;;  %2663 = vmatmul.mubr.bf16.gmra.mrb[164].mxu0 %v6536_v2  ;;  %2426 = vmatprep.mubr.bf16.mxu1 %v6608_v29  ;;  %5040 = vtanh.f32 %v1492_v59 }
 0x1d3   : > { %v6622_v4 = vpop.eup %5024  ;;  %v1991_v31 = vpack.c.bf16 %v5023_v28, %v5015_v10  ;;  %2672 = vmatprep.mubr.bf16.mxu0 %v6544_v1 }
 0x1d4   : > { %v6626_v40 = vpop.eup %5026  ;;  %v1495_v9 = vpop.f32.mrb[96].mxu0 }
 0x1d5   : > { %v6630_v6 = vpop.eup %5028  ;;  %2739 = vmatprep.subr.bf16.mxu0 %v1991_v31  ;;  %v1496_v10 = vadd.f32 %v1495_v9, %v6149_v34  ;;  %v1497_v45 = vpop.f32.mrb[97].mxu0 }
 0x1d6   : > { %v6637_v20 = vpop.eup %5030  ;;  %2740 = vmatpush1.bf16.msra.mxu0 %v1990_v23  ;;  %v1498_v23 = vadd.f32 %v1497_v45, %v6149_v34  ;;  %v1499_v31 = vpop.f32.mrb[98].mxu0  ;;  %v6665_v34 = vld [vmem:[%s7464_s3 + $0xa8] ss:$12 sps:$4 sm:$0xff]   ;;  %v6672_v45 = vld [vmem:[%s7464_s3 + $0xc4] ss:$12 sps:$4 sm:$0xff]  }
 0x1d7   : > { %v6644_v62 = vpop.eup %5032  ;;  %5042 = vtanh.f32 %v1496_v10  ;;  %v1500_v35 = vadd.f32 %v1499_v31, %v6151_v36  ;;  %v1501_v61 = vpop.f32.mrb[99].mxu0  ;;  %7549 = vst [vmem:[#allocation15_spill] sm:$0xff] %v6665_v34  ;;  %7550 = vst [vmem:[#allocation16_spill] sm:$0xff] %v6672_v45 }
 0x1d8   : > { %5044 = vtanh.f32 %v1498_v23  ;;  %v1502_v9 = vadd.f32 %v1501_v61, %v6151_v36 }
 0x1d9   : > { %2427 = vmatmul.mubr.bf16.gmra.mrb[112].mxu1 %v6635_v12  ;;  %v6658_v59 = vpop.eup %5034  ;;  %5046 = vtanh.f32 %v1500_v35 }
 0x1da   : > { %2673 = vmatmul.mubr.bf16.gmra.mrb[168].mxu0 %v6573_v52  ;;  %2436 = vmatprep.mubr.bf16.mxu1 %v6642_v33  ;;  %v6660_v28 = vpop.eup %5036  ;;  %5048 = vtanh.f32 %v1502_v9 }
 0x1db   : > { %2682 = vmatprep.mubr.bf16.mxu0 %v6578_v5  ;;  %v6667_v10 = vpop.eup %5038 }
 0x1dc   : > { %v6674_v36 = vpop.eup %5040  ;;  %v1505_v61 = vpop.f32.mrb[100].mxu0 }
 0x1dd   : > { %v1506_v23 = vadd.f32 %v1505_v61, %v6153_v37  ;;  %v1507_v31 = vpop.f32.mrb[101].mxu0 }
 0x1de   : > { %v1508_v5 = vadd.f32 %v1507_v31, %v6153_v37  ;;  %v1509_v52 = vpop.f32.mrb[102].mxu0  ;;  %v6695_v37 = vld [vmem:[%s7464_s3 + $0xc0] ss:$12 sps:$4 sm:$0xff]  }
 0x1df   : > { %5050 = vtanh.f32 %v1506_v23  ;;  %v1510_v1 = vadd.f32 %v1509_v52, %v6161_v38  ;;  %v1511_v2 = vpop.f32.mrb[103].mxu0 }
 0x1e0   : > { %5052 = vtanh.f32 %v1508_v5  ;;  %v1512_v61 = vadd.f32 %v1511_v2, %v6161_v38  ;;  %v6702_v5 = vld [vmem:[%s7464_s3 + $0xdc] ss:$12 sps:$4 sm:$0xff]  }
 0x1e1   : > { %2437 = vmatmul.mubr.bf16.gmra.mrb[116].mxu1 %v6665_v34  ;;  %v6688_v35 = vpop.eup %5042  ;;  %5054 = vtanh.f32 %v1510_v1 }
 0x1e2   : > { %2683 = vmatmul.mubr.bf16.gmra.mrb[172].mxu0 %v6603_v25  ;;  %2446 = vmatprep.mubr.bf16.mxu1 %v6672_v45  ;;  %v6690_v9 = vpop.eup %5044  ;;  %5056 = vtanh.f32 %v1512_v61 }
 0x1e3   : > { %2692 = vmatprep.mubr.bf16.mxu0 %v6608_v29  ;;  %v6697_v52 = vpop.eup %5046 }
 0x1e4   : > { %v6704_v38 = vpop.eup %5048  ;;  %v1515_v2 = vpop.f32.mrb[104].mxu0 }
 0x1e5   : > { %v1516_v23 = vadd.f32 %v1515_v2, %v6163_v39  ;;  %v1517_v31 = vpop.f32.mrb[105].mxu0 }
 0x1e6   : > { %v1518_v29 = vadd.f32 %v1517_v31, %v6163_v39  ;;  %v1519_v25 = vpop.f32.mrb[106].mxu0  ;;  %v6725_v39 = vld [vmem:[%s7464_s3 + $0xd8] ss:$12 sps:$4 sm:$0xff]  }
 0x1e7   : > { %5058 = vtanh.f32 %v1516_v23  ;;  %v1520_v60 = vadd.f32 %v1519_v25, %v6171_v41  ;;  %v1521_v26 = vpop.f32.mrb[107].mxu0 }
 0x1e8   : > { %5060 = vtanh.f32 %v1518_v29  ;;  %v1522_v2 = vadd.f32 %v1521_v26, %v6171_v41 }
 0x1e9   : > { %2447 = vmatmul.mubr.bf16.gmra.mrb[120].mxu1 %v6695_v37  ;;  %v6718_v1 = vpop.eup %5050  ;;  %5062 = vtanh.f32 %v1520_v60 }
 0x1ea   : > { %2693 = vmatmul.mubr.bf16.gmra.mrb[176].mxu0 %v6635_v12  ;;  %2456 = vmatprep.mubr.bf16.mxu1 %v6702_v5  ;;  %v6720_v61 = vpop.eup %5052  ;;  %5064 = vtanh.f32 %v1522_v2 }
 0x1eb   : > { %2702 = vmatprep.mubr.bf16.mxu0 %v6642_v33  ;;  %v6727_v25 = vpop.eup %5054 }
 0x1ec   : > { %v6729_v23 = vpop.eup %5056  ;;  %v1525_v29 = vpop.f32.mrb[108].mxu0 }
 0x1ed   : > { %v1526_v26 = vadd.f32 %v1525_v29, %v6173_v46  ;;  %v1527_v31 = vpop.f32.mrb[109].mxu0 }
 0x1ee   : > { %v1528_v2 = vadd.f32 %v1527_v31, %v6173_v46  ;;  %v1529_v33 = vpop.f32.mrb[110].mxu0  ;;  %v6750_v46 = vld [vmem:[%s7464_s3 + $0x8] ss:$12 sps:$4 sm:$0xff]  }
 0x1ef   : > { %5066 = vtanh.f32 %v1526_v26  ;;  %v1530_v12 = vadd.f32 %v1529_v33, %v6175_v42  ;;  %v1531_v7 = vpop.f32.mrb[111].mxu0 }
 0x1f0   : > { %5068 = vtanh.f32 %v1528_v2  ;;  %v1532_v29 = vadd.f32 %v1531_v7, %v6175_v42 }
 0x1f1   : > { %2457 = vmatmul.mubr.bf16.gmra.mrb[124].mxu1 %v6725_v39  ;;  %v6743_v41 = vpop.eup %5058  ;;  %5070 = vtanh.f32 %v1530_v12 }
 0x1f2   : > { %2703 = vmatmul.mubr.bf16.gmra.mrb[180].mxu0 %v6665_v34  ;;  %2499 = vmatprep.mubr.bf16.mxu1 %v7518_v58  ;;  %v6745_v60 = vpop.eup %5060  ;;  %5072 = vtanh.f32 %v1532_v29  ;;  %v7551_v34 = vpack.c.bf16 %v6511_v11, %v6493_v16  ;;  %v6782_v11 = vld [vmem:[%s7464_s3 + $0x20] ss:$12 sps:$4 sm:$0xff]  }
 0x1f3   : > { %2712 = vmatprep.mubr.bf16.mxu0 %v6672_v45  ;;  %v6752_v33 = vpop.eup %5062 }
 0x1f4   : > { %v6754_v26 = vpop.eup %5064  ;;  %v1535_v31 = vpop.f32.mrb[112].mxu0 }
 0x1f5   : > { %v1536_v7 = vadd.f32 %v1535_v31, %v6183_v56  ;;  %v1537_v2 = vpop.f32.mrb[113].mxu0 }
 0x1f6   : > { %v1538_v29 = vadd.f32 %v1537_v2, %v6183_v56  ;;  %v1539_v45 = vpop.f32.mrb[114].mxu0 }
 0x1f7   : > { %5074 = vtanh.f32 %v1536_v7  ;;  %v1540_v42 = vadd.f32 %v1539_v45, %v6185_v43  ;;  %v1541_v31 = vpop.f32.mrb[115].mxu0 }
 0x1f8   : > { %5076 = vtanh.f32 %v1538_v29  ;;  %v1542_v12 = vadd.f32 %v1541_v31, %v6185_v43  ;;  %v7553_v43 = vpack.c.bf16 %v6550_v19, %v6530_v14  ;;  %v7556_v29 = vpack.c.bf16 %v6622_v4, %v6610_v17 }
 0x1f9   : > { %4167 = vmatmul.mubr.msk.bf16.vlgmr.msra.gmra.mrb[88].mxu1 %vm874_vm0, %v6750_v46  ;;  %v6774_v56 = vpop.eup %5066  ;;  %5078 = vtanh.f32 %v1540_v42 }
 0x1fa   : > { %2713 = vmatmul.mubr.bf16.gmra.mrb[184].mxu0 %v6695_v37  ;;  %2867 = vmatpush1.bf16.msra.mxu1 %v7551_v34  ;;  %v6777_v16 = vpop.eup %5068  ;;  %5080 = vtanh.f32 %v1542_v12 }
 0x1fb   : > { %2868 = vmatprep.subr.bf16.mxu1 %v7552_v27  ;;  %2509 = vmatprep.mubr.bf16.mxu1 %v7518_v58  ;;  %v6784_v13 = vpop.eup %5070 }
 0x1fc   : > { %2722 = vmatprep.mubr.bf16.mxu0 %v6702_v5  ;;  %v6789_v27 = vpop.eup %5072  ;;  %v1545_v34 = vpop.f32.mrb[116].mxu0  ;;  %v1932_v45 = vpack.c.bf16 %v6784_v13, %v6774_v56 }
 0x1fd   : > { %v1546_v42 = vadd.f32 %v1545_v34, %v6187_v44  ;;  %v1547_v7 = vpop.f32.mrb[117].mxu0  ;;  %v1933_v2 = vpack.c.bf16 %v6789_v27, %v6777_v16 }
 0x1fe   : > { %2869 = vmatpush1.bf16.msra.mxu1 %v7553_v43  ;;  %v1548_v14 = vadd.f32 %v1547_v7, %v6187_v44  ;;  %v1549_v19 = vpop.f32.mrb[118].mxu0  ;;  %v7558_v43 = vpack.c.bf16 %v6644_v62, %v6630_v6  ;;  %v7559_v6 = vpack.c.bf16 %v6637_v20, %v6626_v40  ;;  %v6859_v20 = vld [vmem:[%s7464_s3 + $0x50] ss:$12 sps:$4 sm:$0xff]  }
 0x1ff   : > { %2870 = vmatprep.subr.bf16.mxu1 %v7554_v0  ;;  %5082 = vtanh.f32 %v1546_v42  ;;  %v1550_v30 = vadd.f32 %v1549_v19, %v6194_v47  ;;  %v1551_v12 = vpop.f32.mrb[119].mxu0 }
 0x200   : > { %5084 = vtanh.f32 %v1548_v14  ;;  %v1552_v31 = vadd.f32 %v1551_v12, %v6194_v47  ;;  %v7557_v47 = vpack.c.bf16 %v6613_v24, %v6598_v32  ;;  %v7562_v12 = vpack.c.bf16 %v6704_v38, %v6690_v9 }
 0x201   : > { %4168 = vmatmul.mubr.msk.bf16.gmra.mrb[92].mxu1 %vm874_vm0, %v6782_v11  ;;  %v6812_v44 = vpop.eup %5074  ;;  %5086 = vtanh.f32 %v1550_v30  ;;  %v7563_v9 = vpack.c.bf16 %v6697_v52, %v6688_v35  ;;  %v6896_v52 = vld [vmem:[%s7464_s3 + $0x68] ss:$12 sps:$4 sm:$0xff]  }
 0x202   : > { %2723 = vmatmul.mubr.bf16.gmra.mrb[188].mxu0 %v6725_v39  ;;  %2871 = vmatpush1.bf16.msra.mxu1 %v7555_v55  ;;  %v6815_v18 = vpop.eup %5076  ;;  %5088 = vtanh.f32 %v1552_v31  ;;  %v7560_v55 = vpack.c.bf16 %v6674_v36, %v6660_v28 }
 0x203   : > { %2872 = vmatprep.subr.bf16.mxu1 %v7556_v29  ;;  %2519 = vmatprep.mubr.bf16.mxu1 %v7518_v58  ;;  %v6822_v4 = vpop.eup %5078 }
 0x204   : > { %2765 = vmatprep.mubr.bf16.mxu0 %v7518_v58  ;;  %v6827_v17 = vpop.eup %5080  ;;  %v1555_v0 = vpop.f32.mrb[120].mxu0  ;;  %v1938_v34 = vpack.c.bf16 %v6822_v4, %v6812_v44  ;;  %v6951_v44 = vld [vmem:[%s7464_s3 + $0x98] ss:$12 sps:$4 sm:$0xff]  }
 0x205   : > { %v1556_v42 = vadd.f32 %v1555_v0, %v6196_v3  ;;  %v1557_v7 = vpop.f32.mrb[121].mxu0  ;;  %v1939_v14 = vpack.c.bf16 %v6827_v17, %v6815_v18 }
 0x206   : > { %2873 = vmatpush1.bf16.msra.mxu1 %v7557_v47  ;;  %v1558_v32 = vadd.f32 %v1557_v7, %v6196_v3  ;;  %v1559_v24 = vpop.f32.mrb[122].mxu0  ;;  %v7564_v7 = vpack.c.bf16 %v6729_v23, %v6720_v61  ;;  %v7565_v61 = vpack.c.bf16 %v6727_v25, %v6718_v1  ;;  %v7566_v23 = vpack.c.bf16 %v6754_v26, %v6745_v60 }
 0x207   : > { %2874 = vmatprep.subr.bf16.mxu1 %v7558_v43  ;;  %5090 = vtanh.f32 %v1556_v42  ;;  %v1560_v62 = vadd.f32 %v1559_v24, %v6201_v48  ;;  %v1561_v19 = vpop.f32.mrb[123].mxu0  ;;  %v7567_v25 = vpack.c.bf16 %v6752_v33, %v6743_v41  ;;  %v6927_v41 = vld [vmem:[%s7464_s3 + $0x80] ss:$12 sps:$4 sm:$0xff]  }
 0x208   : > { %5092 = vtanh.f32 %v1558_v32  ;;  %v1562_v30 = vadd.f32 %v1561_v19, %v6201_v48  ;;  %v7561_v48 = vpack.c.bf16 %v6667_v10, %v6658_v59 }
 0x209   : > { %4169 = vmatmul.mubr.msk.bf16.gmra.mrb[96].mxu1 %vm874_vm0, %v6820_v63  ;;  %v6851_v3 = vpop.eup %5082  ;;  %5094 = vtanh.f32 %v1560_v62 }
 0x20a   : > { %4177 = vmatmul.mubr.msk.bf16.vlgmr.msra.gmra.mrb[152].mxu0 %vm874_vm0, %v6750_v46  ;;  %2875 = vmatpush1.bf16.msra.mxu1 %v7559_v6  ;;  %v6854_v40 = vpop.eup %5084  ;;  %5096 = vtanh.f32 %v1562_v30 }
 0x20b   : > { %2876 = vmatprep.subr.bf16.mxu1 %v7560_v55  ;;  %2529 = vmatprep.mubr.bf16.mxu1 %v7518_v58  ;;  %v6861_v28 = vpop.eup %5086 }
 0x20c   : > { %2775 = vmatprep.mubr.bf16.mxu0 %v7518_v58  ;;  %v6866_v36 = vpop.eup %5088  ;;  %v1565_v29 = vpop.f32.mrb[124].mxu0  ;;  %v1944_v31 = vpack.c.bf16 %v6861_v28, %v6851_v3 }
 0x20d   : > { %v1566_v47 = vadd.f32 %v1565_v29, %v6203_v49  ;;  %v1567_v43 = vpop.f32.mrb[125].mxu0  ;;  %v1945_v0 = vpack.c.bf16 %v6866_v36, %v6854_v40 }
 0x20e   : > { %2877 = vmatpush1.bf16.msra.mxu1 %v7561_v48  ;;  %v1568_v59 = vadd.f32 %v1567_v43, %v6203_v49  ;;  %v1569_v10 = vpop.f32.mrb[126].mxu0 }
 0x20f   : > { %2878 = vmatprep.subr.bf16.mxu1 %v7562_v12  ;;  %5098 = vtanh.f32 %v1566_v47  ;;  %v1570_v38 = vadd.f32 %v1569_v10, %v6205_v50  ;;  %v1571_v42 = vpop.f32.mrb[127].mxu0 }
 0x210   : > { %5100 = vtanh.f32 %v1568_v59  ;;  %v1572_v32 = vadd.f32 %v1571_v42, %v6205_v50  ;;  %v6969_v42 = vld [vmem:[%s7464_s3 + $0xb0] ss:$12 sps:$4 sm:$0xff]  }
 0x211   : > { %4170 = vmatmul.mubr.msk.bf16.gmra.mrb[100].mxu1 %vm874_vm0, %v6859_v20  ;;  %v6890_v49 = vpop.eup %5090  ;;  %5102 = vtanh.f32 %v1570_v38 }
 0x212   : > { %4178 = vmatmul.mubr.msk.bf16.gmra.mrb[156].mxu0 %vm874_vm0, %v6782_v11  ;;  %2879 = vmatpush1.bf16.msra.mxu1 %v7563_v9  ;;  %v5093_v35 = vpop.eup %5092  ;;  %5104 = vtanh.f32 %v1572_v32 }
 0x213   : > { %2880 = vmatprep.subr.bf16.mxu1 %v7564_v7  ;;  %2539 = vmatprep.mubr.bf16.mxu1 %v7518_v58  ;;  %v6898_v24 = vpop.eup %5094 }
 0x214   : > { %2785 = vmatprep.mubr.bf16.mxu0 %v7518_v58  ;;  %v5097_v50 = vpop.eup %5096  ;;  %v1575_v6 = vpop.f32.mrb[128].mxu0  ;;  %v1950_v62 = vpack.c.bf16 %v6898_v24, %v6890_v49 }
 0x215   : > { %v1576_v19 = vadd.f32 %v1575_v6, %v6210_v57  ;;  %v1577_v55 = vpop.f32.mrb[129].mxu0  ;;  %v1951_v30 = vpack.c.bf16 %v5097_v50, %v5093_v35 }
 0x216   : > { %2881 = vmatpush1.bf16.msra.mxu1 %v7565_v61  ;;  %v1578_v40 = vadd.f32 %v1577_v55, %v6210_v57  ;;  %v1579_v1 = vpop.f32.mrb[130].mxu0 }
 0x217   : > { %2882 = vmatprep.subr.bf16.mxu1 %v7566_v23  ;;  %5106 = vtanh.f32 %v1576_v19  ;;  %v1580_v60 = vadd.f32 %v1579_v1, %v6212_v8  ;;  %v1581_v26 = vpop.f32.mrb[131].mxu0 }
 0x218   : > { %5108 = vtanh.f32 %v1578_v40  ;;  %v1582_v48 = vadd.f32 %v1581_v26, %v6212_v8 }
 0x219   : > { %4171 = vmatmul.mubr.msk.bf16.gmra.mrb[104].mxu1 %vm874_vm0, %v6896_v52  ;;  %v5099_v57 = vpop.eup %5098  ;;  %5110 = vtanh.f32 %v1580_v60 }
 0x21a   : > { %4179 = vmatmul.mubr.msk.bf16.gmra.mrb[160].mxu0 %vm874_vm0, %v6820_v63  ;;  %2883 = vmatpush1.bf16.msra.mxu1 %v7567_v25  ;;  %v5101_v36 = vpop.eup %5100  ;;  %5112 = vtanh.f32 %v1582_v48 }
 0x21b   : > { %2884 = vmatprep.subr.bf16.mxu1 %v1933_v2  ;;  %2549 = vmatprep.mubr.bf16.mxu1 %v7518_v58  ;;  %v5103_v33 = vpop.eup %5102 }
 0x21c   : > { %2795 = vmatprep.mubr.bf16.mxu0 %v7518_v58  ;;  %v5105_v16 = vpop.eup %5104  ;;  %v1585_v8 = vpop.f32.mrb[132].mxu0  ;;  %v1956_v27 = vpack.c.bf16 %v5103_v33, %v5099_v57 }
 0x21d   : > { %v1586_v2 = vadd.f32 %v1585_v8, %v6214_v51  ;;  %v1587_v12 = vpop.f32.mrb[133].mxu0  ;;  %v1957_v29 = vpack.c.bf16 %v5105_v16, %v5101_v36  ;;  %v7569_v16 = vld [vmem:[#allocation7_spill] sm:$0xff] }
 0x21e   : > { %2885 = vmatpush1.bf16.msra.mxu1 %v1932_v45  ;;  %v1588_v47 = vadd.f32 %v1587_v12, %v6214_v51  ;;  %v1589_v43 = vpop.f32.mrb[134].mxu0 }
 0x21f   : > { %2886 = vmatprep.subr.bf16.mxu1 %v1939_v14  ;;  %5114 = vtanh.f32 %v1586_v2  ;;  %v1590_v56 = vadd.f32 %v1589_v43, %v6219_v15  ;;  %v1591_v13 = vpop.f32.mrb[135].mxu0 }
 0x220   : > { %5116 = vtanh.f32 %v1588_v47  ;;  %v1592_v45 = vadd.f32 %v1591_v13, %v6219_v15  ;;  %v6999_v47 = vld [vmem:[%s7464_s3 + $0xe0] ss:$12 sps:$4 sm:$0xff]  }
 0x221   : > { %4172 = vmatmul.mubr.msk.bf16.gmra.mrb[108].mxu1 %vm874_vm0, %v6927_v41  ;;  %v5107_v18 = vpop.eup %5106  ;;  %5118 = vtanh.f32 %v1590_v56 }
 0x222   : > { %4180 = vmatmul.mubr.msk.bf16.gmra.mrb[164].mxu0 %vm874_vm0, %v6859_v20  ;;  %2887 = vmatpush1.bf16.msra.mxu1 %v1938_v34  ;;  %v5109_v51 = vpop.eup %5108  ;;  %5120 = vtanh.f32 %v1592_v45 }
 0x223   : > { %2888 = vmatprep.subr.bf16.mxu1 %v1945_v0  ;;  %2559 = vmatprep.mubr.bf16.mxu1 %v7518_v58  ;;  %v5111_v4 = vpop.eup %5110 }
 0x224   : > { %2805 = vmatprep.mubr.bf16.mxu0 %v7518_v58  ;;  %v5113_v17 = vpop.eup %5112  ;;  %v1595_v15 = vpop.f32.mrb[136].mxu0  ;;  %v1962_v34 = vpack.c.bf16 %v5111_v4, %v5107_v18  ;;  %v7570_v18 = vld [vmem:[#allocation8_spill] sm:$0xff] }
 0x225   : > { %v1596_v14 = vadd.f32 %v1595_v15, %v6221_v53  ;;  %v1597_v0 = vpop.f32.mrb[137].mxu0  ;;  %v1963_v59 = vpack.c.bf16 %v5113_v17, %v5109_v51 }
 0x226   : > { %2889 = vmatpush1.bf16.msra.mxu1 %v1944_v31  ;;  %v1598_v10 = vadd.f32 %v1597_v0, %v6221_v53  ;;  %v1599_v9 = vpop.f32.mrb[138].mxu0 }
 0x227   : > { %2890 = vmatprep.subr.bf16.mxu1 %v1951_v30  ;;  %5122 = vtanh.f32 %v1596_v14  ;;  %v1600_v3 = vadd.f32 %v1599_v9, %v6226_v22  ;;  %v1601_v28 = vpop.f32.mrb[139].mxu0  ;;  %v6984_v30 = vld [vmem:[%s7464_s3 + $0xc8] ss:$12 sps:$4 sm:$0xff]  }
 0x228   : > { %5124 = vtanh.f32 %v1598_v10  ;;  %v1602_v31 = vadd.f32 %v1601_v28, %v6226_v22  ;;  %v7571_v14 = vld [vmem:[#allocation9_spill] sm:$0xff] }
 0x229   : > { %4173 = vmatmul.mubr.msk.bf16.gmra.mrb[112].mxu1 %vm874_vm0, %v6951_v44  ;;  %v5115_v38 = vpop.eup %5114  ;;  %5126 = vtanh.f32 %v1600_v3  ;;  %v5516_v10 = vld [vmem:[%s7464_s3 + $0x4] ss:$12 sps:$4 sm:$0xff]  }
 0x22a   : > { %4181 = vmatmul.mubr.msk.bf16.gmra.mrb[168].mxu0 %vm874_vm0, %v6896_v52  ;;  %2891 = vmatpush1.bf16.msra.mxu1 %v1950_v62  ;;  %v5117_v53 = vpop.eup %5116  ;;  %5128 = vtanh.f32 %v1602_v31 }
 0x22b   : > { %2892 = vmatprep.subr.bf16.mxu1 %v1957_v29  ;;  %2569 = vmatprep.mubr.bf16.mxu1 %v7518_v58  ;;  %v5119_v7 = vpop.eup %5118 }
 0x22c   : > { %2815 = vmatprep.mubr.bf16.mxu0 %v7518_v58  ;;  %v5121_v32 = vpop.eup %5120  ;;  %v1605_v49 = vpop.f32.mrb[140].mxu0  ;;  %v1968_v35 = vpack.c.bf16 %v5119_v7, %v5115_v38 }
 0x22d   : > { %v1606_v22 = vadd.f32 %v1605_v49, %v6228_v54  ;;  %v1607_v24 = vpop.f32.mrb[141].mxu0  ;;  %v1969_v61 = vpack.c.bf16 %v5121_v32, %v5117_v53  ;;  %v5517_v32 = vld [vmem:[%s7464_s3] ss:$12 sps:$4 sm:$0xff]  }
 0x22e   : > { %2893 = vmatpush1.bf16.msra.mxu1 %v1956_v27  ;;  %v1608_v50 = vadd.f32 %v1607_v24, %v6228_v54  ;;  %v1609_v23 = vpop.f32.mrb[142].mxu0 }
 0x22f   : > { %2894 = vmatprep.subr.bf16.mxu1 %v1963_v59  ;;  %5130 = vtanh.f32 %v1606_v22  ;;  %v1610_v6 = vadd.f32 %v1609_v23, %v7522_v21  ;;  %v1611_v62 = vpop.f32.mrb[143].mxu0 }
 0x230   : > { %5132 = vtanh.f32 %v1608_v50  ;;  %v1612_v19 = vadd.f32 %v1611_v62, %v7522_v21  ;;  %v7568_v21 = vld [vmem:[#allocation6_spill] sm:$0xff]  ;;  %v5520_v62 = vld [vmem:[%s7464_s3 + $0x34] ss:$12 sps:$4 sm:$0xff]  }
 0x231   : > { %4174 = vmatmul.mubr.msk.bf16.gmra.mrb[116].mxu1 %vm874_vm0, %v6969_v42  ;;  %v5123_v55 = vpop.eup %5122  ;;  %5134 = vtanh.f32 %v1610_v6  ;;  %v5519_v6 = vld [vmem:[%s7464_s3 + $0x18] ss:$12 sps:$4 sm:$0xff]  }
 0x232   : > { %4182 = vmatmul.mubr.msk.bf16.gmra.mrb[172].mxu0 %vm874_vm0, %v6927_v41  ;;  %2895 = vmatpush1.bf16.msra.mxu1 %v1962_v34  ;;  %v5125_v54 = vpop.eup %5124  ;;  %5136 = vtanh.f32 %v1612_v19  ;;  %v5521_v19 = vld [vmem:[%s7464_s3 + $0x30] ss:$12 sps:$4 sm:$0xff]  }
 0x233   : > { %2896 = vmatprep.subr.bf16.mxu1 %v1969_v61  ;;  %2579 = vmatprep.mubr.bf16.mxu1 %v7518_v58  ;;  %v5127_v40 = vpop.eup %5126 }
 0x234   : > { %2825 = vmatprep.mubr.bf16.mxu0 %v7518_v58  ;;  %v5129_v1 = vpop.eup %5128  ;;  %v1974_v60 = vpack.c.bf16 %v5127_v40, %v5123_v55  ;;  %v5522_v55 = vld [vmem:[%s7464_s3 + $0x4c] ss:$12 sps:$4 sm:$0xff]   ;;  %v7573_v40 = vld [vmem:[#allocation3_spill] sm:$0xff] }
 0x235   : > { %v1615_v25 = vpop.f32.mrb[144].mxu0  ;;  %v1975_v57 = vpack.c.bf16 %v5129_v1, %v5125_v54  ;;  %v7572_v54 = vld [vmem:[#allocation5_spill] sm:$0xff]  ;;  %v7574_v1 = vld [vmem:[#allocation4_spill] sm:$0xff] }
 0x236   : > { %2897 = vmatpush1.bf16.msra.mxu1 %v1968_v35  ;;  %v1616_v26 = vadd.f32 %v1615_v25, %v7568_v21  ;;  %v1617_v48 = vpop.f32.mrb[145].mxu0  ;;  %v5518_v35 = vld [vmem:[%s7464_s3 + $0x1c] ss:$12 sps:$4 sm:$0xff]   ;;  %v7575_v25 = vld [vmem:[#allocation13_spill] sm:$0xff] }
 0x237   : > { %v1618_v36 = vadd.f32 %v1617_v48, %v7568_v21  ;;  %v1619_v33 = vpop.f32.mrb[146].mxu0  ;;  %2999 = vmatprep.subr.bf16.mxu1 %v1975_v57  ;;  %v7577_v21 = vld [vmem:[#allocation12_spill] sm:$0xff]  ;;  %v7579_v48 = vld [vmem:[#allocation17_spill] sm:$0xff]  ;;  %v7580_v57 = vld [vmem:[#allocation15_spill] sm:$0xff] }
 0x238   : > { %5138 = vtanh.f32 %v1616_v26  ;;  %v1620_v8 = vadd.f32 %v1619_v33, %v7569_v16  ;;  %v1621_v27 = vpop.f32.mrb[147].mxu0  ;;  %v7578_v26 = vld [vmem:[#allocation10_spill] sm:$0xff] }
 0x239   : > { %4175 = vmatmul.mubr.msk.bf16.gmra.mrb[120].mxu1 %vm874_vm0, %v6984_v30  ;;  %5140 = vtanh.f32 %v1618_v36  ;;  %v1622_v2 = vadd.f32 %v1621_v27, %v7569_v16  ;;  %v5131_v12 = vpop.eup %5130  ;;  %v7581_v36 = vld [vmem:[#allocation16_spill] sm:$0xff] }
 0x23a   : > { %4183 = vmatmul.mubr.msk.bf16.gmra.mrb[176].mxu0 %vm874_vm0, %v6951_v44  ;;  %2589 = vmatprep.mubr.bf16.mxu1 %v7518_v58  ;;  %5142 = vtanh.f32 %v1620_v8  ;;  %v5133_v29 = vpop.eup %5132 }
 0x23b   : > { %2835 = vmatprep.mubr.bf16.mxu0 %v7518_v58  ;;  %5144 = vtanh.f32 %v1622_v2  ;;  %v5135_v43 = vpop.eup %5134 }
 0x23c   : > { %v5137_v56 = vpop.eup %5136  ;;  %v1980_v45 = vpack.c.bf16 %v5135_v43, %v5131_v12 }
 0x23d   : > { %v1625_v13 = vpop.f32.mrb[148].mxu0  ;;  %v1981_v17 = vpack.c.bf16 %v5137_v56, %v5133_v29 }
 0x23e   : > { %v1626_v51 = vadd.f32 %v1625_v13, %v7570_v18  ;;  %v1627_v4 = vpop.f32.mrb[149].mxu0 }
 0x23f   : > { %v1628_v15 = vadd.f32 %v1627_v4, %v7570_v18  ;;  %v1629_v34 = vpop.f32.mrb[150].mxu0 }
 0x240   : > { %5146 = vtanh.f32 %v1626_v51  ;;  %v1630_v0 = vadd.f32 %v1629_v34, %v7571_v14  ;;  %v1631_v59 = vpop.f32.mrb[151].mxu0 }
 0x241   : > { %4176 = vmatmul.mubr.msk.bf16.gmra.mrb[124].mxu1 %vm874_vm0, %v6999_v47  ;;  %5148 = vtanh.f32 %v1628_v15  ;;  %v1632_v9 = vadd.f32 %v1631_v59, %v7571_v14 }
 0x242   : > { %4184 = vmatmul.mubr.msk.bf16.gmra.mrb[180].mxu0 %vm874_vm0, %v6969_v42  ;;  %2898 = vmatprep.mubr.bf16.mxu1 %v5516_v10  ;;  %v5139_v3 = vpop.eup %5138  ;;  %5150 = vtanh.f32 %v1630_v0 }
 0x243   : > { %2845 = vmatprep.mubr.bf16.mxu0 %v7518_v58  ;;  %v5141_v28 = vpop.eup %5140  ;;  %5152 = vtanh.f32 %v1632_v9 }
 0x244   : > { %v5143_v31 = vpop.eup %5142 }
 0x245   : > { %v5145_v38 = vpop.eup %5144  ;;  %v1986_v53 = vpack.c.bf16 %v5143_v31, %v5139_v3 }
 0x246   : > { %v1987_v7 = vpack.c.bf16 %v5145_v38, %v5141_v28 }
 0x249   : > { %2899 = vmatmul.mubr.bf16.vlgmr.msra.gmra.mrb[128].mxu1 %v5517_v32 }
 0x24a   : > { %4185 = vmatmul.mubr.msk.bf16.gmra.mrb[184].mxu0 %vm874_vm0, %v6984_v30  ;;  %3000 = vmatpush1.bf16.msra.mxu1 %v1974_v60  ;;  %v5147_v49 = vpop.eup %5146  ;;  %v7576_v60 = vld [vmem:[#allocation11_spill] sm:$0xff] }
 0x24b   : > { %3001 = vmatprep.subr.bf16.mxu1 %v1981_v17  ;;  %2855 = vmatprep.mubr.bf16.mxu0 %v7518_v58  ;;  %v5149_v22 = vpop.eup %5148 }
 0x24c   : > { %2908 = vmatprep.mubr.bf16.mxu1 %v5518_v35  ;;  %v5151_v24 = vpop.eup %5150 }
 0x24d   : > { %v5153_v61 = vpop.eup %5152  ;;  %v1992_v50 = vpack.c.bf16 %v5151_v24, %v5147_v49 }
 0x24e   : > { %3002 = vmatpush1.bf16.msra.mxu1 %v1980_v45  ;;  %v1993_v23 = vpack.c.bf16 %v5153_v61, %v5149_v22 }
 0x24f   : > { %3003 = vmatprep.subr.bf16.mxu1 %v1987_v7 }
 0x251   : > { %2909 = vmatmul.mubr.bf16.gmra.mrb[132].mxu1 %v5519_v6 }
 0x252   : > { %4186 = vmatmul.mubr.msk.bf16.gmra.mrb[188].mxu0 %vm874_vm0, %v6999_v47  ;;  %3004 = vmatpush1.bf16.msra.mxu1 %v1986_v53 }
 0x253   : > { %3005 = vmatprep.subr.bf16.mxu1 %v1993_v23  ;;  %2918 = vmatprep.mubr.bf16.mxu1 %v5520_v62 }
 0x256   : > { %3006 = vmatpush1.bf16.msra.mxu1 %v1992_v50 }
 0x259   : > { %2919 = vmatmul.mubr.bf16.gmra.mrb[136].mxu1 %v5521_v19 }
 0x25a   : > { %2928 = vmatprep.mubr.bf16.mxu1 %v5522_v55 }
 0x261   : > { %2929 = vmatmul.mubr.bf16.gmra.mrb[140].mxu1 %v7572_v54 }
 0x262   : > { %2938 = vmatprep.mubr.bf16.mxu1 %v7573_v40 }
 0x269   : > { %2939 = vmatmul.mubr.bf16.gmra.mrb[144].mxu1 %v7574_v1 }
 0x26a   : > { %2948 = vmatprep.mubr.bf16.mxu1 %v7575_v25 }
 0x271   : > { %2949 = vmatmul.mubr.bf16.gmra.mrb[148].mxu1 %v7576_v60 }
 0x272   : > { %2958 = vmatprep.mubr.bf16.mxu1 %v7577_v21 }
 0x279   : > { %2959 = vmatmul.mubr.bf16.gmra.mrb[152].mxu1 %v7578_v26 }
 0x27a   : > { %2968 = vmatprep.mubr.bf16.mxu1 %v7579_v48 }
 0x281   : > { %2969 = vmatmul.mubr.bf16.gmra.mrb[156].mxu1 %v7580_v57 }
 0x282   : > { %2978 = vmatprep.mubr.bf16.mxu1 %v7581_v36 }
 0x289   : > { %2979 = vmatmul.mubr.bf16.gmra.mrb[160].mxu1 %v6695_v37  ;;  %v7062_v37 = vld [vmem:[%s7466_s5 + $0x4] ss:$8 sps:$4 sm:$0xff]  }
 0x28a   : > { %2988 = vmatprep.mubr.bf16.mxu1 %v6702_v5  ;;  %4207 = vmatprep.mubr.msk.bf16.mxu0 %vm3427_vm1, %v7062_v37  ;;  %v7078_v5 = vpop.permute.xlu0 %2056 }
 0x28e   : > { %v7089_v16 = vpop.permute.xlu0 %2066 }
 0x291   : > { %2989 = vmatmul.mubr.bf16.gmra.mrb[164].mxu1 %v6725_v39 }
 0x292   : > { %3031 = vmatprep.mubr.bf16.mxu1 %v7518_v58  ;;  %v7102_v15 = vpop.permute.xlu0 %2076 }
 0x296   : > { %v7118_v62 = vpop.permute.xlu0 %2086 }
 0x299   : > { %4187 = vmatmul.mubr.msk.bf16.vlgmr.msra.gmra.mrb[128].mxu1 %vm874_vm0, %v6750_v46 }
 0x29a   : > { %3041 = vmatprep.mubr.bf16.mxu1 %v7518_v58 }
 0x2a1   : > { %4188 = vmatmul.mubr.msk.bf16.gmra.mrb[132].mxu1 %vm874_vm0, %v6782_v11 }
 0x2a2   : > { %3051 = vmatprep.mubr.bf16.mxu1 %v7518_v58 }
 0x2a9   : > { %4189 = vmatmul.mubr.msk.bf16.gmra.mrb[136].mxu1 %vm874_vm0, %v6820_v63  ;;  %v7081_v63 = vpop.permute.xlu1 %2061 }
 0x2aa   : > { %3061 = vmatprep.mubr.bf16.mxu1 %v7518_v58 }
 0x2ad   : > { %v7091_v27 = vpop.permute.xlu1 %2071 }
 0x2b1   : > { %4190 = vmatmul.mubr.msk.bf16.gmra.mrb[140].mxu1 %vm874_vm0, %v6859_v20  ;;  %v7100_v4 = vpop.permute.xlu1 %2081 }
 0x2b2   : > { %3071 = vmatprep.mubr.bf16.mxu1 %v7518_v58 }
 0x2b5   : > { %v7116_v23 = vpop.permute.xlu1 %2091 }
 0x2b9   : > { %4191 = vmatmul.mubr.msk.bf16.gmra.mrb[144].mxu1 %vm874_vm0, %v6896_v52 }
 0x2ba   : > { %3081 = vmatprep.mubr.bf16.mxu1 %v7518_v58 }
 0x2c1   : > { %4192 = vmatmul.mubr.msk.bf16.gmra.mrb[148].mxu1 %vm874_vm0, %v6927_v41 }
 0x2c2   : > { %3091 = vmatprep.mubr.bf16.mxu1 %v7518_v58 }
 0x2c9   : > { %4193 = vmatmul.mubr.msk.bf16.gmra.mrb[152].mxu1 %vm874_vm0, %v6951_v44 }
 0x2ca   : > { %3101 = vmatprep.mubr.bf16.mxu1 %v7518_v58 }
 0x2cc   : > { %v2501_v39 = vpop.f32.mrb[88].mxu1 }
 0x2cd   : > { %v4293_v46 = vadd.f32 %v2501_v39, %v7078_v5  ;;  %v2503_v11 = vpop.f32.mrb[89].mxu1 }
 0x2ce   : > { %v4294_v20 = vadd.f32 %v2503_v11, %v7078_v5  ;;  %v2505_v52 = vpop.f32.mrb[90].mxu1 }
 0x2cf   : > { %5154 = vtanh.f32 %v4293_v46  ;;  %v4295_v41 = vadd.f32 %v2505_v52, %v7081_v63  ;;  %v2507_v33 = vpop.f32.mrb[91].mxu1 }
 0x2d0   : > { %5156 = vtanh.f32 %v4294_v20  ;;  %v4296_v44 = vadd.f32 %v2507_v33, %v7081_v63 }
 0x2d1   : > { %5158 = vtanh.f32 %v4295_v41  ;;  %4194 = vmatmul.mubr.msk.bf16.gmra.mrb[156].mxu1 %vm874_vm0, %v6969_v42 }
 0x2d2   : > { %5160 = vtanh.f32 %v4296_v44  ;;  %3111 = vmatprep.mubr.bf16.mxu1 %v7518_v58 }
 0x2d4   : > { %v2511_v8 = vpop.f32.mrb[92].mxu1 }
 0x2d5   : > { %v4297_v2 = vadd.f32 %v2511_v8, %v7089_v16  ;;  %v2513_v12 = vpop.f32.mrb[93].mxu1  ;;  %v7128_v8 = vpop.permute.xlu1 %2101 }
 0x2d6   : > { %v4298_v29 = vadd.f32 %v2513_v12, %v7089_v16  ;;  %v2515_v43 = vpop.f32.mrb[94].mxu1  ;;  %v7130_v12 = vpop.permute.xlu0 %2096 }
 0x2d7   : > { %5162 = vtanh.f32 %v4297_v2  ;;  %v4299_v56 = vadd.f32 %v2515_v43, %v7091_v27  ;;  %v2517_v13 = vpop.f32.mrb[95].mxu1 }
 0x2d8   : > { %5164 = vtanh.f32 %v4298_v29  ;;  %v4300_v42 = vadd.f32 %v2517_v13, %v7091_v27 }
 0x2d9   : > { %v5155_v45 = vpop.eup %5154  ;;  %5166 = vtanh.f32 %v4299_v56  ;;  %4195 = vmatmul.mubr.msk.bf16.gmra.mrb[160].mxu1 %vm874_vm0, %v6984_v30 }
 0x2da   : > { %v5157_v18 = vpop.eup %5156  ;;  %5168 = vtanh.f32 %v4300_v42  ;;  %3121 = vmatprep.mubr.bf16.mxu1 %v7518_v58 }
 0x2db   : > { %v5159_v51 = vpop.eup %5158 }
 0x2dc   : > { %v5161_v17 = vpop.eup %5160  ;;  %v2521_v34 = vpop.f32.mrb[96].mxu1  ;;  %v3252_v14 = vpack.c.bf16 %v5159_v51, %v5155_v45 }
 0x2dd   : > { %v4301_v0 = vadd.f32 %v2521_v34, %v7102_v15  ;;  %v2767_v59 = vpop.f32.mrb[152].mxu0  ;;  %v2523_v10 = vpop.f32.mrb[97].mxu1  ;;  %v3253_v9 = vpack.c.bf16 %v5161_v17, %v5157_v18 }
 0x2de   : > { %v4333_v3 = vadd.f32 %v2767_v59, %v7078_v5  ;;  %v4302_v30 = vadd.f32 %v2523_v10, %v7102_v15  ;;  %v2769_v28 = vpop.f32.mrb[153].mxu0  ;;  %v2525_v31 = vpop.f32.mrb[98].mxu1 }
 0x2df   : > { %5170 = vtanh.f32 %v4301_v0  ;;  %v4334_v58 = vadd.f32 %v2769_v28, %v7078_v5  ;;  %v4303_v38 = vadd.f32 %v2525_v31, %v7100_v4  ;;  %v2771_v53 = vpop.f32.mrb[154].mxu0  ;;  %v2527_v7 = vpop.f32.mrb[99].mxu1  ;;  %3443 = vmatprep.subr.bf16.mxu0 %v3253_v9 }
 0x2e0   : > { %5172 = vtanh.f32 %v4333_v3  ;;  %v4335_v32 = vadd.f32 %v2771_v53, %v7081_v63  ;;  %v2773_v49 = vpop.f32.mrb[155].mxu0  ;;  %3444 = vmatpush1.bf16.msra.mxu0 %v3252_v14  ;;  %v4304_v22 = vadd.f32 %v2527_v7, %v7100_v4 }
 0x2e1   : > { %v5163_v35 = vpop.eup %5162  ;;  %5174 = vtanh.f32 %v4302_v30  ;;  %4196 = vmatmul.mubr.msk.bf16.gmra.mrb[164].mxu1 %vm874_vm0, %v6999_v47  ;;  %v4336_v61 = vadd.f32 %v2773_v49, %v7081_v63 }
 0x2e2   : > { %v5165_v24 = vpop.eup %5164  ;;  %5176 = vtanh.f32 %v4334_v58  ;;  %4212 = vmatprep.mubr.msk.bf16.mxu1 %vm3427_vm1, %v7062_v37 }
 0x2e3   : > { %v5167_v50 = vpop.eup %5166  ;;  %5178 = vtanh.f32 %v4303_v38 }
 0x2e4   : > { %v5169_v6 = vpop.eup %5168  ;;  %5180 = vtanh.f32 %v4335_v32  ;;  %v2531_v19 = vpop.f32.mrb[100].mxu1  ;;  %v3258_v55 = vpack.c.bf16 %v5167_v50, %v5163_v35 }
 0x2e5   : > { %5182 = vtanh.f32 %v4304_v22  ;;  %v4305_v47 = vadd.f32 %v2531_v19, %v7118_v62  ;;  %v2777_v54 = vpop.f32.mrb[156].mxu0  ;;  %v2533_v40 = vpop.f32.mrb[101].mxu1  ;;  %v3259_v1 = vpack.c.bf16 %v5169_v6, %v5165_v24 }
 0x2e6   : > { %5184 = vtanh.f32 %v4336_v61  ;;  %v4337_v25 = vadd.f32 %v2777_v54, %v7089_v16  ;;  %v4306_v60 = vadd.f32 %v2533_v40, %v7118_v62  ;;  %v2779_v21 = vpop.f32.mrb[157].mxu0  ;;  %v2535_v26 = vpop.f32.mrb[102].mxu1 }
 0x2e7   : > { %5186 = vtanh.f32 %v4305_v47  ;;  %v4338_v48 = vadd.f32 %v2779_v21, %v7089_v16  ;;  %v4307_v57 = vadd.f32 %v2535_v26, %v7116_v23  ;;  %v2781_v36 = vpop.f32.mrb[158].mxu0  ;;  %v2537_v39 = vpop.f32.mrb[103].mxu1  ;;  %3445 = vmatprep.subr.bf16.mxu0 %v3259_v1 }
 0x2e8   : > { %5188 = vtanh.f32 %v4337_v25  ;;  %v4339_v46 = vadd.f32 %v2781_v36, %v7091_v27  ;;  %v2783_v11 = vpop.f32.mrb[159].mxu0  ;;  %3446 = vmatpush1.bf16.msra.mxu0 %v3258_v55  ;;  %v4308_v52 = vadd.f32 %v2537_v39, %v7116_v23  ;;  %v7140_v24 = vpop.permute.xlu1 %2111 }
 0x2e9   : > { %v5171_v20 = vpop.eup %5170  ;;  %5190 = vtanh.f32 %v4306_v60  ;;  %v4340_v33 = vadd.f32 %v2783_v11, %v7091_v27  ;;  %v7142_v50 = vpop.permute.xlu0 %2106 }
 0x2ea   : > { %v5173_v41 = vpop.eup %5172  ;;  %5192 = vtanh.f32 %v4338_v48 }
 0x2eb   : > { %v5175_v44 = vpop.eup %5174  ;;  %5194 = vtanh.f32 %v4307_v57 }
 0x2ec   : > { %v5177_v2 = vpop.eup %5176  ;;  %5196 = vtanh.f32 %v4339_v46  ;;  %v2541_v29 = vpop.f32.mrb[104].mxu1 }
 0x2ed   : > { %v5179_v43 = vpop.eup %5178  ;;  %5198 = vtanh.f32 %v4308_v52  ;;  %v4309_v56 = vadd.f32 %v2541_v29, %v7130_v12  ;;  %v2787_v13 = vpop.f32.mrb[160].mxu0 }
 0x2ee   : > { %v2543_v42 = vpop.f32.mrb[105].mxu1  ;;  %v5181_v45 = vpop.eup %5180  ;;  %5200 = vtanh.f32 %v4340_v33  ;;  %v4341_v18 = vadd.f32 %v2787_v13, %v7102_v15  ;;  %v3264_v14 = vpack.c.bf16 %v5179_v43, %v5171_v20 }
 0x2ef   : > { %v4310_v51 = vadd.f32 %v2543_v42, %v7130_v12  ;;  %v2789_v17 = vpop.f32.mrb[161].mxu0  ;;  %v2545_v34 = vpop.f32.mrb[106].mxu1  ;;  %5202 = vtanh.f32 %v4309_v56  ;;  %v3254_v30 = vpack.c.bf16 %v5181_v45, %v5173_v41 }
 0x2f0   : > { %v5183_v0 = vpop.eup %5182  ;;  %v4342_v59 = vadd.f32 %v2789_v17, %v7102_v15  ;;  %v4311_v10 = vadd.f32 %v2545_v34, %v7128_v8  ;;  %v2791_v9 = vpop.f32.mrb[162].mxu0  ;;  %5204 = vtanh.f32 %v4341_v18 }
 0x2f1   : > { %v2547_v3 = vpop.f32.mrb[107].mxu1  ;;  %v5185_v28 = vpop.eup %5184  ;;  %v4343_v31 = vadd.f32 %v2791_v9, %v7100_v4  ;;  %v3265_v38 = vpack.c.bf16 %v5183_v0, %v5175_v44  ;;  %5206 = vtanh.f32 %v4310_v51 }
 0x2f2   : > { %v2793_v58 = vpop.f32.mrb[163].mxu0  ;;  %v5187_v53 = vpop.eup %5186  ;;  %v4312_v7 = vadd.f32 %v2547_v3, %v7128_v8  ;;  %v3255_v32 = vpack.c.bf16 %v5185_v28, %v5177_v2  ;;  %5208 = vtanh.f32 %v4342_v59 }
 0x2f3   : > { %v5189_v49 = vpop.eup %5188  ;;  %v4344_v35 = vadd.f32 %v2793_v58, %v7100_v4  ;;  %3447 = vmatprep.subr.bf16.mxu0 %v3265_v38  ;;  %5210 = vtanh.f32 %v4311_v10  ;;  %v7152_v42 = vpop.permute.xlu1 %2121 }
 0x2f4   : > { %v5191_v22 = vpop.eup %5190  ;;  %3526 = vmatprep.subr.bf16.mxu1 %v3255_v32  ;;  %3448 = vmatpush1.bf16.msra.mxu0 %v3264_v14  ;;  %5212 = vtanh.f32 %v4343_v31  ;;  %v2551_v6 = vpop.f32.mrb[108].mxu1 }
 0x2f5   : > { %v5193_v61 = vpop.eup %5192  ;;  %3527 = vmatpush1.bf16.msra.mxu1 %v3254_v30  ;;  %5214 = vtanh.f32 %v4312_v7  ;;  %v4313_v55 = vadd.f32 %v2551_v6, %v7142_v50  ;;  %v2797_v47 = vpop.f32.mrb[164].mxu0 }
 0x2f6   : > { %v5195_v19 = vpop.eup %5194  ;;  %v2553_v54 = vpop.f32.mrb[109].mxu1  ;;  %5216 = vtanh.f32 %v4344_v35  ;;  %v4345_v1 = vadd.f32 %v2797_v47, %v7118_v62 }
 0x2f7   : > { %v5197_v40 = vpop.eup %5196  ;;  %v4314_v25 = vadd.f32 %v2553_v54, %v7142_v50  ;;  %v2799_v60 = vpop.f32.mrb[165].mxu0  ;;  %v3270_v26 = vpack.c.bf16 %v5195_v19, %v5187_v53  ;;  %5218 = vtanh.f32 %v4313_v55 }
 0x2f8   : > { %v2555_v21 = vpop.f32.mrb[110].mxu1  ;;  %v5199_v48 = vpop.eup %5198  ;;  %v4346_v57 = vadd.f32 %v2799_v60, %v7118_v62  ;;  %v3260_v11 = vpack.c.bf16 %v5197_v40, %v5189_v49  ;;  %5220 = vtanh.f32 %v4345_v1 }
 0x2f9   : > { %v4315_v36 = vadd.f32 %v2555_v21, %v7140_v24  ;;  %v2801_v39 = vpop.f32.mrb[166].mxu0  ;;  %v2557_v46 = vpop.f32.mrb[111].mxu1  ;;  %v3271_v33 = vpack.c.bf16 %v5199_v48, %v5191_v22  ;;  %5222 = vtanh.f32 %v4314_v25 }
 0x2fa   : > { %v5201_v20 = vpop.eup %5200  ;;  %v4347_v52 = vadd.f32 %v2801_v39, %v7116_v23  ;;  %v2803_v41 = vpop.f32.mrb[167].mxu0  ;;  %v4316_v2 = vadd.f32 %v2557_v46, %v7140_v24  ;;  %5224 = vtanh.f32 %v4346_v57 }
 0x2fb   : > { %v5203_v44 = vpop.eup %5202  ;;  %v3261_v29 = vpack.c.bf16 %v5201_v20, %v5193_v61  ;;  %v4348_v56 = vadd.f32 %v2803_v41, %v7116_v23  ;;  %3449 = vmatprep.subr.bf16.mxu0 %v3271_v33  ;;  %5226 = vtanh.f32 %v4315_v36  ;;  %v7154_v18 = vpop.permute.xlu0 %2116 }
 0x2fc   : > { %v5205_v43 = vpop.eup %5204  ;;  %3450 = vmatpush1.bf16.msra.mxu0 %v3270_v26  ;;  %5228 = vtanh.f32 %v4347_v52  ;;  %v2561_v51 = vpop.f32.mrb[112].mxu1 }
 0x2fd   : > { %v5207_v13 = vpop.eup %5206  ;;  %3528 = vmatprep.subr.bf16.mxu1 %v3261_v29  ;;  %5230 = vtanh.f32 %v4316_v2  ;;  %v4317_v34 = vadd.f32 %v2561_v51, %v7154_v18  ;;  %v2807_v14 = vpop.f32.mrb[168].mxu0 }
 0x2fe   : > { %v5209_v45 = vpop.eup %5208  ;;  %3529 = vmatpush1.bf16.msra.mxu1 %v3260_v11  ;;  %v2563_v0 = vpop.f32.mrb[113].mxu1  ;;  %5232 = vtanh.f32 %v4348_v56  ;;  %v4349_v10 = vadd.f32 %v2807_v14, %v7130_v12 }
 0x2ff   : > { %v5211_v17 = vpop.eup %5210  ;;  %v4318_v9 = vadd.f32 %v2563_v0, %v7154_v18  ;;  %v2809_v3 = vpop.f32.mrb[169].mxu0  ;;  %5234 = vtanh.f32 %v4317_v34 }
 0x300   : > { %v5213_v59 = vpop.eup %5212  ;;  %v2565_v30 = vpop.f32.mrb[114].mxu1  ;;  %v3276_v28 = vpack.c.bf16 %v5211_v17, %v5203_v44  ;;  %v4350_v58 = vadd.f32 %v2809_v3, %v7130_v12  ;;  %5236 = vtanh.f32 %v4349_v10 }
 0x301   : > { %v5215_v31 = vpop.eup %5214  ;;  %v4319_v38 = vadd.f32 %v2565_v30, %v7152_v42  ;;  %v2811_v53 = vpop.f32.mrb[170].mxu0  ;;  %v3266_v32 = vpack.c.bf16 %v5213_v59, %v5205_v43  ;;  %5238 = vtanh.f32 %v4318_v9 }
 0x302   : > { %v2567_v7 = vpop.f32.mrb[115].mxu1  ;;  %v5217_v49 = vpop.eup %5216  ;;  %v4351_v35 = vadd.f32 %v2811_v53, %v7128_v8  ;;  %v3277_v61 = vpack.c.bf16 %v5215_v31, %v5207_v13  ;;  %5240 = vtanh.f32 %v4350_v58 }
 0x303   : > { %v2813_v22 = vpop.f32.mrb[171].mxu0  ;;  %v5219_v6 = vpop.eup %5218  ;;  %v4320_v19 = vadd.f32 %v2567_v7, %v7152_v42  ;;  %v3267_v55 = vpack.c.bf16 %v5217_v49, %v5209_v45  ;;  %5242 = vtanh.f32 %v4319_v38 }
 0x304   : > { %v5221_v47 = vpop.eup %5220  ;;  %v4352_v54 = vadd.f32 %v2813_v22, %v7128_v8  ;;  %3451 = vmatprep.subr.bf16.mxu0 %v3277_v61  ;;  %v7164_v1 = vpop.permute.xlu1 %2131  ;;  %5244 = vtanh.f32 %v4351_v35 }
 0x305   : > { %v5223_v40 = vpop.eup %5222  ;;  %3530 = vmatprep.subr.bf16.mxu1 %v3267_v55  ;;  %3452 = vmatpush1.bf16.msra.mxu0 %v3276_v28  ;;  %v7166_v60 = vpop.permute.xlu0 %2126  ;;  %5246 = vtanh.f32 %v4320_v19 }
 0x306   : > { %v5225_v25 = vpop.eup %5224  ;;  %3531 = vmatpush1.bf16.msra.mxu1 %v3266_v32  ;;  %v2571_v21 = vpop.f32.mrb[116].mxu1  ;;  %5248 = vtanh.f32 %v4352_v54 }
 0x307   : > { %v5227_v26 = vpop.eup %5226  ;;  %v4321_v48 = vadd.f32 %v2571_v21, %v7166_v60  ;;  %v2817_v57 = vpop.f32.mrb[172].mxu0 }
 0x308   : > { %v2573_v36 = vpop.f32.mrb[117].mxu1  ;;  %v5229_v39 = vpop.eup %5228  ;;  %v4353_v46 = vadd.f32 %v2817_v57, %v7142_v50  ;;  %v3282_v41 = vpack.c.bf16 %v5227_v26, %v5219_v6 }
 0x309   : > { %v4322_v11 = vadd.f32 %v2573_v36, %v7166_v60  ;;  %v2819_v20 = vpop.f32.mrb[173].mxu0  ;;  %v2575_v52 = vpop.f32.mrb[118].mxu1  ;;  %5250 = vtanh.f32 %v4321_v48  ;;  %v3272_v56 = vpack.c.bf16 %v5229_v39, %v5221_v47 }
 0x30a   : > { %v5231_v33 = vpop.eup %5230  ;;  %v4354_v44 = vadd.f32 %v2819_v20, %v7142_v50  ;;  %v4323_v2 = vadd.f32 %v2575_v52, %v7164_v1  ;;  %v2821_v29 = vpop.f32.mrb[174].mxu0  ;;  %5252 = vtanh.f32 %v4353_v46 }
 0x30b   : > { %v2577_v43 = vpop.f32.mrb[119].mxu1  ;;  %v5233_v13 = vpop.eup %5232  ;;  %v4355_v45 = vadd.f32 %v2821_v29, %v7140_v24  ;;  %v3283_v17 = vpack.c.bf16 %v5231_v33, %v5223_v40  ;;  %5254 = vtanh.f32 %v4322_v11 }
 0x30c   : > { %v2823_v51 = vpop.f32.mrb[175].mxu0  ;;  %v5235_v34 = vpop.eup %5234  ;;  %v4324_v14 = vadd.f32 %v2577_v43, %v7164_v1  ;;  %v3273_v0 = vpack.c.bf16 %v5233_v13, %v5225_v25  ;;  %5256 = vtanh.f32 %v4354_v44 }
 0x30d   : > { %v5237_v59 = vpop.eup %5236  ;;  %v4356_v10 = vadd.f32 %v2823_v51, %v7140_v24  ;;  %3453 = vmatprep.subr.bf16.mxu0 %v3283_v17  ;;  %v7176_v3 = vpop.permute.xlu1 %2141  ;;  %5258 = vtanh.f32 %v4323_v2 }
 0x30e   : > { %v5239_v9 = vpop.eup %5238  ;;  %3532 = vmatprep.subr.bf16.mxu1 %v3273_v0  ;;  %3454 = vmatpush1.bf16.msra.mxu0 %v3282_v41  ;;  %v7178_v28 = vpop.permute.xlu0 %2136  ;;  %5260 = vtanh.f32 %v4355_v45 }
 0x30f   : > { %v5241_v30 = vpop.eup %5240  ;;  %3533 = vmatpush1.bf16.msra.mxu1 %v3272_v56  ;;  %v2581_v31 = vpop.f32.mrb[120].mxu1  ;;  %5262 = vtanh.f32 %v4324_v14 }
 0x310   : > { %v5243_v58 = vpop.eup %5242  ;;  %v4325_v38 = vadd.f32 %v2581_v31, %v7178_v28  ;;  %v2827_v53 = vpop.f32.mrb[176].mxu0  ;;  %5264 = vtanh.f32 %v4356_v10 }
 0x311   : > { %v2583_v7 = vpop.f32.mrb[121].mxu1  ;;  %v5245_v32 = vpop.eup %5244  ;;  %v4357_v49 = vadd.f32 %v2827_v53, %v7154_v18  ;;  %v3288_v6 = vpack.c.bf16 %v5243_v58, %v5235_v34 }
 0x312   : > { %v4326_v35 = vadd.f32 %v2583_v7, %v7178_v28  ;;  %v2829_v22 = vpop.f32.mrb[177].mxu0  ;;  %v2585_v61 = vpop.f32.mrb[122].mxu1  ;;  %5266 = vtanh.f32 %v4325_v38  ;;  %v3278_v25 = vpack.c.bf16 %v5245_v32, %v5237_v59 }
 0x313   : > { %v5247_v19 = vpop.eup %5246  ;;  %v4358_v55 = vadd.f32 %v2829_v22, %v7154_v18  ;;  %v4327_v47 = vadd.f32 %v2585_v61, %v7176_v3  ;;  %v2831_v54 = vpop.f32.mrb[178].mxu0  ;;  %5268 = vtanh.f32 %v4357_v49 }
 0x314   : > { %v2587_v40 = vpop.f32.mrb[123].mxu1  ;;  %v5249_v21 = vpop.eup %5248  ;;  %v4359_v26 = vadd.f32 %v2831_v54, %v7152_v42  ;;  %v3289_v57 = vpack.c.bf16 %v5247_v19, %v5239_v9  ;;  %5270 = vtanh.f32 %v4326_v35 }
 0x315   : > { %v2833_v48 = vpop.f32.mrb[179].mxu0  ;;  %v5251_v36 = vpop.eup %5250  ;;  %v4328_v39 = vadd.f32 %v2587_v40, %v7176_v3  ;;  %v3279_v46 = vpack.c.bf16 %v5249_v21, %v5241_v30  ;;  %5272 = vtanh.f32 %v4358_v55 }
 0x316   : > { %v5253_v11 = vpop.eup %5252  ;;  %v4360_v20 = vadd.f32 %v2833_v48, %v7152_v42  ;;  %3455 = vmatprep.subr.bf16.mxu0 %v3289_v57  ;;  %v7188_v41 = vpop.permute.xlu1 %2151  ;;  %5274 = vtanh.f32 %v4327_v47 }
 0x317   : > { %v5255_v52 = vpop.eup %5254  ;;  %3534 = vmatprep.subr.bf16.mxu1 %v3279_v46  ;;  %3456 = vmatpush1.bf16.msra.mxu0 %v3288_v6  ;;  %v7190_v44 = vpop.permute.xlu0 %2146  ;;  %5276 = vtanh.f32 %v4359_v26 }
 0x318   : > { %v5257_v33 = vpop.eup %5256  ;;  %3535 = vmatpush1.bf16.msra.mxu1 %v3278_v25  ;;  %v2591_v2 = vpop.f32.mrb[124].mxu1  ;;  %5278 = vtanh.f32 %v4328_v39 }
 0x319   : > { %v5259_v29 = vpop.eup %5258  ;;  %v4329_v43 = vadd.f32 %v2591_v2, %v7190_v44  ;;  %v2837_v56 = vpop.f32.mrb[180].mxu0  ;;  %5280 = vtanh.f32 %v4360_v20 }
 0x31a   : > { %v2593_v13 = vpop.f32.mrb[125].mxu1  ;;  %v5261_v45 = vpop.eup %5260  ;;  %v4361_v51 = vadd.f32 %v2837_v56, %v7166_v60  ;;  %v3294_v0 = vpack.c.bf16 %v5259_v29, %v5251_v36 }
 0x31b   : > { %v4330_v17 = vadd.f32 %v2593_v13, %v7190_v44  ;;  %v2839_v34 = vpop.f32.mrb[181].mxu0  ;;  %v2595_v14 = vpop.f32.mrb[126].mxu1  ;;  %5282 = vtanh.f32 %v4329_v43  ;;  %v3284_v58 = vpack.c.bf16 %v5261_v45, %v5253_v11 }
 0x31c   : > { %v5263_v59 = vpop.eup %5262  ;;  %v4362_v10 = vadd.f32 %v2839_v34, %v7166_v60  ;;  %v4331_v9 = vadd.f32 %v2595_v14, %v7188_v41  ;;  %v2841_v30 = vpop.f32.mrb[182].mxu0  ;;  %5284 = vtanh.f32 %v4361_v51 }
 0x31d   : > { %v2597_v31 = vpop.f32.mrb[127].mxu1  ;;  %v5265_v38 = vpop.eup %5264  ;;  %v4363_v53 = vadd.f32 %v2841_v30, %v7164_v1  ;;  %v3295_v32 = vpack.c.bf16 %v5263_v59, %v5255_v52  ;;  %5286 = vtanh.f32 %v4330_v17 }
 0x31e   : > { %v2843_v7 = vpop.f32.mrb[183].mxu0  ;;  %v5267_v49 = vpop.eup %5266  ;;  %v4332_v35 = vadd.f32 %v2597_v31, %v7188_v41  ;;  %v3285_v22 = vpack.c.bf16 %v5265_v38, %v5257_v33  ;;  %5288 = vtanh.f32 %v4362_v10 }
 0x31f   : > { %v5269_v61 = vpop.eup %5268  ;;  %v4364_v6 = vadd.f32 %v2843_v7, %v7164_v1  ;;  %3457 = vmatprep.subr.bf16.mxu0 %v3295_v32  ;;  %5290 = vtanh.f32 %v4331_v9  ;;  %v2847_v54 = vpop.f32.mrb[184].mxu0 }
 0x320   : > { %v5271_v19 = vpop.eup %5270  ;;  %3536 = vmatprep.subr.bf16.mxu1 %v3285_v22  ;;  %3458 = vmatpush1.bf16.msra.mxu0 %v3294_v0  ;;  %5292 = vtanh.f32 %v4363_v53  ;;  %v4365_v25 = vadd.f32 %v2847_v54, %v7178_v28  ;;  %v2849_v21 = vpop.f32.mrb[185].mxu0 }
 0x321   : > { %v5273_v55 = vpop.eup %5272  ;;  %3537 = vmatpush1.bf16.msra.mxu1 %v3284_v58  ;;  %5294 = vtanh.f32 %v4332_v35  ;;  %v4366_v57 = vadd.f32 %v2849_v21, %v7178_v28  ;;  %v2851_v36 = vpop.f32.mrb[186].mxu0  ;;  %v7211_v35 = vld [vmem:[%s7466_s5] ss:$8 sps:$4 sm:$0xff]   ;;  %v7229_v21 = vld [vmem:[%s7466_s5 + $0x24] ss:$8 sps:$4 sm:$0xff]  }
 0x322   : > { %v5275_v47 = vpop.eup %5274  ;;  %5296 = vtanh.f32 %v4364_v6  ;;  %v4367_v11 = vadd.f32 %v2851_v36, %v7176_v3  ;;  %v2853_v20 = vpop.f32.mrb[187].mxu0 }
 0x323   : > { %v5277_v40 = vpop.eup %5276  ;;  %v3300_v26 = vpack.c.bf16 %v5275_v47, %v5267_v49  ;;  %5298 = vtanh.f32 %v4365_v25  ;;  %v4368_v2 = vadd.f32 %v2853_v20, %v7176_v3  ;;  %v7258_v20 = vld [vmem:[%s7466_s5 + $0x44] ss:$8 sps:$4 sm:$0xff]  }
 0x324   : > { %v5279_v48 = vpop.eup %5278  ;;  %v3290_v39 = vpack.c.bf16 %v5277_v40, %v5269_v61  ;;  %5300 = vtanh.f32 %v4366_v57  ;;  %v7216_v61 = vld [vmem:[%s7466_s5 + $0x14] ss:$8 sps:$4 sm:$0xff]   ;;  %v7224_v40 = vld [vmem:[%s7466_s5 + $0x10] ss:$8 sps:$4 sm:$0xff]  }
 0x325   : > { %v5281_v46 = vpop.eup %5280  ;;  %v3301_v52 = vpack.c.bf16 %v5279_v48, %v5271_v19  ;;  %5302 = vtanh.f32 %v4367_v11  ;;  %v2857_v51 = vpop.f32.mrb[188].mxu0  ;;  %v7253_v11 = vld [vmem:[%s7466_s5 + $0x30] ss:$8 sps:$4 sm:$0xff]  }
 0x326   : > { %v5283_v33 = vpop.eup %5282  ;;  %v3291_v29 = vpack.c.bf16 %v5281_v46, %v5273_v55  ;;  %5304 = vtanh.f32 %v4368_v2  ;;  %v4369_v34 = vadd.f32 %v2857_v51, %v7190_v44  ;;  %v2859_v14 = vpop.f32.mrb[189].mxu0  ;;  %v7242_v46 = vld [vmem:[%s7466_s5 + $0x34] ss:$8 sps:$4 sm:$0xff]  }
 0x327   : > { %v5285_v43 = vpop.eup %5284  ;;  %3459 = vmatprep.subr.bf16.mxu0 %v3301_v52  ;;  %v4370_v10 = vadd.f32 %v2859_v14, %v7190_v44  ;;  %v2861_v9 = vpop.f32.mrb[190].mxu0  ;;  %v7269_v52 = vld [vmem:[%s7466_s5 + $0x40] ss:$8 sps:$4 sm:$0xff]  }
 0x328   : > { %v5287_v56 = vpop.eup %5286  ;;  %3538 = vmatprep.subr.bf16.mxu1 %v3291_v29  ;;  %3460 = vmatpush1.bf16.msra.mxu0 %v3300_v26  ;;  %5306 = vtanh.f32 %v4369_v34  ;;  %v4371_v58 = vadd.f32 %v2861_v9, %v7188_v41  ;;  %v2863_v38 = vpop.f32.mrb[191].mxu0 }
 0x329   : > { %v5289_v13 = vpop.eup %5288  ;;  %3539 = vmatpush1.bf16.msra.mxu1 %v3290_v39  ;;  %5308 = vtanh.f32 %v4370_v10  ;;  %v4372_v7 = vadd.f32 %v2863_v38, %v7188_v41  ;;  %v7237_v39 = vld [vmem:[%s7466_s5 + $0x20] ss:$8 sps:$4 sm:$0xff]  }
 0x32a   : > { %v5291_v45 = vpop.eup %5290  ;;  %5310 = vtanh.f32 %v4371_v58 }
 0x32b   : > { %v5293_v17 = vpop.eup %5292  ;;  %v3306_v0 = vpack.c.bf16 %v5291_v45, %v5283_v33  ;;  %5312 = vtanh.f32 %v4372_v7 }
 0x32c   : > { %v5295_v59 = vpop.eup %5294  ;;  %v3296_v30 = vpack.c.bf16 %v5293_v17, %v5285_v43 }
 0x32d   : > { %v5297_v31 = vpop.eup %5296  ;;  %v3307_v53 = vpack.c.bf16 %v5295_v59, %v5287_v56 }
 0x32e   : > { %v3297_v32 = vpack.c.bf16 %v5297_v31, %v5289_v13  ;;  %v5299_v49 = vpop.eup %5298 }
 0x32f   : > { %3461 = vmatprep.subr.bf16.mxu0 %v3307_v53  ;;  %v5301_v22 = vpop.eup %5300 }
 0x330   : > { %3540 = vmatprep.subr.bf16.mxu1 %v3297_v32  ;;  %3462 = vmatpush1.bf16.msra.mxu0 %v3306_v0  ;;  %v5303_v6 = vpop.eup %5302 }
 0x331   : > { %3541 = vmatpush1.bf16.msra.mxu1 %v3296_v30  ;;  %v5305_v19 = vpop.eup %5304  ;;  %v3302_v55 = vpack.c.bf16 %v5303_v6, %v5299_v49 }
 0x332   : > { %v3303_v47 = vpack.c.bf16 %v5305_v19, %v5301_v22  ;;  %v5307_v54 = vpop.eup %5306 }
 0x333   : > { %3476 = vmatmul.mubr.bf16.vlgmr.msra.gmra.mrb[192].mxu0 %v7211_v35  ;;  %v5309_v25 = vpop.eup %5308 }
 0x334   : > { %4208 = vmatprep.mubr.msk.bf16.mxu0 %vm3427_vm1, %v7216_v61  ;;  %3542 = vmatprep.subr.bf16.mxu1 %v3303_v47  ;;  %v5311_v26 = vpop.eup %5310 }
 0x335   : > { %3543 = vmatpush1.bf16.msra.mxu1 %v3302_v55  ;;  %v5313_v48 = vpop.eup %5312  ;;  %v3308_v57 = vpack.c.bf16 %v5311_v26, %v5307_v54 }
 0x336   : > { %v3309_v36 = vpack.c.bf16 %v5313_v48, %v5309_v25 }
 0x338   : > { %3544 = vmatprep.subr.bf16.mxu1 %v3309_v36 }
 0x339   : > { %3545 = vmatpush1.bf16.msra.mxu1 %v3308_v57 }
 0x33b   : > { %3486 = vmatmul.mubr.bf16.gmra.mrb[196].mxu0 %v7224_v40 }
 0x33c   : > { %4209 = vmatprep.mubr.msk.bf16.mxu0 %vm3427_vm1, %v7229_v21  ;;  %3559 = vmatmul.mubr.bf16.vlgmr.msra.gmra.mrb[168].mxu1 %v7211_v35 }
 0x33d   : > { %4213 = vmatprep.mubr.msk.bf16.mxu1 %vm3427_vm1, %v7216_v61 }
 0x343   : > { %3496 = vmatmul.mubr.bf16.gmra.mrb[200].mxu0 %v7237_v39 }
 0x344   : > { %4210 = vmatprep.mubr.msk.bf16.mxu0 %vm3427_vm1, %v7242_v46  ;;  %3569 = vmatmul.mubr.bf16.gmra.mrb[172].mxu1 %v7224_v40 }
 0x345   : > { %4214 = vmatprep.mubr.msk.bf16.mxu1 %vm3427_vm1, %v7229_v21 }
 0x34b   : > { %3506 = vmatmul.mubr.bf16.gmra.mrb[204].mxu0 %v7253_v11 }
 0x34c   : > { %4211 = vmatprep.mubr.msk.bf16.mxu0 %vm3427_vm1, %v7258_v20  ;;  %3579 = vmatmul.mubr.bf16.gmra.mrb[176].mxu1 %v7237_v39 }
 0x34d   : > { %4215 = vmatprep.mubr.msk.bf16.mxu1 %vm3427_vm1, %v7242_v46 }
 0x353   : > { %3516 = vmatmul.mubr.bf16.gmra.mrb[208].mxu0 %v7269_v52 }
 0x354   : > { %4217 = vmatprep.mubr.msk.bf16.mxu0 %vm3427_vm1, %v7062_v37  ;;  %3589 = vmatmul.mubr.bf16.gmra.mrb[180].mxu1 %v7253_v11 }
 0x355   : > { %4216 = vmatprep.mubr.msk.bf16.mxu1 %vm3427_vm1, %v7258_v20 }
 0x35c   : > { %3599 = vmatmul.mubr.bf16.gmra.mrb[184].mxu1 %v7269_v52 }
 0x36c   : > { %v3033_v33 = vpop.f32.mrb[128].mxu1 }
 0x36d   : > { %v4373_v2 = vadd.f32 %v3033_v33, %v7078_v5  ;;  %v3035_v29 = vpop.f32.mrb[129].mxu1 }
 0x36e   : > { %v4374_v43 = vadd.f32 %v3035_v29, %v7078_v5  ;;  %v3037_v56 = vpop.f32.mrb[130].mxu1 }
 0x36f   : > { %5314 = vtanh.f32 %v4373_v2  ;;  %v4375_v13 = vadd.f32 %v3037_v56, %v7081_v63  ;;  %v3039_v45 = vpop.f32.mrb[131].mxu1 }
 0x370   : > { %5316 = vtanh.f32 %v4374_v43  ;;  %v4376_v37 = vadd.f32 %v3039_v45, %v7081_v63 }
 0x371   : > { %5318 = vtanh.f32 %v4375_v13 }
 0x372   : > { %5320 = vtanh.f32 %v4376_v37 }
 0x374   : > { %v3043_v51 = vpop.f32.mrb[132].mxu1 }
 0x375   : > { %v4377_v17 = vadd.f32 %v3043_v51, %v7089_v16  ;;  %v3045_v34 = vpop.f32.mrb[133].mxu1 }
 0x376   : > { %v4378_v14 = vadd.f32 %v3045_v34, %v7089_v16  ;;  %v3047_v0 = vpop.f32.mrb[134].mxu1 }
 0x377   : > { %5322 = vtanh.f32 %v4377_v17  ;;  %v4379_v5 = vadd.f32 %v3047_v0, %v7091_v27  ;;  %v3049_v59 = vpop.f32.mrb[135].mxu1 }
 0x378   : > { %5324 = vtanh.f32 %v4378_v14  ;;  %v4380_v10 = vadd.f32 %v3049_v59, %v7091_v27 }
 0x379   : > { %v5315_v9 = vpop.eup %5314  ;;  %5326 = vtanh.f32 %v4379_v5 }
 0x37a   : > { %v5317_v30 = vpop.eup %5316  ;;  %5328 = vtanh.f32 %v4380_v10 }
 0x37b   : > { %v5319_v63 = vpop.eup %5318 }
 0x37c   : > { %v5321_v31 = vpop.eup %5320  ;;  %v3053_v58 = vpop.f32.mrb[136].mxu1  ;;  %v3256_v38 = vpack.c.bf16 %v5319_v63, %v5315_v9 }
 0x37d   : > { %v4381_v53 = vadd.f32 %v3053_v58, %v7102_v15  ;;  %v3055_v7 = vpop.f32.mrb[137].mxu1  ;;  %v3257_v16 = vpack.c.bf16 %v5321_v31, %v5317_v30 }
 0x37e   : > { %v4382_v32 = vadd.f32 %v3055_v7, %v7102_v15  ;;  %v3057_v49 = vpop.f32.mrb[138].mxu1 }
 0x37f   : > { %5330 = vtanh.f32 %v4381_v53  ;;  %v4383_v22 = vadd.f32 %v3057_v49, %v7100_v4  ;;  %v3059_v6 = vpop.f32.mrb[139].mxu1  ;;  %3609 = vmatprep.subr.bf16.mxu0 %v3257_v16 }
 0x380   : > { %5332 = vtanh.f32 %v4382_v32  ;;  %v4384_v27 = vadd.f32 %v3059_v6, %v7100_v4  ;;  %3610 = vmatpush1.bf16.msra.mxu0 %v3256_v38 }
 0x381   : > { %v5323_v19 = vpop.eup %5322  ;;  %5334 = vtanh.f32 %v4383_v22 }
 0x382   : > { %v5325_v55 = vpop.eup %5324  ;;  %5336 = vtanh.f32 %v4384_v27 }
 0x383   : > { %v5327_v47 = vpop.eup %5326 }
 0x384   : > { %v5329_v54 = vpop.eup %5328  ;;  %v3063_v25 = vpop.f32.mrb[140].mxu1  ;;  %v3262_v26 = vpack.c.bf16 %v5327_v47, %v5323_v19 }
 0x385   : > { %v4385_v15 = vadd.f32 %v3063_v25, %v7118_v62  ;;  %v3065_v48 = vpop.f32.mrb[141].mxu1  ;;  %v3263_v57 = vpack.c.bf16 %v5329_v54, %v5325_v55 }
 0x386   : > { %v4386_v36 = vadd.f32 %v3065_v48, %v7118_v62  ;;  %v3067_v33 = vpop.f32.mrb[142].mxu1 }
 0x387   : > { %5338 = vtanh.f32 %v4385_v15  ;;  %v4387_v2 = vadd.f32 %v3067_v33, %v7116_v23  ;;  %v3069_v4 = vpop.f32.mrb[143].mxu1  ;;  %3611 = vmatprep.subr.bf16.mxu0 %v3263_v57 }
 0x388   : > { %5340 = vtanh.f32 %v4386_v36  ;;  %v4388_v29 = vadd.f32 %v3069_v4, %v7116_v23  ;;  %3612 = vmatpush1.bf16.msra.mxu0 %v3262_v26 }
 0x389   : > { %v5331_v43 = vpop.eup %5330  ;;  %5342 = vtanh.f32 %v4387_v2 }
 0x38a   : > { %v5333_v56 = vpop.eup %5332  ;;  %5344 = vtanh.f32 %v4388_v29 }
 0x38b   : > { %v5335_v13 = vpop.eup %5334 }
 0x38c   : > { %v5337_v45 = vpop.eup %5336  ;;  %v3073_v37 = vpop.f32.mrb[144].mxu1  ;;  %v3268_v51 = vpack.c.bf16 %v5335_v13, %v5331_v43 }
 0x38d   : > { %v4389_v62 = vadd.f32 %v3073_v37, %v7130_v12  ;;  %v3075_v17 = vpop.f32.mrb[145].mxu1  ;;  %v3269_v34 = vpack.c.bf16 %v5337_v45, %v5333_v56 }
 0x38e   : > { %v4390_v14 = vadd.f32 %v3075_v17, %v7130_v12  ;;  %v3077_v0 = vpop.f32.mrb[146].mxu1 }
 0x38f   : > { %5346 = vtanh.f32 %v4389_v62  ;;  %v4391_v5 = vadd.f32 %v3077_v0, %v7128_v8  ;;  %v3079_v23 = vpop.f32.mrb[147].mxu1  ;;  %3613 = vmatprep.subr.bf16.mxu0 %v3269_v34 }
 0x390   : > { %5348 = vtanh.f32 %v4390_v14  ;;  %v4392_v59 = vadd.f32 %v3079_v23, %v7128_v8  ;;  %3614 = vmatpush1.bf16.msra.mxu0 %v3268_v51 }
 0x391   : > { %v5339_v10 = vpop.eup %5338  ;;  %5350 = vtanh.f32 %v4391_v5 }
 0x392   : > { %v5341_v9 = vpop.eup %5340  ;;  %5352 = vtanh.f32 %v4392_v59 }
 0x393   : > { %v5343_v30 = vpop.eup %5342 }
 0x394   : > { %v5345_v63 = vpop.eup %5344  ;;  %v3083_v31 = vpop.f32.mrb[148].mxu1  ;;  %v3274_v58 = vpack.c.bf16 %v5343_v30, %v5339_v10 }
 0x395   : > { %v4393_v12 = vadd.f32 %v3083_v31, %v7142_v50  ;;  %v3085_v38 = vpop.f32.mrb[149].mxu1  ;;  %v3275_v53 = vpack.c.bf16 %v5345_v63, %v5341_v9 }
 0x396   : > { %v4394_v7 = vadd.f32 %v3085_v38, %v7142_v50  ;;  %v3087_v16 = vpop.f32.mrb[150].mxu1 }
 0x397   : > { %5354 = vtanh.f32 %v4393_v12  ;;  %v4395_v32 = vadd.f32 %v3087_v16, %v7140_v24  ;;  %v3089_v8 = vpop.f32.mrb[151].mxu1  ;;  %3615 = vmatprep.subr.bf16.mxu0 %v3275_v53 }
 0x398   : > { %5356 = vtanh.f32 %v4394_v7  ;;  %v4396_v49 = vadd.f32 %v3089_v8, %v7140_v24  ;;  %3616 = vmatpush1.bf16.msra.mxu0 %v3274_v58 }
 0x399   : > { %v5347_v22 = vpop.eup %5346  ;;  %5358 = vtanh.f32 %v4395_v32 }
 0x39a   : > { %v5349_v6 = vpop.eup %5348  ;;  %5360 = vtanh.f32 %v4396_v49 }
 0x39b   : > { %v5351_v27 = vpop.eup %5350 }
 0x39c   : > { %v5353_v19 = vpop.eup %5352  ;;  %v3093_v55 = vpop.f32.mrb[152].mxu1  ;;  %v3280_v47 = vpack.c.bf16 %v5351_v27, %v5347_v22 }
 0x39d   : > { %v4397_v50 = vadd.f32 %v3093_v55, %v7154_v18  ;;  %v3095_v54 = vpop.f32.mrb[153].mxu1  ;;  %v3281_v25 = vpack.c.bf16 %v5353_v19, %v5349_v6 }
 0x39e   : > { %v4398_v26 = vadd.f32 %v3095_v54, %v7154_v18  ;;  %v3097_v15 = vpop.f32.mrb[154].mxu1 }
 0x39f   : > { %5362 = vtanh.f32 %v4397_v50  ;;  %v4399_v48 = vadd.f32 %v3097_v15, %v7152_v42  ;;  %v3099_v24 = vpop.f32.mrb[155].mxu1  ;;  %3617 = vmatprep.subr.bf16.mxu0 %v3281_v25 }
 0x3a0   : > { %5364 = vtanh.f32 %v4398_v26  ;;  %v4400_v57 = vadd.f32 %v3099_v24, %v7152_v42  ;;  %3618 = vmatpush1.bf16.msra.mxu0 %v3280_v47 }
 0x3a1   : > { %v5355_v36 = vpop.eup %5354  ;;  %5366 = vtanh.f32 %v4399_v48 }
 0x3a2   : > { %v5357_v33 = vpop.eup %5356  ;;  %5368 = vtanh.f32 %v4400_v57 }
 0x3a3   : > { %v5359_v2 = vpop.eup %5358 }
 0x3a4   : > { %v5361_v4 = vpop.eup %5360  ;;  %v3103_v29 = vpop.f32.mrb[156].mxu1  ;;  %v3286_v43 = vpack.c.bf16 %v5359_v2, %v5355_v36 }
 0x3a5   : > { %v4401_v18 = vadd.f32 %v3103_v29, %v7166_v60  ;;  %v3105_v56 = vpop.f32.mrb[157].mxu1  ;;  %v3287_v13 = vpack.c.bf16 %v5361_v4, %v5357_v33 }
 0x3a6   : > { %v4402_v45 = vadd.f32 %v3105_v56, %v7166_v60  ;;  %v3107_v37 = vpop.f32.mrb[158].mxu1 }
 0x3a7   : > { %5370 = vtanh.f32 %v4401_v18  ;;  %v4403_v51 = vadd.f32 %v3107_v37, %v7164_v1  ;;  %v3109_v42 = vpop.f32.mrb[159].mxu1  ;;  %3619 = vmatprep.subr.bf16.mxu0 %v3287_v13 }
 0x3a8   : > { %5372 = vtanh.f32 %v4402_v45  ;;  %v4404_v62 = vadd.f32 %v3109_v42, %v7164_v1  ;;  %3620 = vmatpush1.bf16.msra.mxu0 %v3286_v43 }
 0x3a9   : > { %v5363_v17 = vpop.eup %5362  ;;  %5374 = vtanh.f32 %v4403_v51 }
 0x3aa   : > { %v5365_v34 = vpop.eup %5364  ;;  %5376 = vtanh.f32 %v4404_v62 }
 0x3ab   : > { %v5367_v14 = vpop.eup %5366 }
 0x3ac   : > { %v5369_v0 = vpop.eup %5368  ;;  %v3113_v5 = vpop.f32.mrb[160].mxu1  ;;  %v3292_v23 = vpack.c.bf16 %v5367_v14, %v5363_v17 }
 0x3ad   : > { %v4405_v60 = vadd.f32 %v3113_v5, %v7178_v28  ;;  %v3115_v59 = vpop.f32.mrb[161].mxu1  ;;  %v3293_v10 = vpack.c.bf16 %v5369_v0, %v5365_v34 }
 0x3ae   : > { %v4406_v9 = vadd.f32 %v3115_v59, %v7178_v28  ;;  %v3117_v30 = vpop.f32.mrb[162].mxu1 }
 0x3af   : > { %5378 = vtanh.f32 %v4405_v60  ;;  %v4407_v63 = vadd.f32 %v3117_v30, %v7176_v3  ;;  %v3119_v1 = vpop.f32.mrb[163].mxu1  ;;  %3621 = vmatprep.subr.bf16.mxu0 %v3293_v10 }
 0x3b0   : > { %5380 = vtanh.f32 %v4406_v9  ;;  %v4408_v31 = vadd.f32 %v3119_v1, %v7176_v3  ;;  %3622 = vmatpush1.bf16.msra.mxu0 %v3292_v23 }
 0x3b1   : > { %v5371_v58 = vpop.eup %5370  ;;  %5382 = vtanh.f32 %v4407_v63 }
 0x3b2   : > { %v5373_v12 = vpop.eup %5372  ;;  %5384 = vtanh.f32 %v4408_v31 }
 0x3b3   : > { %v5375_v38 = vpop.eup %5374 }
 0x3b4   : > { %v5377_v53 = vpop.eup %5376  ;;  %v3123_v7 = vpop.f32.mrb[164].mxu1  ;;  %v3298_v16 = vpack.c.bf16 %v5375_v38, %v5371_v58 }
 0x3b5   : > { %v4409_v28 = vadd.f32 %v3123_v7, %v7190_v44  ;;  %v3125_v32 = vpop.f32.mrb[165].mxu1  ;;  %v3299_v8 = vpack.c.bf16 %v5377_v53, %v5373_v12 }
 0x3b6   : > { %v4410_v49 = vadd.f32 %v3125_v32, %v7190_v44  ;;  %v3127_v22 = vpop.f32.mrb[166].mxu1 }
 0x3b7   : > { %5386 = vtanh.f32 %v4409_v28  ;;  %v4411_v6 = vadd.f32 %v3127_v22, %v7188_v41  ;;  %v3129_v3 = vpop.f32.mrb[167].mxu1  ;;  %3623 = vmatprep.subr.bf16.mxu0 %v3299_v8 }
 0x3b8   : > { %5388 = vtanh.f32 %v4410_v49  ;;  %v4412_v27 = vadd.f32 %v3129_v3, %v7188_v41  ;;  %3624 = vmatpush1.bf16.msra.mxu0 %v3298_v16  ;;  %v7336_v41 = vpop.permute.xlu0 %3334 }
 0x3b9   : > { %v5379_v19 = vpop.eup %5378  ;;  %5390 = vtanh.f32 %v4411_v6 }
 0x3ba   : > { %v5381_v55 = vpop.eup %5380  ;;  %5392 = vtanh.f32 %v4412_v27 }
 0x3bb   : > { %v5383_v47 = vpop.eup %5382 }
 0x3bc   : > { %v5385_v50 = vpop.eup %5384  ;;  %v3304_v54 = vpack.c.bf16 %v5383_v47, %v5379_v19  ;;  %v7344_v36 = vpop.permute.xlu0 %3344 }
 0x3bd   : > { %v3305_v25 = vpack.c.bf16 %v5385_v50, %v5381_v55 }
 0x3bf   : > { %3625 = vmatprep.subr.bf16.mxu0 %v3305_v25 }
 0x3c0   : > { %3626 = vmatpush1.bf16.msra.mxu0 %v3304_v54  ;;  %v7357_v17 = vpop.permute.xlu0 %3354 }
 0x3c1   : > { %v5387_v44 = vpop.eup %5386 }
 0x3c2   : > { %v5389_v26 = vpop.eup %5388 }
 0x3c3   : > { %v5391_v15 = vpop.eup %5390 }
 0x3c4   : > { %v5393_v48 = vpop.eup %5392  ;;  %v3310_v24 = vpack.c.bf16 %v5391_v15, %v5387_v44  ;;  %v7371_v22 = vpop.permute.xlu0 %3364 }
 0x3c5   : > { %v3311_v57 = vpack.c.bf16 %v5393_v48, %v5389_v26 }
 0x3c7   : > { %3627 = vmatprep.subr.bf16.mxu0 %v3311_v57 }
 0x3c8   : > { %3628 = vmatpush1.bf16.msra.mxu0 %v3310_v24 }
 0x3cb   : > { %3642 = vmatmul.mubr.bf16.vlgmr.msra.gmra.mrb[212].mxu0 %v7211_v35 }
 0x3cc   : > { %4218 = vmatprep.mubr.msk.bf16.mxu0 %vm3427_vm1, %v7216_v61 }
 0x3d3   : > { %3652 = vmatmul.mubr.bf16.gmra.mrb[216].mxu0 %v7224_v40 }
 0x3d4   : > { %4219 = vmatprep.mubr.msk.bf16.mxu0 %vm3427_vm1, %v7229_v21  ;;  %v7339_v21 = vpop.permute.xlu1 %3339 }
 0x3d8   : > { %v7347_v29 = vpop.permute.xlu1 %3349 }
 0x3db   : > { %3662 = vmatmul.mubr.bf16.gmra.mrb[220].mxu0 %v7237_v39 }
 0x3dc   : > { %4220 = vmatprep.mubr.msk.bf16.mxu0 %vm3427_vm1, %v7242_v46  ;;  %v7363_v1 = vpop.permute.xlu1 %3359 }
 0x3e0   : > { %v7377_v15 = vpop.permute.xlu1 %3369 }
 0x3e3   : > { %3672 = vmatmul.mubr.bf16.gmra.mrb[224].mxu0 %v7253_v11 }
 0x3e4   : > { %4221 = vmatprep.mubr.msk.bf16.mxu0 %vm3427_vm1, %v7258_v20 }
 0x3eb   : > { %3682 = vmatmul.mubr.bf16.gmra.mrb[228].mxu0 %v7269_v52 }
 0x406   : > { %v3477_v35 = vpop.f32.mrb[192].mxu0 }
 0x407   : > { %v3478_v61 = vadd.f32 %v3477_v35, %v7336_v41  ;;  %v3479_v40 = vpop.f32.mrb[193].mxu0 }
 0x408   : > { %v3480_v39 = vadd.f32 %v3479_v40, %v7336_v41  ;;  %v3481_v46 = vpop.f32.mrb[194].mxu0 }
 0x409   : > { %5394 = vtanh.f32 %v3478_v61  ;;  %v3482_v11 = vadd.f32 %v3481_v46, %v7339_v21  ;;  %v3483_v20 = vpop.f32.mrb[195].mxu0 }
 0x40a   : > { %5396 = vtanh.f32 %v3480_v39  ;;  %v3484_v52 = vadd.f32 %v3483_v20, %v7339_v21 }
 0x40b   : > { %5398 = vtanh.f32 %v3482_v11 }
 0x40c   : > { %5400 = vtanh.f32 %v3484_v52 }
 0x40e   : > { %v3487_v33 = vpop.f32.mrb[196].mxu0 }
 0x40f   : > { %v3488_v2 = vadd.f32 %v3487_v33, %v7344_v36  ;;  %v3489_v4 = vpop.f32.mrb[197].mxu0  ;;  %v3560_v42 = vpop.f32.mrb[168].mxu1 }
 0x410   : > { %v3490_v43 = vadd.f32 %v3489_v4, %v7344_v36  ;;  %v3491_v18 = vpop.f32.mrb[198].mxu0  ;;  %v3561_v14 = vadd.f32 %v3560_v42, %v7336_v41  ;;  %v3562_v0 = vpop.f32.mrb[169].mxu1 }
 0x411   : > { %5402 = vtanh.f32 %v3488_v2  ;;  %v3492_v56 = vadd.f32 %v3491_v18, %v7347_v29  ;;  %v3493_v13 = vpop.f32.mrb[199].mxu0  ;;  %v3563_v60 = vadd.f32 %v3562_v0, %v7336_v41  ;;  %v3564_v59 = vpop.f32.mrb[170].mxu1 }
 0x412   : > { %5404 = vtanh.f32 %v3490_v43  ;;  %v3494_v45 = vadd.f32 %v3493_v13, %v7347_v29  ;;  %v3566_v63 = vpop.f32.mrb[171].mxu1  ;;  %v3565_v12 = vadd.f32 %v3564_v59, %v7339_v21  ;;  %v7385_v43 = vpop.permute.xlu0 %3374 }
 0x413   : > { %v5395_v37 = vpop.eup %5394  ;;  %5406 = vtanh.f32 %v3492_v56  ;;  %v3567_v16 = vadd.f32 %v3566_v63, %v7339_v21 }
 0x414   : > { %v5397_v51 = vpop.eup %5396  ;;  %5408 = vtanh.f32 %v3494_v45 }
 0x415   : > { %v5399_v62 = vpop.eup %5398  ;;  %v4255_v34 = vpack.c.bf16 %v5397_v51, %v5395_v37  ;;  %5410 = vtanh.f32 %v3561_v14 }
 0x416   : > { %v5401_v5 = vpop.eup %5400  ;;  %v3497_v23 = vpop.f32.mrb[200].mxu0  ;;  %5412 = vtanh.f32 %v3563_v60 }
 0x417   : > { %3932 = vst [vmem:[%s7355_s15] sm:$0xff] %v4255_v34  ;;  %v4258_v10 = vpack.c.bf16 %v5401_v5, %v5399_v62  ;;  %v3498_v9 = vadd.f32 %v3497_v23, %v7357_v17  ;;  %v3499_v30 = vpop.f32.mrb[201].mxu0  ;;  %v3570_v8 = vpop.f32.mrb[172].mxu1 }
 0x418   : > { %v3500_v31 = vadd.f32 %v3499_v30, %v7357_v17  ;;  %v3501_v58 = vpop.f32.mrb[202].mxu0  ;;  %v3571_v3 = vadd.f32 %v3570_v8, %v7344_v36  ;;  %v3572_v27 = vpop.f32.mrb[173].mxu1 }
 0x419   : > { %3935 = vst [vmem:[%s7355_s15 + $0x18] sm:$0xff] %v4258_v10  ;;  %5414 = vtanh.f32 %v3498_v9  ;;  %v3502_v38 = vadd.f32 %v3501_v58, %v7363_v1  ;;  %v3503_v53 = vpop.f32.mrb[203].mxu0  ;;  %v3573_v47 = vadd.f32 %v3572_v27, %v7344_v36  ;;  %v3574_v50 = vpop.f32.mrb[174].mxu1 }
 0x41a   : > { %5416 = vtanh.f32 %v3500_v31  ;;  %v3504_v7 = vadd.f32 %v3503_v53, %v7363_v1  ;;  %v3576_v26 = vpop.f32.mrb[175].mxu1  ;;  %v3575_v57 = vadd.f32 %v3574_v50, %v7347_v29  ;;  %v7392_v23 = vpop.permute.xlu1 %3379 }
 0x41b   : > { %v5403_v28 = vpop.eup %5402  ;;  %5418 = vtanh.f32 %v3502_v38  ;;  %v3577_v11 = vadd.f32 %v3576_v26, %v7347_v29 }
 0x41c   : > { %v5405_v32 = vpop.eup %5404  ;;  %5420 = vtanh.f32 %v3565_v12 }
 0x41d   : > { %v5407_v49 = vpop.eup %5406  ;;  %v4261_v6 = vpack.c.bf16 %v5405_v32, %v5403_v28  ;;  %5422 = vtanh.f32 %v3504_v7 }
 0x41e   : > { %v5409_v19 = vpop.eup %5408  ;;  %5424 = vtanh.f32 %v3567_v16  ;;  %v3507_v55 = vpop.f32.mrb[204].mxu0 }
 0x41f   : > { %3938 = vst [vmem:[%s7355_s15 + $0x30] sm:$0xff] %v4261_v6  ;;  %v4264_v54 = vpack.c.bf16 %v5409_v19, %v5407_v49  ;;  %v3508_v25 = vadd.f32 %v3507_v55, %v7371_v22  ;;  %5426 = vtanh.f32 %v3571_v3  ;;  %v3509_v44 = vpop.f32.mrb[205].mxu0  ;;  %v5411_v35 = vpop.eup %5410 }
 0x420   : > { %v3510_v48 = vadd.f32 %v3509_v44, %v7371_v22  ;;  %5428 = vtanh.f32 %v3573_v47  ;;  %v3511_v24 = vpop.f32.mrb[206].mxu0  ;;  %v5413_v39 = vpop.eup %5412 }
 0x421   : > { %3941 = vst [vmem:[%s7355_s15 + $0x48] sm:$0xff] %v4264_v54  ;;  %5430 = vtanh.f32 %v3508_v25  ;;  %v3512_v61 = vadd.f32 %v3511_v24, %v7377_v15  ;;  %v3513_v40 = vpop.f32.mrb[207].mxu0  ;;  %v4256_v52 = vpack.c.bf16 %v5413_v39, %v5411_v35  ;;  %v3580_v2 = vpop.f32.mrb[176].mxu1 }
 0x422   : > { %5432 = vtanh.f32 %v3510_v48  ;;  %v3514_v46 = vadd.f32 %v3513_v40, %v7377_v15  ;;  %v3581_v56 = vadd.f32 %v3580_v2, %v7357_v17  ;;  %v3582_v13 = vpop.f32.mrb[177].mxu1 }
 0x423   : > { %v5415_v20 = vpop.eup %5414  ;;  %5434 = vtanh.f32 %v3512_v61  ;;  %3933 = vst [vmem:[%s7355_s15 + $0x8] sm:$0xff] %v4256_v52  ;;  %v3583_v51 = vadd.f32 %v3582_v13, %v7357_v17  ;;  %v3584_v42 = vpop.f32.mrb[178].mxu1 }
 0x424   : > { %v5417_v33 = vpop.eup %5416  ;;  %5436 = vtanh.f32 %v3575_v57  ;;  %v3586_v0 = vpop.f32.mrb[179].mxu1  ;;  %v3585_v9 = vadd.f32 %v3584_v42, %v7363_v1 }
 0x425   : > { %v5419_v4 = vpop.eup %5418  ;;  %v4267_v18 = vpack.c.bf16 %v5417_v33, %v5415_v20  ;;  %5438 = vtanh.f32 %v3514_v46  ;;  %v3587_v53 = vadd.f32 %v3586_v0, %v7363_v1 }
 0x426   : > { %v5421_v45 = vpop.eup %5420  ;;  %5440 = vtanh.f32 %v3577_v11  ;;  %v3517_v37 = vpop.f32.mrb[208].mxu0 }
 0x427   : > { %v5423_v62 = vpop.eup %5422  ;;  %3944 = vst [vmem:[%s7355_s15 + $0x60] sm:$0xff] %v4267_v18  ;;  %v3518_v34 = vadd.f32 %v3517_v37, %v7385_v43  ;;  %5442 = vtanh.f32 %v3581_v56  ;;  %v3519_v14 = vpop.f32.mrb[209].mxu0 }
 0x428   : > { %v5425_v5 = vpop.eup %5424  ;;  %v4270_v60 = vpack.c.bf16 %v5423_v62, %v5419_v4  ;;  %v3520_v59 = vadd.f32 %v3519_v14, %v7385_v43  ;;  %5444 = vtanh.f32 %v3583_v51  ;;  %v3521_v10 = vpop.f32.mrb[210].mxu0 }
 0x429   : > { %v5427_v30 = vpop.eup %5426  ;;  %v4259_v63 = vpack.c.bf16 %v5425_v5, %v5421_v45  ;;  %5446 = vtanh.f32 %v3518_v34  ;;  %v3522_v31 = vadd.f32 %v3521_v10, %v7392_v23  ;;  %v3523_v58 = vpop.f32.mrb[211].mxu0 }
 0x42a   : > { %v5429_v12 = vpop.eup %5428  ;;  %3947 = vst [vmem:[%s7355_s15 + $0x78] sm:$0xff] %v4270_v60  ;;  %5448 = vtanh.f32 %v3520_v59  ;;  %v3524_v38 = vadd.f32 %v3523_v58, %v7392_v23  ;;  %v3590_v32 = vpop.f32.mrb[180].mxu1 }
 0x42b   : > { %v5431_v7 = vpop.eup %5430  ;;  %3936 = vst [vmem:[%s7355_s15 + $0x20] sm:$0xff] %v4259_v63  ;;  %v4262_v16 = vpack.c.bf16 %v5429_v12, %v5427_v30  ;;  %5450 = vtanh.f32 %v3522_v31  ;;  %v3591_v6 = vadd.f32 %v3590_v32, %v7371_v22  ;;  %v3592_v3 = vpop.f32.mrb[181].mxu1 }
 0x42c   : > { %v5433_v28 = vpop.eup %5432  ;;  %5452 = vtanh.f32 %v3585_v9  ;;  %v3593_v19 = vadd.f32 %v3592_v3, %v7371_v22  ;;  %v3594_v55 = vpop.f32.mrb[182].mxu1 }
 0x42d   : > { %v5435_v8 = vpop.eup %5434  ;;  %v4273_v49 = vpack.c.bf16 %v5433_v28, %v5431_v7  ;;  %3939 = vst [vmem:[%s7355_s15 + $0x38] sm:$0xff] %v4262_v16  ;;  %5454 = vtanh.f32 %v3524_v38  ;;  %v3595_v50 = vadd.f32 %v3594_v55, %v7377_v15  ;;  %v3596_v54 = vpop.f32.mrb[183].mxu1 }
 0x42e   : > { %v5437_v27 = vpop.eup %5436  ;;  %5456 = vtanh.f32 %v3587_v53  ;;  %v3597_v26 = vadd.f32 %v3596_v54, %v7377_v15 }
 0x42f   : > { %v5439_v47 = vpop.eup %5438  ;;  %3950 = vst [vmem:[%s7355_s15 + $0x90] sm:$0xff] %v4273_v49  ;;  %5458 = vtanh.f32 %v3591_v6  ;;  %v3600_v39 = vpop.f32.mrb[184].mxu1 }
 0x430   : > { %v5441_v25 = vpop.eup %5440  ;;  %v4276_v44 = vpack.c.bf16 %v5439_v47, %v5435_v8  ;;  %5460 = vtanh.f32 %v3593_v19  ;;  %v3601_v20 = vadd.f32 %v3600_v39, %v7385_v43  ;;  %v3602_v52 = vpop.f32.mrb[185].mxu1 }
 0x431   : > { %v5443_v48 = vpop.eup %5442  ;;  %v4265_v24 = vpack.c.bf16 %v5441_v25, %v5437_v27  ;;  %5462 = vtanh.f32 %v3595_v50  ;;  %v3603_v2 = vadd.f32 %v3602_v52, %v7385_v43  ;;  %v3604_v4 = vpop.f32.mrb[186].mxu1 }
 0x432   : > { %v5445_v57 = vpop.eup %5444  ;;  %3953 = vst [vmem:[%s7355_s15 + $0xa8] sm:$0xff] %v4276_v44  ;;  %5464 = vtanh.f32 %v3597_v26  ;;  %v3605_v56 = vadd.f32 %v3604_v4, %v7392_v23  ;;  %v3606_v13 = vpop.f32.mrb[187].mxu1 }
 0x433   : > { %v5447_v35 = vpop.eup %5446  ;;  %3942 = vst [vmem:[%s7355_s15 + $0x50] sm:$0xff] %v4265_v24  ;;  %v4268_v61 = vpack.c.bf16 %v5445_v57, %v5443_v48  ;;  %5466 = vtanh.f32 %v3601_v20  ;;  %v3607_v51 = vadd.f32 %v3606_v13, %v7392_v23 }
 0x434   : > { %v5449_v40 = vpop.eup %5448  ;;  %5468 = vtanh.f32 %v3603_v2 }
 0x435   : > { %v5451_v46 = vpop.eup %5450  ;;  %v4279_v11 = vpack.c.bf16 %v5449_v40, %v5447_v35  ;;  %3945 = vst [vmem:[%s7355_s15 + $0x68] sm:$0xff] %v4268_v61  ;;  %5470 = vtanh.f32 %v3605_v56 }
 0x436   : > { %v5453_v33 = vpop.eup %5452  ;;  %5472 = vtanh.f32 %v3607_v51 }
 0x437   : > { %v5455_v18 = vpop.eup %5454  ;;  %3956 = vst [vmem:[%s7355_s15 + $0xc0] sm:$0xff] %v4279_v11 }
 0x438   : > { %v5457_v45 = vpop.eup %5456  ;;  %v4282_v37 = vpack.c.bf16 %v5455_v18, %v5451_v46 }
 0x439   : > { %v5459_v42 = vpop.eup %5458  ;;  %v4271_v62 = vpack.c.bf16 %v5457_v45, %v5453_v33 }
 0x43a   : > { %v5461_v34 = vpop.eup %5460  ;;  %3959 = vst [vmem:[%s7355_s15 + $0xd8] sm:$0xff] %v4282_v37 }
 0x43b   : > { %v5463_v14 = vpop.eup %5462  ;;  %3948 = vst [vmem:[%s7355_s15 + $0x80] sm:$0xff] %v4271_v62  ;;  %v4274_v0 = vpack.c.bf16 %v5461_v34, %v5459_v42 }
 0x43c   : > { %v5465_v5 = vpop.eup %5464 }
 0x43d   : > { %3951 = vst [vmem:[%s7355_s15 + $0x98] sm:$0xff] %v4274_v0  ;;  %v4277_v60 = vpack.c.bf16 %v5465_v5, %v5463_v14  ;;  %v5467_v59 = vpop.eup %5466 }
 0x43e   : > { %v5469_v10 = vpop.eup %5468 }
 0x43f   : > { %3954 = vst [vmem:[%s7355_s15 + $0xb0] sm:$0xff] %v4277_v60  ;;  %v5471_v9 = vpop.eup %5470  ;;  %v4280_v30 = vpack.c.bf16 %v5469_v10, %v5467_v59 }
 0x440   : > { %v5473_v63 = vpop.eup %5472 }
 0x441   : > { %3957 = vst [vmem:[%s7355_s15 + $0xc8] sm:$0xff] %v4280_v30  ;;  %v4283_v31 = vpack.c.bf16 %v5473_v63, %v5471_v9 }
 0x443   : > { %3960 = vst [vmem:[%s7355_s15 + $0xe0] sm:$0xff] %v4283_v31 }
 0x49e   : > { %v3643_v58 = vpop.f32.mrb[212].mxu0 }
 0x49f   : > { %v3644_v12 = vadd.f32 %v3643_v58, %v7336_v41  ;;  %v3645_v38 = vpop.f32.mrb[213].mxu0 }
 0x4a0   : > { %v3646_v53 = vadd.f32 %v3645_v38, %v7336_v41  ;;  %v3647_v7 = vpop.f32.mrb[214].mxu0 }
 0x4a1   : > { %5474 = vtanh.f32 %v3644_v12  ;;  %v3648_v16 = vadd.f32 %v3647_v7, %v7339_v21  ;;  %v3649_v28 = vpop.f32.mrb[215].mxu0 }
 0x4a2   : > { %5476 = vtanh.f32 %v3646_v53  ;;  %v3650_v32 = vadd.f32 %v3649_v28, %v7339_v21 }
 0x4a3   : > { %5478 = vtanh.f32 %v3648_v16 }
 0x4a4   : > { %5480 = vtanh.f32 %v3650_v32 }
 0x4a6   : > { %v3653_v8 = vpop.f32.mrb[216].mxu0 }
 0x4a7   : > { %v3654_v49 = vadd.f32 %v3653_v8, %v7344_v36  ;;  %v3655_v6 = vpop.f32.mrb[217].mxu0 }
 0x4a8   : > { %v3656_v3 = vadd.f32 %v3655_v6, %v7344_v36  ;;  %v3657_v27 = vpop.f32.mrb[218].mxu0 }
 0x4a9   : > { %5482 = vtanh.f32 %v3654_v49  ;;  %v3658_v41 = vadd.f32 %v3657_v27, %v7347_v29  ;;  %v3659_v19 = vpop.f32.mrb[219].mxu0 }
 0x4aa   : > { %5484 = vtanh.f32 %v3656_v3  ;;  %v3660_v55 = vadd.f32 %v3659_v19, %v7347_v29 }
 0x4ab   : > { %v5475_v47 = vpop.eup %5474  ;;  %5486 = vtanh.f32 %v3658_v41 }
 0x4ac   : > { %v5477_v21 = vpop.eup %5476  ;;  %5488 = vtanh.f32 %v3660_v55 }
 0x4ad   : > { %v5479_v50 = vpop.eup %5478  ;;  %v4257_v54 = vpack.c.bf16 %v5477_v21, %v5475_v47 }
 0x4ae   : > { %v5481_v25 = vpop.eup %5480  ;;  %v3663_v44 = vpop.f32.mrb[220].mxu0 }
 0x4af   : > { %3934 = vst [vmem:[%s7355_s15 + $0x10] sm:$0xff] %v4257_v54  ;;  %v4260_v26 = vpack.c.bf16 %v5481_v25, %v5479_v50  ;;  %v3664_v36 = vadd.f32 %v3663_v44, %v7357_v17  ;;  %v3665_v48 = vpop.f32.mrb[221].mxu0 }
 0x4b0   : > { %v3666_v24 = vadd.f32 %v3665_v48, %v7357_v17  ;;  %v3667_v57 = vpop.f32.mrb[222].mxu0 }
 0x4b1   : > { %3937 = vst [vmem:[%s7355_s15 + $0x28] sm:$0xff] %v4260_v26  ;;  %5490 = vtanh.f32 %v3664_v36  ;;  %v3668_v29 = vadd.f32 %v3667_v57, %v7363_v1  ;;  %v3669_v35 = vpop.f32.mrb[223].mxu0 }
 0x4b2   : > { %5492 = vtanh.f32 %v3666_v24  ;;  %v3670_v61 = vadd.f32 %v3669_v35, %v7363_v1 }
 0x4b3   : > { %v5483_v40 = vpop.eup %5482  ;;  %5494 = vtanh.f32 %v3668_v29 }
 0x4b4   : > { %v5485_v39 = vpop.eup %5484  ;;  %5496 = vtanh.f32 %v3670_v61 }
 0x4b5   : > { %v5487_v46 = vpop.eup %5486  ;;  %v4263_v11 = vpack.c.bf16 %v5485_v39, %v5483_v40 }
 0x4b6   : > { %v5489_v20 = vpop.eup %5488  ;;  %v3673_v52 = vpop.f32.mrb[224].mxu0 }
 0x4b7   : > { %3940 = vst [vmem:[%s7355_s15 + $0x40] sm:$0xff] %v4263_v11  ;;  %v4266_v17 = vpack.c.bf16 %v5489_v20, %v5487_v46  ;;  %v3674_v33 = vadd.f32 %v3673_v52, %v7371_v22  ;;  %v3675_v2 = vpop.f32.mrb[225].mxu0 }
 0x4b8   : > { %v3676_v4 = vadd.f32 %v3675_v2, %v7371_v22  ;;  %v3677_v18 = vpop.f32.mrb[226].mxu0 }
 0x4b9   : > { %3943 = vst [vmem:[%s7355_s15 + $0x58] sm:$0xff] %v4266_v17  ;;  %5498 = vtanh.f32 %v3674_v33  ;;  %v3678_v1 = vadd.f32 %v3677_v18, %v7377_v15  ;;  %v3679_v56 = vpop.f32.mrb[227].mxu0 }
 0x4ba   : > { %5500 = vtanh.f32 %v3676_v4  ;;  %v3680_v13 = vadd.f32 %v3679_v56, %v7377_v15 }
 0x4bb   : > { %v5491_v45 = vpop.eup %5490  ;;  %5502 = vtanh.f32 %v3678_v1 }
 0x4bc   : > { %v5493_v37 = vpop.eup %5492  ;;  %5504 = vtanh.f32 %v3680_v13 }
 0x4bd   : > { %v5495_v51 = vpop.eup %5494  ;;  %v4269_v42 = vpack.c.bf16 %v5493_v37, %v5491_v45 }
 0x4be   : > { %v5497_v62 = vpop.eup %5496  ;;  %v3683_v34 = vpop.f32.mrb[228].mxu0 }
 0x4bf   : > { %3946 = vst [vmem:[%s7355_s15 + $0x70] sm:$0xff] %v4269_v42  ;;  %v4272_v22 = vpack.c.bf16 %v5497_v62, %v5495_v51  ;;  %v3684_v14 = vadd.f32 %v3683_v34, %v7385_v43  ;;  %v3685_v0 = vpop.f32.mrb[229].mxu0 }
 0x4c0   : > { %v3686_v5 = vadd.f32 %v3685_v0, %v7385_v43  ;;  %v3687_v60 = vpop.f32.mrb[230].mxu0 }
 0x4c1   : > { %3949 = vst [vmem:[%s7355_s15 + $0x88] sm:$0xff] %v4272_v22  ;;  %5506 = vtanh.f32 %v3684_v14  ;;  %v3688_v15 = vadd.f32 %v3687_v60, %v7392_v23  ;;  %v3689_v59 = vpop.f32.mrb[231].mxu0 }
 0x4c2   : > { %5508 = vtanh.f32 %v3686_v5  ;;  %v3690_v10 = vadd.f32 %v3689_v59, %v7392_v23 }
 0x4c3   : > { %v5499_v9 = vpop.eup %5498  ;;  %5510 = vtanh.f32 %v3688_v15 }
 0x4c4   : > { %v5501_v30 = vpop.eup %5500  ;;  %5512 = vtanh.f32 %v3690_v10 }
 0x4c5   : > { %v5503_v63 = vpop.eup %5502  ;;  %v4275_v31 = vpack.c.bf16 %v5501_v30, %v5499_v9 }
 0x4c6   : > { %v5505_v58 = vpop.eup %5504 }
 0x4c7   : > { %3952 = vst [vmem:[%s7355_s15 + $0xa0] sm:$0xff] %v4275_v31  ;;  %v4278_v43 = vpack.c.bf16 %v5505_v58, %v5503_v63 }
 0x4c9   : > { %3955 = vst [vmem:[%s7355_s15 + $0xb8] sm:$0xff] %v4278_v43 }
 0x4cb   : > { %v5507_v12 = vpop.eup %5506 }
 0x4cc   : > { %v5509_v38 = vpop.eup %5508 }
 0x4cd   : > { %v5511_v53 = vpop.eup %5510  ;;  %v4281_v7 = vpack.c.bf16 %v5509_v38, %v5507_v12 }
 0x4ce   : > { %v5513_v16 = vpop.eup %5512 }
 0x4cf   : > { %3958 = vst [vmem:[%s7355_s15 + $0xd0] sm:$0xff] %v4281_v7  ;;  %v4284_v28 = vpack.c.bf16 %v5513_v16, %v5511_v53 }
 0x4d1   : > { %3961 = vst [vmem:[%s7355_s15 + $0xe8] sm:$0xff] %v4284_v28 }
 0x4d2 PF: > { %p14_p9 = scmp.ge.s32.totalorder %s5605_s28, 4   ;;  %s7582_s24 = smov %s5541_s25 }
 0x4d3   : > { %s7583_s25 = smov %s5614_s8  ;;  %s7584_s26 = smov %s5605_s28 }
 0x4d4   :  { %16 = sbr.rel (!%p14_p9) target bundleno = 2 (0x2), region = 106 }

// kernel: encoder_forward.3
= control target key start
LH: loop header
LB: loop body
LE: loop exit
PB: predicated region body
PF: predicated region fallthrough
CT: control target
= control target key end

     0   :  { %s2628_s12 = smov 0   ;;  %s2630_s13 = smov 0   ;;  %s2943_s0 = inlined_call_operand.vmem [shape: bf16[2,61440], index: 0, kind: input, shape index: {}]   ;;  %s2944_s1 = inlined_call_operand.vmem [shape: bf16[16,61440], index: 1, kind: input, shape index: {}]   ;;  %s2945_s2 = inlined_call_operand.vmem [shape: f32[1,16], index: 2, kind: input, shape index: {}]   ;;  %s2946_s3 = inlined_call_operand.vmem [shape: f32[2,16], index: 3, kind: output, shape index: {}]  }
   0x1   :  { %s2632_s14 = smov 0  }
   0x2 LB: > { %s2644_s15 = sadd.s32 4294967295, %s2604_s14   ;;  %s2647_s16 = sadd.s32 1, %s2604_s14   ;;  %s2604_s14 = sphi %s2632_s14, %s2949_s14   ;;  %s2600_s13 = sphi %s2630_s13, %s2948_s13   ;;  %s2596_s12 = sphi %s2628_s12, %s2947_s12  }
   0x3   : > { %s43_s17 = ssub.s32 %s2604_s14, %s2647_s16  ;;  %s46_s18 = sadd.s32 1, %s2600_s13 }
   0x4   : > { %p44_p0 = scmp.eq.s32.totalorder %s43_s17, 0  ;;  %p53_p1 = scmp.ne.s32.totalorder %s2600_s13, %s2596_s12 }
   0x5   : > { %p54_p2 = scmp.eq.s32.totalorder %s2604_s14, 0  ;;  %p2387_p4 = scmp.ge.s32.totalorder %s2604_s14, 8 }
   0x6   : > { %s2656_s19 = scalar_select %p44_p0, %s2600_s13, %s46_s18  }
   0x7   : > { %p55_p3 = por %p54_p2, %p53_p1  ;;  %124 = sbr.rel (%p2387_p4) target bundleno = 49 (0x31), region = 20 }
   0xe   : > { %135 = sbr.rel (!%p55_p3) target bundleno = 49 (0x31), region = 28  ;;  %s137_s20 = sand.u32 (%p55_p3), 1, %s2600_s13  }
   0xf   : > { %s2456_s21 = smul.u32 (%p55_p3), 240, %s2604_s14 }
  0x10   : > { %s2457_s22 = smul.u32 (%p55_p3), 480, %s137_s20 }
  0x11   : > { %s2664_s25 = scalar_lea.vmem (%p55_p3), %s2944_s1, %s2456_s21 }
  0x12   : > { %v155_v0 = vld [vmem:[%s2664_s25] sm:$0xff] (%p55_p3)  ;;  %v157_v1 = vld [vmem:[%s2664_s25 + $0x8] sm:$0xff] (%p55_p3)  ;;  %v159_v2 = vld [vmem:[%s2664_s25 + $0x10] sm:$0xff] (%p55_p3)  ;;  %s2669_s26 = scalar_lea.vmem (%p55_p3), [#allocation2], %s2457_s22 }
  0x13   : > { %156 = vst [vmem:[%s2669_s26] sm:$0xff] (%p55_p3), %v155_v0  ;;  %158 = vst [vmem:[%s2669_s26 + $0x8] sm:$0xff] (%p55_p3), %v157_v1  ;;  %v161_v3 = vld [vmem:[%s2664_s25 + $0x18] sm:$0xff] (%p55_p3)  ;;  %v163_v4 = vld [vmem:[%s2664_s25 + $0x20] sm:$0xff] (%p55_p3) }
  0x14   : > { %160 = vst [vmem:[%s2669_s26 + $0x10] sm:$0xff] (%p55_p3), %v159_v2  ;;  %v165_v5 = vld [vmem:[%s2664_s25 + $0x28] sm:$0xff] (%p55_p3)  ;;  %162 = vst [vmem:[%s2669_s26 + $0x18] sm:$0xff] (%p55_p3), %v161_v3  ;;  %v167_v6 = vld [vmem:[%s2664_s25 + $0x30] sm:$0xff] (%p55_p3) }
  0x15   : > { %164 = vst [vmem:[%s2669_s26 + $0x20] sm:$0xff] %v163_v4  ;;  %166 = vst [vmem:[%s2669_s26 + $0x28] sm:$0xff] %v165_v5  ;;  %v169_v7 = vld [vmem:[%s2664_s25 + $0x38] sm:$0xff]  ;;  %v171_v8 = vld [vmem:[%s2664_s25 + $0x40] sm:$0xff] }
  0x16   : > { %168 = vst [vmem:[%s2669_s26 + $0x30] sm:$0xff] %v167_v6  ;;  %170 = vst [vmem:[%s2669_s26 + $0x38] sm:$0xff] %v169_v7  ;;  %v173_v9 = vld [vmem:[%s2664_s25 + $0x48] sm:$0xff]  ;;  %v175_v10 = vld [vmem:[%s2664_s25 + $0x50] sm:$0xff] }
  0x17   : > { %172 = vst [vmem:[%s2669_s26 + $0x40] sm:$0xff] %v171_v8  ;;  %v177_v11 = vld [vmem:[%s2664_s25 + $0x58] sm:$0xff]  ;;  %174 = vst [vmem:[%s2669_s26 + $0x48] sm:$0xff] %v173_v9  ;;  %v179_v12 = vld [vmem:[%s2664_s25 + $0x60] sm:$0xff] }
  0x18   : > { %176 = vst [vmem:[%s2669_s26 + $0x50] sm:$0xff] %v175_v10  ;;  %178 = vst [vmem:[%s2669_s26 + $0x58] sm:$0xff] %v177_v11  ;;  %v181_v13 = vld [vmem:[%s2664_s25 + $0x68] sm:$0xff]  ;;  %v183_v14 = vld [vmem:[%s2664_s25 + $0x70] sm:$0xff] }
  0x19   : > { %180 = vst [vmem:[%s2669_s26 + $0x60] sm:$0xff] %v179_v12  ;;  %182 = vst [vmem:[%s2669_s26 + $0x68] sm:$0xff] %v181_v13  ;;  %v185_v15 = vld [vmem:[%s2664_s25 + $0x78] sm:$0xff]  ;;  %v187_v16 = vld [vmem:[%s2664_s25 + $0x80] sm:$0xff] }
  0x1a   : > { %184 = vst [vmem:[%s2669_s26 + $0x70] sm:$0xff] %v183_v14  ;;  %v189_v17 = vld [vmem:[%s2664_s25 + $0x88] sm:$0xff]  ;;  %186 = vst [vmem:[%s2669_s26 + $0x78] sm:$0xff] %v185_v15  ;;  %v191_v18 = vld [vmem:[%s2664_s25 + $0x90] sm:$0xff] }
  0x1b   : > { %188 = vst [vmem:[%s2669_s26 + $0x80] sm:$0xff] %v187_v16  ;;  %190 = vst [vmem:[%s2669_s26 + $0x88] sm:$0xff] %v189_v17  ;;  %v193_v19 = vld [vmem:[%s2664_s25 + $0x98] sm:$0xff]  ;;  %v195_v20 = vld [vmem:[%s2664_s25 + $0xa0] sm:$0xff] }
  0x1c   : > { %192 = vst [vmem:[%s2669_s26 + $0x90] sm:$0xff] %v191_v18  ;;  %194 = vst [vmem:[%s2669_s26 + $0x98] sm:$0xff] %v193_v19  ;;  %v197_v21 = vld [vmem:[%s2664_s25 + $0xa8] sm:$0xff]  ;;  %v199_v22 = vld [vmem:[%s2664_s25 + $0xb0] sm:$0xff] }
  0x1d   : > { %196 = vst [vmem:[%s2669_s26 + $0xa0] sm:$0xff] %v195_v20  ;;  %v201_v23 = vld [vmem:[%s2664_s25 + $0xb8] sm:$0xff]  ;;  %198 = vst [vmem:[%s2669_s26 + $0xa8] sm:$0xff] %v197_v21  ;;  %v203_v24 = vld [vmem:[%s2664_s25 + $0xc0] sm:$0xff] }
  0x1e   : > { %200 = vst [vmem:[%s2669_s26 + $0xb0] sm:$0xff] %v199_v22  ;;  %202 = vst [vmem:[%s2669_s26 + $0xb8] sm:$0xff] %v201_v23  ;;  %v205_v25 = vld [vmem:[%s2664_s25 + $0xc8] sm:$0xff]  ;;  %v207_v26 = vld [vmem:[%s2664_s25 + $0xd0] sm:$0xff] }
  0x1f   : > { %204 = vst [vmem:[%s2669_s26 + $0xc0] sm:$0xff] %v203_v24  ;;  %206 = vst [vmem:[%s2669_s26 + $0xc8] sm:$0xff] %v205_v25  ;;  %v209_v27 = vld [vmem:[%s2664_s25 + $0xd8] sm:$0xff]  ;;  %v211_v28 = vld [vmem:[%s2664_s25 + $0xe0] sm:$0xff] }
  0x20   : > { %208 = vst [vmem:[%s2669_s26 + $0xd0] sm:$0xff] %v207_v26  ;;  %v213_v29 = vld [vmem:[%s2664_s25 + $0xe8] sm:$0xff]  ;;  %210 = vst [vmem:[%s2669_s26 + $0xd8] sm:$0xff] %v209_v27  ;;  %v215_v30 = vld [vmem:[%s2664_s25 + $0x780] sm:$0xff] }
  0x21   : > { %212 = vst [vmem:[%s2669_s26 + $0xe0] sm:$0xff] %v211_v28  ;;  %214 = vst [vmem:[%s2669_s26 + $0xe8] sm:$0xff] %v213_v29  ;;  %v217_v31 = vld [vmem:[%s2664_s25 + $0x788] sm:$0xff]  ;;  %v219_v32 = vld [vmem:[%s2664_s25 + $0x790] sm:$0xff] }
  0x22   : > { %216 = vst [vmem:[%s2669_s26 + $0xf0] sm:$0xff] %v215_v30  ;;  %218 = vst [vmem:[%s2669_s26 + $0xf8] sm:$0xff] %v217_v31  ;;  %v221_v33 = vld [vmem:[%s2664_s25 + $0x798] sm:$0xff]  ;;  %v223_v34 = vld [vmem:[%s2664_s25 + $0x7a0] sm:$0xff] }
  0x23   : > { %220 = vst [vmem:[%s2669_s26 + $0x100] sm:$0xff] %v219_v32  ;;  %v225_v35 = vld [vmem:[%s2664_s25 + $0x7a8] sm:$0xff]  ;;  %222 = vst [vmem:[%s2669_s26 + $0x108] sm:$0xff] %v221_v33  ;;  %v227_v36 = vld [vmem:[%s2664_s25 + $0x7b0] sm:$0xff] }
  0x24   : > { %224 = vst [vmem:[%s2669_s26 + $0x110] sm:$0xff] %v223_v34  ;;  %226 = vst [vmem:[%s2669_s26 + $0x118] sm:$0xff] %v225_v35  ;;  %v229_v37 = vld [vmem:[%s2664_s25 + $0x7b8] sm:$0xff]  ;;  %v231_v38 = vld [vmem:[%s2664_s25 + $0x7c0] sm:$0xff] }
  0x25   : > { %228 = vst [vmem:[%s2669_s26 + $0x120] sm:$0xff] %v227_v36  ;;  %230 = vst [vmem:[%s2669_s26 + $0x128] sm:$0xff] %v229_v37  ;;  %v233_v39 = vld [vmem:[%s2664_s25 + $0x7c8] sm:$0xff]  ;;  %v235_v40 = vld [vmem:[%s2664_s25 + $0x7d0] sm:$0xff] }
  0x26   : > { %232 = vst [vmem:[%s2669_s26 + $0x130] sm:$0xff] %v231_v38  ;;  %v237_v41 = vld [vmem:[%s2664_s25 + $0x7d8] sm:$0xff]  ;;  %234 = vst [vmem:[%s2669_s26 + $0x138] sm:$0xff] %v233_v39  ;;  %v239_v42 = vld [vmem:[%s2664_s25 + $0x7e0] sm:$0xff] }
  0x27   : > { %236 = vst [vmem:[%s2669_s26 + $0x140] sm:$0xff] %v235_v40  ;;  %238 = vst [vmem:[%s2669_s26 + $0x148] sm:$0xff] %v237_v41  ;;  %v241_v43 = vld [vmem:[%s2664_s25 + $0x7e8] sm:$0xff]  ;;  %v243_v44 = vld [vmem:[%s2664_s25 + $0x7f0] sm:$0xff] }
  0x28   : > { %240 = vst [vmem:[%s2669_s26 + $0x150] sm:$0xff] %v239_v42  ;;  %242 = vst [vmem:[%s2669_s26 + $0x158] sm:$0xff] %v241_v43  ;;  %v245_v45 = vld [vmem:[%s2664_s25 + $0x7f8] sm:$0xff]  ;;  %v247_v46 = vld [vmem:[%s2664_s25 + $0x800] sm:$0xff] }
  0x29   : > { %244 = vst [vmem:[%s2669_s26 + $0x160] sm:$0xff] %v243_v44  ;;  %v249_v47 = vld [vmem:[%s2664_s25 + $0x808] sm:$0xff]  ;;  %246 = vst [vmem:[%s2669_s26 + $0x168] sm:$0xff] %v245_v45  ;;  %v251_v48 = vld [vmem:[%s2664_s25 + $0x810] sm:$0xff] }
  0x2a   : > { %248 = vst [vmem:[%s2669_s26 + $0x170] sm:$0xff] %v247_v46  ;;  %250 = vst [vmem:[%s2669_s26 + $0x178] sm:$0xff] %v249_v47  ;;  %v253_v49 = vld [vmem:[%s2664_s25 + $0x818] sm:$0xff]  ;;  %v255_v50 = vld [vmem:[%s2664_s25 + $0x820] sm:$0xff] }
  0x2b   : > { %252 = vst [vmem:[%s2669_s26 + $0x180] sm:$0xff] %v251_v48  ;;  %254 = vst [vmem:[%s2669_s26 + $0x188] sm:$0xff] %v253_v49  ;;  %v257_v51 = vld [vmem:[%s2664_s25 + $0x828] sm:$0xff]  ;;  %v259_v52 = vld [vmem:[%s2664_s25 + $0x830] sm:$0xff] }
  0x2c   : > { %256 = vst [vmem:[%s2669_s26 + $0x190] sm:$0xff] %v255_v50  ;;  %v261_v53 = vld [vmem:[%s2664_s25 + $0x838] sm:$0xff]  ;;  %258 = vst [vmem:[%s2669_s26 + $0x198] sm:$0xff] %v257_v51  ;;  %v263_v54 = vld [vmem:[%s2664_s25 + $0x840] sm:$0xff] }
  0x2d   : > { %260 = vst [vmem:[%s2669_s26 + $0x1a0] sm:$0xff] %v259_v52  ;;  %262 = vst [vmem:[%s2669_s26 + $0x1a8] sm:$0xff] %v261_v53  ;;  %v265_v55 = vld [vmem:[%s2664_s25 + $0x848] sm:$0xff]  ;;  %v267_v56 = vld [vmem:[%s2664_s25 + $0x850] sm:$0xff] }
  0x2e   : > { %264 = vst [vmem:[%s2669_s26 + $0x1b0] sm:$0xff] %v263_v54  ;;  %266 = vst [vmem:[%s2669_s26 + $0x1b8] sm:$0xff] %v265_v55  ;;  %v269_v57 = vld [vmem:[%s2664_s25 + $0x858] sm:$0xff]  ;;  %v271_v58 = vld [vmem:[%s2664_s25 + $0x860] sm:$0xff] }
  0x2f   : > { %268 = vst [vmem:[%s2669_s26 + $0x1c0] sm:$0xff] %v267_v56  ;;  %v273_v59 = vld [vmem:[%s2664_s25 + $0x868] sm:$0xff]  ;;  %270 = vst [vmem:[%s2669_s26 + $0x1c8] sm:$0xff] %v269_v57 }
  0x30   : > { %272 = vst [vmem:[%s2669_s26 + $0x1d0] sm:$0xff] %v271_v58  ;;  %274 = vst [vmem:[%s2669_s26 + $0x1d8] sm:$0xff] %v273_v59 }
  0x31 PF: > { %p2389_p5 = scmp.ge.s32.totalorder %s2604_s14, 1  ;;  %p279_p6 = scmp.lt.s32.totalorder %s2604_s14, 9 }
  0x33   : > { %p280_p7 = pnand %p2389_p5, %p279_p6 }
  0x34   : > { %s286_s27 = sand.u32 (!%p280_p7), 1, %s2596_s12   ;;  %s308_s28 = smul.u32 (!%p280_p7), 60, %s2644_s15 }
  0x35   : > { %283 = sbr.rel (%p280_p7) target bundleno = 422 (0x1a6), region = 51  ;;  %p2390_p9 = scmp.ne.s32.totalorder (!%p280_p7), %s2644_s15, 0 }
  0x36   : > { %s2458_s29 = smul.u32 (!%p280_p7), 480, %s286_s27  ;;  %p309_p8 = scmp.lt.s32.totalorder (!%p280_p7), %s308_s28, 479 }
  0x38   : > { %s2797_s6 = scalar_lea.vmem (!%p280_p7), [#allocation2], %s2458_s29 }
  0x3c   : > { %s2951_s28 = smov (!%p309_p8, %s308_s28), 479  ;;  %318 = sbr.rel (%p2390_p9) target bundleno = 67 (0x43), region = 59 }
  0x3d   : > { %s2795_s5 = scalar_lea.vmem %s2943_s0, %s2951_s28  ;;  %vm319_vm0 = vcmask (!%p2390_p9), 123904   ;;  %v2606_v60 = vmov (!%p2390_p9), 0.0  }
  0x3e   : > { %320 = vst.msk [vmem:[%s2946_s3] sm:$0x3] (!%p2390_p9), %vm319_vm0, %v2606_v60 }
  0x43 PF: > { %v2485_v61 = vld [vmem:[%s2797_s6 + $0x4] ss:$240 sps:$4 sm:$0xff]   ;;  %v402_v62 = vlaneseq  ;;  %v2487_v63 = vld [vmem:[%s2797_s6] ss:$240 sps:$4 sm:$0xff]   ;;  %v2607_v0 = vmov 1966171168  }
  0x44   : > { %v400_v1 = vunpack.c.l.s4 %v2607_v0  ;;  %1125 = vmatprep.subr.bf16.mxu0 %v2485_v61  ;;  %v2488_v2 = vld [vmem:[%s2797_s6 + $0xc] ss:$240 sps:$4 sm:$0xff]   ;;  %v2490_v3 = vld [vmem:[%s2797_s6 + $0x8] ss:$240 sps:$4 sm:$0xff]   ;;  %v322_v4 = vld [vmem:[%s2795_s5] sm:$0xff]  ;;  %vm2326_vm1 = vcmask 123904  }
  0x45   : > { %v403_v5 = vshrl.u32 %v402_v62, 7  ;;  %1126 = vmatpush1.bf16.xpose.msra.mxu0 %v2487_v63  ;;  %v398_v6 = vcombine.high %v322_v4, %v322_v4  ;;  %1165 = vmatprep.subr.bf16.mxu1 %v2488_v2  ;;  %v2494_v8 = vld [vmem:[%s2797_s6 + $0x14] ss:$240 sps:$4 sm:$0xff]   ;;  %v2497_v10 = vld [vmem:[%s2797_s6 + $0x1c] ss:$240 sps:$4 sm:$0xff]   ;;  %p2452_p10 = scmp.ne.s32.totalorder %s2644_s15, 7 }
  0x46   : > { %v401_v7 = vunpack.c.0.s8 %v400_v1  ;;  %1166 = vmatpush1.bf16.xpose.msra.mxu1 %v2490_v3  ;;  %1205 = vmatprep.subr.bf16.mxu0 %v2494_v8  ;;  %v323_v13 = vld [vmem:[%s2795_s5 + $0x8] sm:$0xff]  ;;  %v2492_v19 = vld [vmem:[%s2797_s6 + $0x10] ss:$240 sps:$4 sm:$0xff]   ;;  %v2500_v24 = vld [vmem:[%s2797_s6 + $0x24] ss:$240 sps:$4 sm:$0xff]  }
  0x47   : > { %1245 = vmatprep.subr.bf16.mxu1 %v2497_v10  ;;  %v2495_v23 = vld [vmem:[%s2797_s6 + $0x18] ss:$240 sps:$4 sm:$0xff]   ;;  %v447_v26 = vcombine.high %v323_v13, %v323_v13  ;;  %v2503_v28 = vld [vmem:[%s2797_s6 + $0x2c] ss:$240 sps:$4 sm:$0xff]   ;;  %v2498_v32 = vld [vmem:[%s2797_s6 + $0x20] ss:$240 sps:$4 sm:$0xff]  }
  0x48   : > { %v2809_v9 = vsub.s32 %v401_v7, %v403_v5  ;;  %v2506_v34 = vld [vmem:[%s2797_s6 + $0x34] ss:$240 sps:$4 sm:$0xff]   ;;  %v2501_v35 = vld [vmem:[%s2797_s6 + $0x28] ss:$240 sps:$4 sm:$0xff]   ;;  %v2509_v38 = vld [vmem:[%s2797_s6 + $0x3c] ss:$240 sps:$4 sm:$0xff]  }
  0x49   : > { %v324_v39 = vld [vmem:[%s2795_s5 + $0x10] sm:$0xff]  ;;  %v2507_v46 = vld [vmem:[%s2797_s6 + $0x38] ss:$240 sps:$4 sm:$0xff]   ;;  %v2516_v50 = vld [vmem:[%s2797_s6 + $0x4c] ss:$240 sps:$4 sm:$0xff]  }
  0x4a   : > { %v405_v11 = vrot.slane %v322_v4, %v2809_v9  ;;  %v412_v12 = vrot.slane %v398_v6, %v2809_v9  ;;  %v454_v17 = vrot.slane %v323_v13, %v2809_v9  ;;  %v461_v31 = vrot.slane %v447_v26, %v2809_v9  ;;  %v2504_v43 = vld [vmem:[%s2797_s6 + $0x30] ss:$240 sps:$4 sm:$0xff]   ;;  %v2513_v45 = vld [vmem:[%s2797_s6 + $0x44] ss:$240 sps:$4 sm:$0xff]   ;;  %v2514_v55 = vld [vmem:[%s2797_s6 + $0x48] ss:$240 sps:$4 sm:$0xff]  }
  0x4b   : > { %v503_v42 = vrot.slane %v324_v39, %v2809_v9  ;;  %v496_v49 = vcombine.high %v324_v39, %v324_v39  ;;  %v2511_v54 = vld [vmem:[%s2797_s6 + $0x40] ss:$240 sps:$4 sm:$0xff]   ;;  %v2519_v57 = vld [vmem:[%s2797_s6 + $0x54] ss:$240 sps:$4 sm:$0xff]   ;;  %v2522_v59 = vld [vmem:[%s2797_s6 + $0x5c] ss:$240 sps:$4 sm:$0xff]  }
  0x4c   : > { %v413_v14 = vcombine.high %v405_v11, %v405_v11  ;;  %v421_v15 = vrot.slane %v405_v11, %v2809_v9  ;;  %v414_v16 = vcombine.high %v412_v12, %v412_v12  ;;  %v462_v25 = vcombine.high %v454_v17, %v454_v17  ;;  %v325_v61 = vld [vmem:[%s2795_s5 + $0x18] sm:$0xff]  ;;  %v2517_v1 = vld [vmem:[%s2797_s6 + $0x50] ss:$240 sps:$4 sm:$0xff]   ;;  %v2526_v3 = vld [vmem:[%s2797_s6 + $0x64] ss:$240 sps:$4 sm:$0xff]  }
  0x4d   : > { %v428_v29 = vrot.slane %v412_v12, %v2809_v9  ;;  %v463_v37 = vcombine.high %v461_v31, %v461_v31  ;;  %v470_v40 = vrot.slane %v454_v17, %v2809_v9  ;;  %v511_v48 = vcombine.high %v503_v42, %v503_v42  ;;  %v2520_v4 = vld [vmem:[%s2797_s6 + $0x58] ss:$240 sps:$4 sm:$0xff]   ;;  %v2529_v8 = vld [vmem:[%s2797_s6 + $0x6c] ss:$240 sps:$4 sm:$0xff]   ;;  %v2524_v13 = vld [vmem:[%s2797_s6 + $0x60] ss:$240 sps:$4 sm:$0xff]  }
  0x4e   : > { %v435_v18 = vrot.slane %v413_v14, %v2809_v9  ;;  %v442_v20 = vrot.slane %v414_v16, %v2809_v9  ;;  %v443_v21 = vcombine.high %v421_v15, %v421_v15  ;;  %v484_v30 = vrot.slane %v462_v25, %v2809_v9  ;;  %v2527_v16 = vld [vmem:[%s2797_s6 + $0x68] ss:$240 sps:$4 sm:$0xff]   ;;  %v2539_v26 = vld [vmem:[%s2797_s6 + $0x84] ss:$240 sps:$4 sm:$0xff]  }
  0x4f   : > { %v444_v33 = vcombine.high %v428_v29, %v428_v29  ;;  %v491_v41 = vrot.slane %v463_v37, %v2809_v9  ;;  %v492_v44 = vcombine.high %v470_v40, %v470_v40  ;;  %v477_v51 = vrot.slane %v461_v31, %v2809_v9  ;;  %v2542_v31 = vld [vmem:[%s2797_s6 + $0x8c] ss:$240 sps:$4 sm:$0xff]   ;;  %v2545_v37 = vld [vmem:[%s2797_s6 + $0x94] ss:$240 sps:$4 sm:$0xff]  }
  0x50   : > { %1157 = vmatprep.mubr.bf16.mxu0 %v435_v18  ;;  %v445_v22 = vcombine.high %v435_v18, %v435_v18  ;;  %v446_v27 = vcombine.high %v442_v20, %v442_v20  ;;  %v494_v36 = vcombine.high %v484_v30, %v484_v30  ;;  %v533_v52 = vrot.slane %v511_v48, %v2809_v9  ;;  %v2552_v48 = vld [vmem:[%s2797_s6 + $0xa4] ss:$240 sps:$4 sm:$0xff]  }
  0x51   : > { %1158 = vmatmul.mubr.bf16.vlgmr.msra.gmra.mrb[0].mxu0 %v421_v15  ;;  %v495_v47 = vcombine.high %v491_v41, %v491_v41  ;;  %v510_v53 = vrot.slane %v496_v49, %v2809_v9  ;;  %v493_v56 = vcombine.high %v477_v51, %v477_v51  ;;  %v519_v62 = vrot.slane %v503_v42, %v2809_v9  ;;  %v2532_v15 = vld [vmem:[%s2797_s6 + $0x74] ss:$240 sps:$4 sm:$0xff]   ;;  %v327_v42 = vld [vmem:[%s2795_s5 + $0x28] sm:$0xff] }
  0x52   : > { %1206 = vmatpush1.bf16.xpose.msra.mxu0 %v2492_v19  ;;  %1197 = vmatprep.mubr.bf16.mxu1 %v445_v22  ;;  %v543_v58 = vcombine.high %v533_v52, %v533_v52  ;;  %v552_v0 = vrot.slane %v325_v61, %v2809_v9  ;;  %v545_v7 = vcombine.high %v325_v61, %v325_v61  ;;  %v2535_v19 = vld [vmem:[%s2797_s6 + $0x7c] ss:$240 sps:$4 sm:$0xff]   ;;  %v2546_v49 = vld [vmem:[%s2797_s6 + $0x98] ss:$240 sps:$4 sm:$0xff]  }
  0x53   : > { %1198 = vmatmul.mubr.bf16.vlgmr.msra.gmra.mrb[0].mxu1 %v443_v21  ;;  %1237 = vmatprep.mubr.bf16.mxu0 %v442_v20  ;;  %v512_v60 = vcombine.high %v510_v53, %v510_v53  ;;  %v541_v2 = vcombine.high %v519_v62, %v519_v62  ;;  %v526_v10 = vrot.slane %v510_v53, %v2809_v9  ;;  %v326_v20 = vld [vmem:[%s2795_s5 + $0x20] sm:$0xff]  ;;  %v2555_v53 = vld [vmem:[%s2797_s6 + $0xac] ss:$240 sps:$4 sm:$0xff]  }
  0x54   : > { %1246 = vmatpush1.bf16.xpose.msra.mxu1 %v2495_v23  ;;  %1285 = vmatprep.subr.bf16.mxu0 %v2500_v24  ;;  %v560_v6 = vcombine.high %v552_v0, %v552_v0  ;;  %v559_v12 = vrot.slane %v545_v7, %v2809_v9  ;;  %v568_v21 = vrot.slane %v552_v0, %v2809_v9  ;;  %v2530_v24 = vld [vmem:[%s2797_s6 + $0x70] ss:$240 sps:$4 sm:$0xff]   ;;  %v2559_v7 = vld [vmem:[%s2797_s6 + $0xb8] ss:$240 sps:$4 sm:$0xff]  }
  0x55   : > { %1277 = vmatprep.mubr.bf16.mxu1 %v446_v27  ;;  %1325 = vmatprep.subr.bf16.mxu1 %v2503_v28  ;;  %v540_v63 = vrot.slane %v512_v60, %v2809_v9  ;;  %v542_v14 = vcombine.high %v526_v10, %v526_v10  ;;  %v601_v23 = vrot.slane %v326_v20, %v2809_v9  ;;  %v2533_v27 = vld [vmem:[%s2797_s6 + $0x78] ss:$240 sps:$4 sm:$0xff]   ;;  %v328_v0 = vld [vmem:[%s2795_s5 + $0x30] sm:$0xff] }
  0x56   : > { %v582_v11 = vrot.slane %v560_v6, %v2809_v9  ;;  %v561_v18 = vcombine.high %v559_v12, %v559_v12  ;;  %v590_v25 = vcombine.high %v568_v21, %v568_v21  ;;  %v2553_v60 = vld [vmem:[%s2797_s6 + $0xa8] ss:$240 sps:$4 sm:$0xff]   ;;  %v2565_v6 = vld [vmem:[%s2797_s6 + $0xc4] ss:$240 sps:$4 sm:$0xff]  }
  0x57   : > { %v544_v5 = vcombine.high %v540_v63, %v540_v63 }
  0x58   : > { %v592_v17 = vcombine.high %v582_v11, %v582_v11  ;;  %v589_v22 = vrot.slane %v561_v18, %v2809_v9  ;;  %v2571_v18 = vld [vmem:[%s2797_s6 + $0xd4] ss:$240 sps:$4 sm:$0xff]  }
  0x59   : > { %1238 = vmatmul.mubr.bf16.vlgmr.msra.gmra.mrb[4].mxu0 %v428_v29  ;;  %v609_v29 = vcombine.high %v601_v23, %v601_v23 }
  0x5a   : > { %1286 = vmatpush1.bf16.xpose.msra.mxu0 %v2498_v32  ;;  %1317 = vmatprep.mubr.bf16.mxu0 %v484_v30  ;;  %v593_v28 = vcombine.high %v589_v22, %v589_v22  ;;  %v594_v30 = vcombine.high %v326_v20, %v326_v20  ;;  %v575_v32 = vrot.slane %v559_v12, %v2809_v9  ;;  %v2568_v12 = vld [vmem:[%s2797_s6 + $0xcc] ss:$240 sps:$4 sm:$0xff]  }
  0x5b   : > { %1278 = vmatmul.mubr.bf16.vlgmr.msra.gmra.mrb[4].mxu1 %v444_v33  ;;  %1365 = vmatprep.subr.bf16.mxu0 %v2506_v34  ;;  %v631_v33 = vrot.slane %v609_v29, %v2809_v9  ;;  %v2572_v29 = vld [vmem:[%s2797_s6 + $0xd8] ss:$240 sps:$4 sm:$0xff]  }
  0x5c   : > { %1326 = vmatpush1.bf16.xpose.msra.mxu1 %v2501_v35  ;;  %1357 = vmatprep.mubr.bf16.mxu1 %v494_v36  ;;  %v608_v34 = vrot.slane %v594_v30, %v2809_v9  ;;  %v2537_v35 = vld [vmem:[%s2797_s6 + $0x80] ss:$240 sps:$4 sm:$0xff]   ;;  %v591_v36 = vcombine.high %v575_v32, %v575_v32 }
  0x5d   : > { %1405 = vmatprep.subr.bf16.mxu1 %v2509_v38  ;;  %v2540_v38 = vld [vmem:[%s2797_s6 + $0x88] ss:$240 sps:$4 sm:$0xff]   ;;  %v641_v39 = vcombine.high %v631_v33, %v631_v33 }
  0x61   : > { %1318 = vmatmul.mubr.bf16.vlgmr.msra.gmra.mrb[8].mxu0 %v470_v40  ;;  %v610_v40 = vcombine.high %v608_v34, %v608_v34 }
  0x62   : > { %1366 = vmatpush1.bf16.xpose.msra.mxu0 %v2504_v43  ;;  %1397 = vmatprep.mubr.bf16.mxu0 %v491_v41  ;;  %v2548_v41 = vld [vmem:[%s2797_s6 + $0x9c] ss:$240 sps:$4 sm:$0xff]   ;;  %v617_v43 = vrot.slane %v601_v23, %v2809_v9 }
  0x63   : > { %1358 = vmatmul.mubr.bf16.vlgmr.msra.gmra.mrb[8].mxu1 %v492_v44  ;;  %1445 = vmatprep.subr.bf16.mxu0 %v2513_v45  ;;  %v638_v44 = vrot.slane %v610_v40, %v2809_v9  ;;  %v650_v45 = vrot.slane %v327_v42, %v2809_v9 }
  0x64   : > { %1406 = vmatpush1.bf16.xpose.msra.mxu1 %v2507_v46  ;;  %1437 = vmatprep.mubr.bf16.mxu1 %v495_v47  ;;  %v2543_v46 = vld [vmem:[%s2797_s6 + $0x90] ss:$240 sps:$4 sm:$0xff]   ;;  %v639_v47 = vcombine.high %v617_v43, %v617_v43 }
  0x65   : > { %1485 = vmatprep.subr.bf16.mxu1 %v2516_v50  ;;  %v642_v50 = vcombine.high %v638_v44, %v638_v44 }
  0x69   : > { %1398 = vmatmul.mubr.bf16.vlgmr.msra.gmra.mrb[12].mxu0 %v477_v51  ;;  %v658_v51 = vcombine.high %v650_v45, %v650_v45 }
  0x6a   : > { %1446 = vmatpush1.bf16.xpose.msra.mxu0 %v2511_v54  ;;  %1477 = vmatprep.mubr.bf16.mxu0 %v533_v52  ;;  %v643_v52 = vcombine.high %v327_v42, %v327_v42  ;;  %v624_v54 = vrot.slane %v608_v34, %v2809_v9 }
  0x6b   : > { %1438 = vmatmul.mubr.bf16.vlgmr.msra.gmra.mrb[12].mxu1 %v493_v56  ;;  %1525 = vmatprep.subr.bf16.mxu0 %v2519_v57  ;;  %v2550_v57 = vld [vmem:[%s2797_s6 + $0xa0] ss:$240 sps:$4 sm:$0xff]  }
  0x6c   : > { %1486 = vmatpush1.bf16.xpose.msra.mxu1 %v2514_v55  ;;  %1517 = vmatprep.mubr.bf16.mxu1 %v543_v58  ;;  %v680_v55 = vrot.slane %v658_v51, %v2809_v9  ;;  %v657_v56 = vrot.slane %v643_v52, %v2809_v9  ;;  %v640_v58 = vcombine.high %v624_v54, %v624_v54 }
  0x6d   : > { %1565 = vmatprep.subr.bf16.mxu1 %v2522_v59  ;;  %v2558_v59 = vld [vmem:[%s2797_s6 + $0xb4] ss:$240 sps:$4 sm:$0xff]  }
  0x6e   : > { %v690_v61 = vcombine.high %v680_v55, %v680_v55 }
  0x71   : > { %1478 = vmatmul.mubr.bf16.vlgmr.msra.gmra.mrb[16].mxu0 %v519_v62  ;;  %v659_v62 = vcombine.high %v657_v56, %v657_v56 }
  0x72   : > { %1526 = vmatpush1.bf16.xpose.msra.mxu0 %v2517_v1  ;;  %1557 = vmatprep.mubr.bf16.mxu0 %v540_v63  ;;  %v2561_v63 = vld [vmem:[%s2797_s6 + $0xbc] ss:$240 sps:$4 sm:$0xff]   ;;  %v666_v1 = vrot.slane %v650_v45, %v2809_v9 }
  0x73   : > { %1518 = vmatmul.mubr.bf16.vlgmr.msra.gmra.mrb[16].mxu1 %v541_v2  ;;  %1605 = vmatprep.subr.bf16.mxu0 %v2526_v3  ;;  %v687_v2 = vrot.slane %v659_v62, %v2809_v9  ;;  %v699_v3 = vrot.slane %v328_v0, %v2809_v9 }
  0x74   : > { %1566 = vmatpush1.bf16.xpose.msra.mxu1 %v2520_v4  ;;  %1597 = vmatprep.mubr.bf16.mxu1 %v544_v5  ;;  %v2556_v4 = vld [vmem:[%s2797_s6 + $0xb0] ss:$240 sps:$4 sm:$0xff]   ;;  %v688_v5 = vcombine.high %v666_v1, %v666_v1 }
  0x75   : > { %1645 = vmatprep.subr.bf16.mxu1 %v2529_v8  ;;  %v691_v8 = vcombine.high %v687_v2, %v687_v2  ;;  %v715_v23 = vrot.slane %v699_v3, %v2809_v9 }
  0x79   : > { %1558 = vmatmul.mubr.bf16.vlgmr.msra.gmra.mrb[20].mxu0 %v526_v10  ;;  %v707_v10 = vcombine.high %v699_v3, %v699_v3 }
  0x7a   : > { %1606 = vmatpush1.bf16.xpose.msra.mxu0 %v2524_v13  ;;  %1637 = vmatprep.mubr.bf16.mxu0 %v582_v11  ;;  %v692_v11 = vcombine.high %v328_v0, %v328_v0  ;;  %v673_v13 = vrot.slane %v657_v56, %v2809_v9 }
  0x7b   : > { %1598 = vmatmul.mubr.bf16.vlgmr.msra.gmra.mrb[20].mxu1 %v542_v14  ;;  %1685 = vmatprep.subr.bf16.mxu0 %v2532_v15  ;;  %v729_v14 = vrot.slane %v707_v10, %v2809_v9 }
  0x7c   : > { %1646 = vmatpush1.bf16.xpose.msra.mxu1 %v2527_v16  ;;  %1677 = vmatprep.mubr.bf16.mxu1 %v592_v17  ;;  %v706_v15 = vrot.slane %v692_v11, %v2809_v9  ;;  %v2563_v16 = vld [vmem:[%s2797_s6 + $0xc0] ss:$240 sps:$4 sm:$0xff]   ;;  %v689_v17 = vcombine.high %v673_v13, %v673_v13 }
  0x7d   : > { %1725 = vmatprep.subr.bf16.mxu1 %v2535_v19  ;;  %v2566_v19 = vld [vmem:[%s2797_s6 + $0xc8] ss:$240 sps:$4 sm:$0xff]   ;;  %v739_v20 = vcombine.high %v729_v14, %v729_v14 }
  0x81   : > { %1638 = vmatmul.mubr.bf16.vlgmr.msra.gmra.mrb[24].mxu0 %v568_v21  ;;  %v708_v21 = vcombine.high %v706_v15, %v706_v15 }
  0x82   : > { %1686 = vmatpush1.bf16.xpose.msra.mxu0 %v2530_v24  ;;  %1717 = vmatprep.mubr.bf16.mxu0 %v589_v22  ;;  %v2574_v22 = vld [vmem:[%s2797_s6 + $0xdc] ss:$240 sps:$4 sm:$0xff]  }
  0x83   : > { %1678 = vmatmul.mubr.bf16.vlgmr.msra.gmra.mrb[24].mxu1 %v590_v25  ;;  %1765 = vmatprep.subr.bf16.mxu0 %v2539_v26  ;;  %v736_v24 = vrot.slane %v708_v21, %v2809_v9  ;;  %v2391_v25 = vld.sshfl [vmem:[%s2795_s5 + $0x38] sm:$0x33 pattern:$0x75316420]  ;;  %v2569_v26 = vld [vmem:[%s2797_s6 + $0xd0] ss:$240 sps:$4 sm:$0xff]  }
  0x84   : > { %1726 = vmatpush1.bf16.xpose.msra.mxu1 %v2533_v27  ;;  %1757 = vmatprep.mubr.bf16.mxu1 %v593_v28  ;;  %v737_v27 = vcombine.high %v715_v23, %v715_v23  ;;  %v2578_v28 = vld [vmem:[%s2797_s6 + $0xe4] ss:$240 sps:$4 sm:$0xff]  }
  0x85   : > { %1805 = vmatprep.subr.bf16.mxu1 %v2542_v31  ;;  %v740_v30 = vcombine.high %v736_v24, %v736_v24  ;;  %v748_v31 = vcombine.high %v2391_v25, %v2391_v25 }
  0x87   : > { %v762_v34 = vrot.slane %v748_v31, %v2809_v9 }
  0x89   : > { %1718 = vmatmul.mubr.bf16.vlgmr.msra.gmra.mrb[28].mxu0 %v575_v32  ;;  %v2581_v32 = vld [vmem:[%s2797_s6 + $0xec] ss:$240 sps:$4 sm:$0xff]  }
  0x8a   : > { %1766 = vmatpush1.bf16.xpose.msra.mxu0 %v2537_v35  ;;  %1797 = vmatprep.mubr.bf16.mxu0 %v631_v33  ;;  %v722_v33 = vrot.slane %v706_v15, %v2809_v9  ;;  %v2576_v35 = vld [vmem:[%s2797_s6 + $0xe0] ss:$240 sps:$4 sm:$0xff]  }
  0x8b   : > { %1758 = vmatmul.mubr.bf16.vlgmr.msra.gmra.mrb[28].mxu1 %v591_v36  ;;  %1845 = vmatprep.subr.bf16.mxu0 %v2545_v37  ;;  %v2579_v37 = vld [vmem:[%s2797_s6 + $0xe8] ss:$240 sps:$4 sm:$0xff]  }
  0x8c   : > { %1806 = vmatpush1.bf16.xpose.msra.mxu1 %v2540_v38  ;;  %1837 = vmatprep.mubr.bf16.mxu1 %v641_v39  ;;  %v738_v36 = vcombine.high %v722_v33, %v722_v33  ;;  %v764_v38 = vcombine.high %v762_v34, %v762_v34  ;;  %v755_v39 = vrot.slane %v2391_v25, %v2809_v9 }
  0x8d   : > { %1885 = vmatprep.subr.bf16.mxu1 %v2548_v41 }
  0x8e   : > { %v763_v40 = vcombine.high %v755_v39, %v755_v39 }
  0x91   : > { %1798 = vmatmul.mubr.bf16.vlgmr.msra.gmra.mrb[32].mxu0 %v617_v43 }
  0x92   : > { %1846 = vmatpush1.bf16.xpose.msra.mxu0 %v2543_v46  ;;  %1877 = vmatprep.mubr.bf16.mxu0 %v638_v44 }
  0x93   : > { %1838 = vmatmul.mubr.bf16.vlgmr.msra.gmra.mrb[32].mxu1 %v639_v47  ;;  %1925 = vmatprep.subr.bf16.mxu0 %v2552_v48 }
  0x94   : > { %1886 = vmatpush1.bf16.xpose.msra.mxu1 %v2546_v49  ;;  %1917 = vmatprep.mubr.bf16.mxu1 %v642_v50 }
  0x95   : > { %1965 = vmatprep.subr.bf16.mxu1 %v2555_v53 }
  0x99   : > { %1878 = vmatmul.mubr.bf16.vlgmr.msra.gmra.mrb[36].mxu0 %v624_v54 }
  0x9a   : > { %1926 = vmatpush1.bf16.xpose.msra.mxu0 %v2550_v57  ;;  %1957 = vmatprep.mubr.bf16.mxu0 %v680_v55 }
  0x9b   : > { %1918 = vmatmul.mubr.bf16.vlgmr.msra.gmra.mrb[36].mxu1 %v640_v58  ;;  %2005 = vmatprep.subr.bf16.mxu0 %v2558_v59 }
  0x9c   : > { %1966 = vmatpush1.bf16.xpose.msra.mxu1 %v2553_v60  ;;  %1997 = vmatprep.mubr.bf16.mxu1 %v690_v61 }
  0x9d   : > { %2045 = vmatprep.subr.bf16.mxu1 %v2561_v63 }
  0xa1   : > { %1958 = vmatmul.mubr.bf16.vlgmr.msra.gmra.mrb[40].mxu0 %v666_v1 }
  0xa2   : > { %2006 = vmatpush1.bf16.xpose.msra.mxu0 %v2556_v4  ;;  %2037 = vmatprep.mubr.bf16.mxu0 %v687_v2 }
  0xa3   : > { %1998 = vmatmul.mubr.bf16.vlgmr.msra.gmra.mrb[40].mxu1 %v688_v5  ;;  %2085 = vmatprep.subr.bf16.mxu0 %v2565_v6 }
  0xa4   : > { %2046 = vmatpush1.bf16.xpose.msra.mxu1 %v2559_v7  ;;  %2077 = vmatprep.mubr.bf16.mxu1 %v691_v8 }
  0xa5   : > { %2125 = vmatprep.subr.bf16.mxu1 %v2568_v12 }
  0xa9   : > { %2038 = vmatmul.mubr.bf16.vlgmr.msra.gmra.mrb[44].mxu0 %v673_v13 }
  0xaa   : > { %2086 = vmatpush1.bf16.xpose.msra.mxu0 %v2563_v16  ;;  %2117 = vmatprep.mubr.bf16.mxu0 %v729_v14 }
  0xab   : > { %2078 = vmatmul.mubr.bf16.vlgmr.msra.gmra.mrb[44].mxu1 %v689_v17  ;;  %2165 = vmatprep.subr.bf16.mxu0 %v2571_v18 }
  0xac   : > { %2126 = vmatpush1.bf16.xpose.msra.mxu1 %v2566_v19  ;;  %2157 = vmatprep.mubr.bf16.mxu1 %v739_v20 }
  0xad   : > { %2205 = vmatprep.subr.bf16.mxu1 %v2574_v22 }
  0xb1   : > { %2118 = vmatmul.mubr.bf16.vlgmr.msra.gmra.mrb[48].mxu0 %v715_v23 }
  0xb2   : > { %2166 = vmatpush1.bf16.xpose.msra.mxu0 %v2569_v26  ;;  %2197 = vmatprep.mubr.bf16.mxu0 %v736_v24 }
  0xb3   : > { %2158 = vmatmul.mubr.bf16.vlgmr.msra.gmra.mrb[48].mxu1 %v737_v27  ;;  %2245 = vmatprep.subr.bf16.mxu0 %v2578_v28 }
  0xb4   : > { %2206 = vmatpush1.bf16.xpose.msra.mxu1 %v2572_v29  ;;  %2237 = vmatprep.mubr.bf16.mxu1 %v740_v30 }
  0xb5   : > { %2285 = vmatprep.subr.bf16.mxu1 %v2581_v32 }
  0xb9   : > { %2198 = vmatmul.mubr.bf16.vlgmr.msra.gmra.mrb[52].mxu0 %v722_v33 }
  0xba   : > { %2246 = vmatpush1.bf16.xpose.msra.mxu0 %v2576_v35  ;;  %2277 = vmatprep.mubr.bf16.mxu0 %v762_v34 }
  0xbb   : > { %2238 = vmatmul.mubr.bf16.vlgmr.msra.gmra.mrb[52].mxu1 %v738_v36 }
  0xbc   : > { %2286 = vmatpush1.bf16.xpose.msra.mxu1 %v2579_v37  ;;  %2317 = vmatprep.mubr.bf16.mxu1 %v764_v38 }
  0xc1   : > { %2278 = vmatmul.mubr.bf16.vlgmr.msra.gmra.mrb[56].mxu0 %v755_v39 }
  0xc3   : > { %2318 = vmatmul.mubr.bf16.vlgmr.msra.gmra.mrb[56].mxu1 %v763_v40 }
 0x124   : > { %v1159_v41 = vpop.f32.mrb[0].mxu0 }
 0x125   : > { %v1161_v42 = vpop.f32.mrb[1].mxu0 }
 0x126   : > { %v1162_v43 = vpop.f32.mrb[2].mxu0  ;;  %v1199_v44 = vpop.f32.mrb[0].mxu1 }
 0x127   : > { %v1200_v45 = vadd.f32 %v1199_v44, %v1159_v41  ;;  %v1163_v46 = vpop.f32.mrb[3].mxu0  ;;  %v1201_v47 = vpop.f32.mrb[1].mxu1 }
 0x128   : > { %v1202_v48 = vpop.f32.mrb[2].mxu1 }
 0x129   : > { %v1203_v49 = vpop.f32.mrb[3].mxu1 }
 0x12c   : > { %v1239_v50 = vpop.f32.mrb[4].mxu0 }
 0x12d   : > { %v1240_v51 = vadd.f32 %v1239_v50, %v1200_v45  ;;  %v1241_v52 = vpop.f32.mrb[5].mxu0 }
 0x12e   : > { %v1242_v53 = vpop.f32.mrb[6].mxu0  ;;  %v1279_v54 = vpop.f32.mrb[4].mxu1 }
 0x12f   : > { %v1280_v9 = vadd.f32 %v1279_v54, %v1240_v51  ;;  %v1243_v55 = vpop.f32.mrb[7].mxu0  ;;  %v1281_v56 = vpop.f32.mrb[5].mxu1 }
 0x130   : > { %v1282_v57 = vpop.f32.mrb[6].mxu1 }
 0x131   : > { %v1283_v58 = vpop.f32.mrb[7].mxu1 }
 0x134   : > { %v1319_v59 = vpop.f32.mrb[8].mxu0 }
 0x135   : > { %v1320_v60 = vadd.f32 %v1319_v59, %v1280_v9  ;;  %v1321_v61 = vpop.f32.mrb[9].mxu0 }
 0x136   : > { %v1322_v62 = vpop.f32.mrb[10].mxu0  ;;  %v1359_v63 = vpop.f32.mrb[8].mxu1 }
 0x137   : > { %v1360_v0 = vadd.f32 %v1359_v63, %v1320_v60  ;;  %v1323_v1 = vpop.f32.mrb[11].mxu0  ;;  %v1361_v2 = vpop.f32.mrb[9].mxu1 }
 0x138   : > { %v1362_v3 = vpop.f32.mrb[10].mxu1 }
 0x139   : > { %v1363_v4 = vpop.f32.mrb[11].mxu1 }
 0x13c   : > { %v1399_v5 = vpop.f32.mrb[12].mxu0 }
 0x13d   : > { %v1400_v6 = vadd.f32 %v1399_v5, %v1360_v0  ;;  %v1401_v7 = vpop.f32.mrb[13].mxu0 }
 0x13e   : > { %v1402_v8 = vpop.f32.mrb[14].mxu0  ;;  %v1439_v10 = vpop.f32.mrb[12].mxu1 }
 0x13f   : > { %v1440_v11 = vadd.f32 %v1439_v10, %v1400_v6  ;;  %v1403_v12 = vpop.f32.mrb[15].mxu0  ;;  %v1441_v13 = vpop.f32.mrb[13].mxu1 }
 0x140   : > { %v1442_v14 = vpop.f32.mrb[14].mxu1 }
 0x141   : > { %v1443_v15 = vpop.f32.mrb[15].mxu1 }
 0x144   : > { %v1479_v16 = vpop.f32.mrb[16].mxu0 }
 0x145   : > { %v1480_v17 = vadd.f32 %v1479_v16, %v1440_v11  ;;  %v1481_v18 = vpop.f32.mrb[17].mxu0 }
 0x146   : > { %v1482_v19 = vpop.f32.mrb[18].mxu0  ;;  %v1519_v20 = vpop.f32.mrb[16].mxu1 }
 0x147   : > { %v1520_v21 = vadd.f32 %v1519_v20, %v1480_v17  ;;  %v1483_v22 = vpop.f32.mrb[19].mxu0  ;;  %v1521_v23 = vpop.f32.mrb[17].mxu1 }
 0x148   : > { %v1522_v24 = vpop.f32.mrb[18].mxu1 }
 0x149   : > { %v1523_v25 = vpop.f32.mrb[19].mxu1 }
 0x14c   : > { %v1559_v26 = vpop.f32.mrb[20].mxu0 }
 0x14d   : > { %v1560_v27 = vadd.f32 %v1559_v26, %v1520_v21  ;;  %v1561_v28 = vpop.f32.mrb[21].mxu0 }
 0x14e   : > { %v1562_v29 = vpop.f32.mrb[22].mxu0  ;;  %v1599_v30 = vpop.f32.mrb[20].mxu1 }
 0x14f   : > { %v1600_v31 = vadd.f32 %v1599_v30, %v1560_v27  ;;  %v1563_v32 = vpop.f32.mrb[23].mxu0  ;;  %v1601_v33 = vpop.f32.mrb[21].mxu1 }
 0x150   : > { %v1602_v34 = vpop.f32.mrb[22].mxu1 }
 0x151   : > { %v1603_v35 = vpop.f32.mrb[23].mxu1 }
 0x154   : > { %v1639_v36 = vpop.f32.mrb[24].mxu0 }
 0x155   : > { %v1640_v37 = vadd.f32 %v1639_v36, %v1600_v31  ;;  %v1641_v38 = vpop.f32.mrb[25].mxu0 }
 0x156   : > { %v1642_v39 = vpop.f32.mrb[26].mxu0  ;;  %v1679_v40 = vpop.f32.mrb[24].mxu1 }
 0x157   : > { %v1680_v41 = vadd.f32 %v1679_v40, %v1640_v37  ;;  %v1643_v42 = vpop.f32.mrb[27].mxu0  ;;  %v1681_v43 = vpop.f32.mrb[25].mxu1 }
 0x158   : > { %v1682_v44 = vpop.f32.mrb[26].mxu1 }
 0x159   : > { %v1683_v45 = vpop.f32.mrb[27].mxu1 }
 0x15c   : > { %v1719_v46 = vpop.f32.mrb[28].mxu0 }
 0x15d   : > { %v1720_v47 = vadd.f32 %v1719_v46, %v1680_v41  ;;  %v1721_v48 = vpop.f32.mrb[29].mxu0 }
 0x15e   : > { %v1722_v49 = vpop.f32.mrb[30].mxu0  ;;  %v1759_v50 = vpop.f32.mrb[28].mxu1 }
 0x15f   : > { %v1760_v51 = vadd.f32 %v1759_v50, %v1720_v47  ;;  %v1723_v52 = vpop.f32.mrb[31].mxu0  ;;  %v1761_v53 = vpop.f32.mrb[29].mxu1 }
 0x160   : > { %v1762_v54 = vpop.f32.mrb[30].mxu1 }
 0x161   : > { %v1763_v9 = vpop.f32.mrb[31].mxu1 }
 0x164   : > { %v1799_v55 = vpop.f32.mrb[32].mxu0 }
 0x165   : > { %v1800_v56 = vadd.f32 %v1799_v55, %v1760_v51  ;;  %v1801_v57 = vpop.f32.mrb[33].mxu0  ;;  %v321_v55 = vld [vmem:[%s2946_s3] sm:$0x3] }
 0x166   : > { %v1802_v58 = vpop.f32.mrb[34].mxu0  ;;  %v1839_v59 = vpop.f32.mrb[32].mxu1 }
 0x167   : > { %v1840_v60 = vadd.f32 %v1839_v59, %v1800_v56  ;;  %v1803_v61 = vpop.f32.mrb[35].mxu0  ;;  %v1841_v62 = vpop.f32.mrb[33].mxu1 }
 0x168   : > { %v1842_v63 = vpop.f32.mrb[34].mxu1 }
 0x169   : > { %v1843_v0 = vpop.f32.mrb[35].mxu1 }
 0x16a   : > { %v2453_v0 = vld [vmem:[%s2945_s2] ss:$0 sm:$0xff] (!%p2452_p10) }
 0x16c   : > { %v1879_v1 = vpop.f32.mrb[36].mxu0 }
 0x16d   : > { %v1880_v2 = vadd.f32 %v1879_v1, %v1840_v60  ;;  %v1881_v3 = vpop.f32.mrb[37].mxu0 }
 0x16e   : > { %v1882_v4 = vpop.f32.mrb[38].mxu0  ;;  %v1919_v5 = vpop.f32.mrb[36].mxu1 }
 0x16f   : > { %v1920_v6 = vadd.f32 %v1919_v5, %v1880_v2  ;;  %v1883_v7 = vpop.f32.mrb[39].mxu0  ;;  %v1921_v8 = vpop.f32.mrb[37].mxu1 }
 0x170   : > { %v1922_v10 = vpop.f32.mrb[38].mxu1 }
 0x171   : > { %v1923_v11 = vpop.f32.mrb[39].mxu1 }
 0x174   : > { %v1959_v12 = vpop.f32.mrb[40].mxu0 }
 0x175   : > { %v1960_v13 = vadd.f32 %v1959_v12, %v1920_v6  ;;  %v1961_v14 = vpop.f32.mrb[41].mxu0 }
 0x176   : > { %v1962_v15 = vpop.f32.mrb[42].mxu0  ;;  %v1999_v16 = vpop.f32.mrb[40].mxu1 }
 0x177   : > { %v2000_v17 = vadd.f32 %v1999_v16, %v1960_v13  ;;  %v1963_v18 = vpop.f32.mrb[43].mxu0  ;;  %v2001_v19 = vpop.f32.mrb[41].mxu1 }
 0x178   : > { %v2002_v20 = vpop.f32.mrb[42].mxu1 }
 0x179   : > { %v2003_v21 = vpop.f32.mrb[43].mxu1 }
 0x17c   : > { %v2039_v22 = vpop.f32.mrb[44].mxu0 }
 0x17d   : > { %v2040_v23 = vadd.f32 %v2039_v22, %v2000_v17  ;;  %v2041_v24 = vpop.f32.mrb[45].mxu0 }
 0x17e   : > { %v2042_v25 = vpop.f32.mrb[46].mxu0  ;;  %v2079_v26 = vpop.f32.mrb[44].mxu1 }
 0x17f   : > { %v2080_v27 = vadd.f32 %v2079_v26, %v2040_v23  ;;  %v2043_v28 = vpop.f32.mrb[47].mxu0  ;;  %v2081_v29 = vpop.f32.mrb[45].mxu1 }
 0x180   : > { %v2082_v30 = vpop.f32.mrb[46].mxu1 }
 0x181   : > { %v2083_v31 = vpop.f32.mrb[47].mxu1 }
 0x184   : > { %v2119_v32 = vpop.f32.mrb[48].mxu0 }
 0x185   : > { %v2120_v33 = vadd.f32 %v2119_v32, %v2080_v27  ;;  %v2121_v34 = vpop.f32.mrb[49].mxu0 }
 0x186   : > { %v2122_v35 = vpop.f32.mrb[50].mxu0  ;;  %v2159_v36 = vpop.f32.mrb[48].mxu1 }
 0x187   : > { %v2160_v37 = vadd.f32 %v2159_v36, %v2120_v33  ;;  %v2123_v38 = vpop.f32.mrb[51].mxu0  ;;  %v2161_v39 = vpop.f32.mrb[49].mxu1 }
 0x188   : > { %v2162_v40 = vpop.f32.mrb[50].mxu1 }
 0x189   : > { %v2163_v41 = vpop.f32.mrb[51].mxu1 }
 0x18c   : > { %v2199_v42 = vpop.f32.mrb[52].mxu0 }
 0x18d   : > { %v2200_v43 = vadd.f32 %v2199_v42, %v2160_v37  ;;  %v2201_v44 = vpop.f32.mrb[53].mxu0 }
 0x18e   : > { %v2202_v45 = vpop.f32.mrb[54].mxu0  ;;  %v2239_v46 = vpop.f32.mrb[52].mxu1 }
 0x18f   : > { %v2240_v47 = vadd.f32 %v2239_v46, %v2200_v43  ;;  %v2203_v48 = vpop.f32.mrb[55].mxu0  ;;  %v2241_v49 = vpop.f32.mrb[53].mxu1 }
 0x190   : > { %v2242_v50 = vpop.f32.mrb[54].mxu1 }
 0x191   : > { %v2243_v51 = vpop.f32.mrb[55].mxu1 }
 0x194   : > { %v2279_v52 = vpop.f32.mrb[56].mxu0 }
 0x195   : > { %v2280_v53 = vadd.f32 %v2279_v52, %v2240_v47  ;;  %v2281_v54 = vpop.f32.mrb[57].mxu0  ;;  %2331 = sbr.rel (%p2452_p10) target bundleno = 422 (0x1a6), region = 63 }
 0x196   : > { %v2282_v9 = vpop.f32.mrb[58].mxu0  ;;  %v2319_v56 = vpop.f32.mrb[56].mxu1 }
 0x197   : > { %v2320_v57 = vadd.f32 %v2319_v56, %v2280_v53  ;;  %v2283_v58 = vpop.f32.mrb[59].mxu0  ;;  %v2321_v59 = vpop.f32.mrb[57].mxu1 }
 0x198   : > { %v2322_v60 = vpop.f32.mrb[58].mxu1 }
 0x199   : > { %v2325_v61 = vadd.f32 %v2320_v57, %v321_v55  ;;  %v2323_v62 = vpop.f32.mrb[59].mxu1 }
 0x19b   : > { %2327 = vst.msk [vmem:[%s2946_s3] sm:$0x3] %vm2326_vm1, %v2325_v61 }
 0x1a2   : > { %v2332_v63 = vld [vmem:[%s2946_s3] sm:$0x3] }
 0x1a3   : > { %v2340_v1 = vadd.f32 %v2453_v0, %v2332_v63 }
 0x1a5   : > { %2341 = vst.msk [vmem:[%s2946_s3] sm:$0x3] %vm2326_vm1, %v2340_v1 }
 0x1a6 PF: > { %p10_p11 = scmp.ge.s32.totalorder %s2647_s16, 10   ;;  %s2947_s12 = smov %s2600_s13 }
 0x1a7   : > { %s2948_s13 = smov %s2656_s19  ;;  %s2949_s14 = smov %s2647_s16 }
 0x1a8   :  { %12 = sbr.rel (!%p10_p11) target bundleno = 2 (0x2), region = 97 }

</bundles_post_ra>
